<compile_context>
chip_gen: v7x
topology: tpu7x:2x2x1
jax: 0.10.0
libtpu: 0.0.40
codegen_flags: <defaults>
</compile_context>

<pallas_src>
import functools

import jax
import jax.numpy as jnp
from jax import lax
from jax.experimental import pallas as pl
from jax.experimental.pallas import tpu as pltpu


KSIZE = 3
C_OUT = 256
FC1_IN = 9728      # = 256 * 38 (hardcoded in the PyTorch module)
HIDDEN = 2048

_CORE_PARALLEL = getattr(pltpu, "CORE_PARALLEL", "parallel")


# ---------------------------------------------------------------------------
# Chip-aware configuration
# ---------------------------------------------------------------------------
def _device_kind():
    try:
        return jax.devices()[0].device_kind.lower()
    except Exception:
        return ""


def _fallback_config():
    # Conservative tiles that fit the 16 MiB default scoped VMEM on any chip.
    return dict(fuse=False, tn=HIDDEN, tk1=512, tk2=512, vmem=None,
                core_parallel=False)


def _chip_config():
    kind = _device_kind()
    if "v7" in kind:
        # v7x: 2 TCs / 64 MiB VMEM per TC.  Split output columns across cores so
        # each streams half the weights; ~10 MB + ~8 MB of weight buffers per TC.
        return dict(fuse=False, tn=HIDDEN // 2, tk1=2432, tk2=HIDDEN,
                    vmem=40 * 1024 * 1024, core_parallel=True)
    if "v6" in kind or "v5" in kind:
        # v5e/v6e: 1 TC / 128 MiB physical VMEM.  Fused fc1+fc2, full-N tiles,
        # 4 k-steps of ~10 MB fc1 weight blocks + the resident 8 MB fc2 block
        # (~37 MB total) — needs the scoped-VMEM limit raised above the default.
        return dict(fuse=True, tn=HIDDEN, tk1=2432, tk2=HIDDEN,
                    vmem=80 * 1024 * 1024, core_parallel=False)
    return _fallback_config()


# ---------------------------------------------------------------------------
# Generic tiled  out = act(x @ w + b)  kernel  (P1 + P3 accumulator pattern)
# grid = (N // tn, K // tk); column axis first so it can be core-parallel.
# ---------------------------------------------------------------------------
def _matmul_bias_act_kernel(x_ref, w_ref, b_ref, o_ref, acc_ref, *, activation):
    k = pl.program_id(1)

    @pl.when(k == 0)
    def _():
        acc_ref[...] = jnp.zeros_like(acc_ref)

    acc_ref[...] += jnp.dot(
        x_ref[...], w_ref[...], preferred_element_type=jnp.float32
    )

    @pl.when(k == pl.num_programs(1) - 1)
    def _():
        y = acc_ref[...] + b_ref[...]          # (1, tn) bias broadcasts over rows
        if activation == "relu":
            y = jnp.maximum(y, 0.0)
        o_ref[...] = y.astype(o_ref.dtype)


def matmul_bias_act(x, w, b, *, activation="none", tn, tk, out_dtype,
                    vmem_limit_bytes=None, j_semantics="parallel"):
    """y = act(x @ w + b).  x: (M, K), w: (K, N), b: (N,).  f32 accumulation."""
    M, K = x.shape
    K2, N = w.shape
    assert K == K2 and b.shape == (N,)
    # K=9728 lane-aligned (multiple-of-128) divisors: 128/256/512/2432/4864/9728.
    assert N % tn == 0 and K % tk == 0
    b2 = b.reshape(1, N).astype(jnp.float32)

    kernel = functools.partial(_matmul_bias_act_kernel, activation=activation)
    return pl.pallas_call(
        kernel,
        out_shape=jax.ShapeDtypeStruct((M, N), out_dtype),
        grid_spec=pltpu.PrefetchScalarGridSpec(
            num_scalar_prefetch=0,
            grid=(N // tn, K // tk),
            in_specs=[
                pl.BlockSpec((M, tk), lambda j, k: (0, k)),
                pl.BlockSpec((tk, tn), lambda j, k: (k, j)),
                pl.BlockSpec((1, tn), lambda j, k: (0, j)),
            ],
            out_specs=pl.BlockSpec((M, tn), lambda j, k: (0, j)),
            scratch_shapes=[pltpu.VMEM((M, tn), jnp.float32)],
        ),
        compiler_params=pltpu.CompilerParams(
            dimension_semantics=(j_semantics, "arbitrary"),
            vmem_limit_bytes=vmem_limit_bytes,
        ),
    )(x, w, b2)


# ---------------------------------------------------------------------------
# Fused fc1(+ReLU)+fc2 kernel for single-TC chips (tn == HIDDEN).
# k-sweep accumulates fc1; epilogue applies bias+ReLU, casts to bf16 and runs
# fc2 on the resident (B, HIDDEN) activation.  w2 is streamed once under the
# same pipeline (constant block index).
# ---------------------------------------------------------------------------
def _fused_fc_kernel(x_ref, w1_ref, b1_ref, w2_ref, b2_ref, o_ref, acc_ref):
    k = pl.program_id(0)

    @pl.when(k == 0)
    def _():
        acc_ref[...] = jnp.zeros_like(acc_ref)

    acc_ref[...] += jnp.dot(
        x_ref[...], w1_ref[...], preferred_element_type=jnp.float32
    )

    @pl.when(k == pl.num_programs(0) - 1)
    def _():
        h1 = jnp.maximum(acc_ref[...] + b1_ref[...], 0.0).astype(w2_ref.dtype)
        y = jnp.dot(h1, w2_ref[...], preferred_element_type=jnp.float32)
        o_ref[...] = (y + b2_ref[...]).astype(o_ref.dtype)


def fused_fc(flat, w1, b1, w2, b2, *, tk1, vmem_limit_bytes):
    M, K1 = flat.shape
    K1b, N = w1.shape
    assert K1 == K1b and w2.shape == (N, N) and K1 % tk1 == 0
    b1r = b1.reshape(1, N).astype(jnp.float32)
    b2r = b2.reshape(1, N).astype(jnp.float32)

    return pl.pallas_call(
        _fused_fc_kernel,
        out_shape=jax.ShapeDtypeStruct((M, N), jnp.float32),
        grid_spec=pltpu.PrefetchScalarGridSpec(
            num_scalar_prefetch=0,
            grid=(K1 // tk1,),
            in_specs=[
                pl.BlockSpec((M, tk1), lambda k: (0, k)),
                pl.BlockSpec((tk1, N), lambda k: (k, 0)),
                pl.BlockSpec((1, N), lambda k: (0, 0)),
                pl.BlockSpec((N, N), lambda k: (0, 0)),
                pl.BlockSpec((1, N), lambda k: (0, 0)),
            ],
            out_specs=pl.BlockSpec((M, N), lambda k: (0, 0)),
            scratch_shapes=[pltpu.VMEM((M, N), jnp.float32)],
        ),
        compiler_params=pltpu.CompilerParams(
            dimension_semantics=("arbitrary",),
            vmem_limit_bytes=vmem_limit_bytes,
        ),
    )(flat, w1, b1r, w2, b2r)


# ---------------------------------------------------------------------------
# CharCNN forward (factory so the chip config is a trace-time constant)
# ---------------------------------------------------------------------------
def make_char_cnn_forward(cfg):
    j_sem = _CORE_PARALLEL if cfg["core_parallel"] else "parallel"

    def forward(x, p):
        B, C_in, L = x.shape
        L_out = L - KSIZE + 1
        assert C_OUT * L_out == FC1_IN, "input length must be 40 (fc1 in = 9728)"

        # Conv1d(k=3,stride=1)+ReLU: tiny (~1 MFLOP), fused XLA im2col einsum.
        idx = jnp.arange(L_out)[:, None] + jnp.arange(KSIZE)[None, :]
        patches = x[:, :, idx]                                   # (B, C_in, L_out, K)
        conv = jnp.einsum("bclk,ock->blo", patches, p["conv_w"],
                          precision=lax.Precision.HIGHEST)       # (B, L_out, C_OUT)
        conv = jnp.maximum(conv + p["conv_b"][None, None, :], 0.0)

        # (L_out, C_OUT)-ordered flatten; fc1_w rows were pre-permuted to match.
        flat = conv.reshape(B, L_out * C_OUT).astype(jnp.bfloat16)

        if cfg["fuse"]:
            return fused_fc(flat, p["fc1_w"], p["fc1_b"], p["fc2_w"], p["fc2_b"],
                            tk1=cfg["tk1"], vmem_limit_bytes=cfg["vmem"])

        h1 = matmul_bias_act(flat, p["fc1_w"], p["fc1_b"], activation="relu",
                             tn=cfg["tn"], tk=cfg["tk1"], out_dtype=jnp.bfloat16,
                             vmem_limit_bytes=cfg["vmem"], j_semantics=j_sem)
        return matmul_bias_act(h1, p["fc2_w"], p["fc2_b"], activation="none",
                               tn=cfg["tn"], tk=cfg["tk2"], out_dtype=jnp.float32,
                               vmem_limit_bytes=cfg["vmem"], j_semantics=j_sem)

    return jax.jit(forward)


# ---------------------------------------------------------------------------
# Parameter prep: bf16 weights + one-time fc1 row permutation (outside jit)
# ---------------------------------------------------------------------------
def prepare_params(params):
    L_out = FC1_IN // C_OUT
    # new feature index j = l*C_OUT + c  maps to old PyTorch index c*L_out + l
    perm = jnp.arange(FC1_IN).reshape(C_OUT, L_out).T.reshape(-1)
    return {
        "conv_w": params["conv_w"],
        "conv_b": params["conv_b"],
        "fc1_w": params["fc1_w"][perm].astype(jnp.bfloat16),
        "fc1_b": params["fc1_b"],
        "fc2_w": params["fc2_w"].astype(jnp.bfloat16),
        "fc2_b": params["fc2_b"],
    }


# ---------------------------------------------------------------------------
# Pure-JAX reference (PyTorch layout/order, same bf16-quantized fc weights)
# ---------------------------------------------------------------------------
def char_cnn_reference(x, params):
    B, C_in, L = x.shape
    L_out = L - KSIZE + 1
    windows = jnp.stack([x[:, :, t:t + KSIZE] for t in range(L_out)], axis=2)
    conv = jnp.einsum("bclk,ock->bol", windows, params["conv_w"],
                      precision=lax.Precision.HIGHEST)
    conv = jnp.maximum(conv + params["conv_b"][None, :, None], 0.0)
    flat = conv.reshape(B, -1)                      # channel-major (PyTorch) flatten
    w1 = params["fc1_w"].astype(jnp.bfloat16)       # original (unpermuted) layout
    w2 = params["fc2_w"].astype(jnp.bfloat16)
    h1 = jnp.dot(flat.astype(jnp.bfloat16), w1,
                 preferred_element_type=jnp.float32) + params["fc1_b"]
    h1 = jnp.maximum(h1, 0.0)
    h2 = jnp.dot(h1.astype(jnp.bfloat16), w2,
                 preferred_element_type=jnp.float32) + params["fc2_b"]
    return h2


# ---------------------------------------------------------------------------
def init_params(key, num_features):
    ks = jax.random.split(key, 6)
    s = 0.05
    return {
        "conv_w": s * jax.random.normal(ks[0], (C_OUT, num_features, KSIZE), jnp.float32),
        "conv_b": s * jax.random.normal(ks[1], (C_OUT,), jnp.float32),
        # PyTorch Linear stores (out,in); we store the transposed (in,out) matrix.
        "fc1_w": s * jax.random.normal(ks[2], (FC1_IN, HIDDEN), jnp.float32),
        "fc1_b": s * jax.random.normal(ks[3], (HIDDEN,), jnp.float32),
        "fc2_w": s * jax.random.normal(ks[4], (HIDDEN, HIDDEN), jnp.float32),
        "fc2_b": s * jax.random.normal(ks[5], (HIDDEN,), jnp.float32),
    }


if __name__ == "__main__":
    key = jax.random.PRNGKey(0)
    k_x, k_p = jax.random.split(key)

    batch, num_features, length = 2, 8, 40   # length 40 -> conv out 38 -> 256*38 = 9728
    x = jax.random.normal(k_x, (batch, num_features, length), jnp.float32)
    params = init_params(k_p, num_features)
    prepared = prepare_params(params)        # one-time: bf16 cast + fc1 row permute

    # Primary chip-tuned config, with graceful fallbacks (first to plain
    # "parallel" semantics, then to small default-VMEM tiles) so the script
    # always runs cleanly even if a chip rejects the aggressive configuration.
    cfg0 = _chip_config()
    candidates = [cfg0]
    if cfg0["core_parallel"]:
        candidates.append(dict(cfg0, core_parallel=False))
    fb = _fallback_config()
    if fb not in candidates:
        candidates.append(fb)

    out, last_err = None, None
    for cfg in candidates:
        try:
            fwd = make_char_cnn_forward(cfg)
            out = jax.block_until_ready(fwd(x, prepared))
            break
        except Exception as e:   # pragma: no cover - only on config rejection
            last_err = e
    if out is None:
        raise last_err

    ref = char_cnn_reference(x, params)
    assert out.shape == (batch, HIDDEN), out.shape
    max_err = float(jnp.max(jnp.abs(out - ref)))
    assert jnp.allclose(out, ref, rtol=2e-3, atol=2e-3), max_err
    print("KERNEL_OK")
</pallas_src>

<mosaic_0001>
module attributes {stable_mosaic.version = 11 : i64} {
  func.func @_matmul_bias_act_kernel(%arg0: i32, %arg1: i32, %arg2: memref<2x512xbf16, #tpu.memory_space<vmem>>, %arg3: memref<512x2048xbf16, #tpu.memory_space<vmem>>, %arg4: memref<1x2048xf32, #tpu.memory_space<vmem>>, %arg5: memref<2x2048xbf16, #tpu.memory_space<vmem>>, %arg6: memref<2x2048xf32, #tpu.memory_space<vmem>>) attributes {dimension_semantics = [#tpu.dimension_semantics<parallel>, #tpu.dimension_semantics<arbitrary>], iteration_bounds = array<i64: 1, 19>, scalar_prefetch = 0 : i64, scratch_operands = 1 : i64, tpu.core_type = #tpu.core_type<tc>, window_params = [{transform_indices = @transform_0, window_bounds = array<i64: 2, 512>}, {transform_indices = @transform_1, window_bounds = array<i64: 512, 2048>}, {transform_indices = @transform_2, window_bounds = array<i64: 1, 2048>}, {transform_indices = @transform_3, window_bounds = array<i64: 2, 2048>}]} {
    %c0_i32 = arith.constant 0 : i32
    %0 = arith.cmpi eq, %arg1, %c0_i32 : i32
    %1 = arith.extui %0 : i1 to i32
    %c0_i32_0 = arith.constant 0 : i32
    %2 = arith.cmpi ne, %1, %c0_i32_0 : i32
    scf.if %2 {
      %cst_9 = arith.constant 0.000000e+00 : f32
      %12 = vector.broadcast %cst_9 : f32 to vector<2x2048xf32>
      %c0_10 = arith.constant 0 : index
      %c0_11 = arith.constant 0 : index
      %13 = vector.load %arg6[%c0_10, %c0_11] : memref<2x2048xf32, #tpu.memory_space<vmem>>, vector<2x2048xf32>
      tpu.vector_store %arg6[%c0_10, %c0_11], %12 {strides = array<i32>} : memref<2x2048xf32, #tpu.memory_space<vmem>>, vector<2x2048xf32>,
    } else {
    }
    %c0 = arith.constant 0 : index
    %c0_1 = arith.constant 0 : index
    %3 = vector.load %arg6[%c0, %c0_1] : memref<2x2048xf32, #tpu.memory_space<vmem>>, vector<2x2048xf32>
    %c0_2 = arith.constant 0 : index
    %c0_3 = arith.constant 0 : index
    %4 = vector.load %arg2[%c0_2, %c0_3] : memref<2x512xbf16, #tpu.memory_space<vmem>>, vector<2x512xbf16>
    %c0_4 = arith.constant 0 : index
    %c0_5 = arith.constant 0 : index
    %5 = vector.load %arg3[%c0_4, %c0_5] : memref<512x2048xbf16, #tpu.memory_space<vmem>>, vector<512x2048xbf16>
    %cst = arith.constant dense<0.000000e+00> : vector<2x2048xf32>
    %6 = tpu.matmul %4, %5, %cst {dimension_numbers = #tpu.dot_dimension_numbers<[1], [0], [0], [1], [0, 0, 1, 1], [], []>} : vector<2x512xbf16>, vector<512x2048xbf16>, vector<2x2048xf32> -> vector<2x2048xf32>
    %7 = arith.addf %3, %6 : vector<2x2048xf32>
    %c0_6 = arith.constant 0 : index
    %c0_7 = arith.constant 0 : index
    %8 = vector.load %arg6[%c0_6, %c0_7] : memref<2x2048xf32, #tpu.memory_space<vmem>>, vector<2x2048xf32>
    tpu.vector_store %arg6[%c0_6, %c0_7], %7 {strides = array<i32>} : memref<2x2048xf32, #tpu.memory_space<vmem>>, vector<2x2048xf32>,
    %c18_i32 = arith.constant 18 : i32
    %9 = arith.cmpi eq, %arg1, %c18_i32 : i32
    %10 = arith.extui %9 : i1 to i32
    %c0_i32_8 = arith.constant 0 : i32
    %11 = arith.cmpi ne, %10, %c0_i32_8 : i32
    scf.if %11 {
      %c0_9 = arith.constant 0 : index
      %c0_10 = arith.constant 0 : index
      %12 = vector.load %arg6[%c0_9, %c0_10] : memref<2x2048xf32, #tpu.memory_space<vmem>>, vector<2x2048xf32>
      %c0_11 = arith.constant 0 : index
      %c0_12 = arith.constant 0 : index
      %13 = vector.load %arg4[%c0_11, %c0_12] : memref<1x2048xf32, #tpu.memory_space<vmem>>, vector<1x2048xf32>
      %14 = vector.broadcast %13 : vector<1x2048xf32> to vector<2x2048xf32>
      %15 = arith.addf %12, %14 : vector<2x2048xf32>
      %cst_13 = arith.constant 0.000000e+00 : f32
      %16 = vector.broadcast %cst_13 : f32 to vector<2x2048xf32>
      %17 = arith.maximumf %15, %16 : vector<2x2048xf32>
      %18 = arith.truncf %17 : vector<2x2048xf32> to vector<2x2048xbf16>
      %c0_14 = arith.constant 0 : index
      %c0_15 = arith.constant 0 : index
      %19 = vector.load %arg5[%c0_14, %c0_15] : memref<2x2048xbf16, #tpu.memory_space<vmem>>, vector<2x2048xbf16>
      tpu.vector_store %arg5[%c0_14, %c0_15], %18 {strides = array<i32>} : memref<2x2048xbf16, #tpu.memory_space<vmem>>, vector<2x2048xbf16>,
    } else {
    }
    return
  }
  func.func @transform_0(%arg0: i32, %arg1: i32) -> (i32, i32) {
    %c0_i32 = arith.constant 0 : i32
    %c0_i32_0 = arith.constant 0 : i32
    return %c0_i32, %arg1 : i32, i32
  }
  func.func @transform_1(%arg0: i32, %arg1: i32) -> (i32, i32) {
    %c0_i32 = arith.constant 0 : i32
    return %arg1, %arg0 : i32, i32
  }
  func.func @transform_2(%arg0: i32, %arg1: i32) -> (i32, i32) {
    %c0_i32 = arith.constant 0 : i32
    %c0_i32_0 = arith.constant 0 : i32
    return %c0_i32, %arg0 : i32, i32
  }
  func.func @transform_3(%arg0: i32, %arg1: i32) -> (i32, i32) {
    %c0_i32 = arith.constant 0 : i32
    %c0_i32_0 = arith.constant 0 : i32
    return %c0_i32, %arg0 : i32, i32
  }
}

module attributes {stable_mosaic.version = 11 : i64} {
  func.func @_matmul_bias_act_kernel(%arg0: i32, %arg1: i32, %arg2: memref<2x512xbf16, #tpu.memory_space<vmem>>, %arg3: memref<512x2048xbf16, #tpu.memory_space<vmem>>, %arg4: memref<1x2048xf32, #tpu.memory_space<vmem>>, %arg5: memref<2x2048xf32, #tpu.memory_space<vmem>>, %arg6: memref<2x2048xf32, #tpu.memory_space<vmem>>) attributes {dimension_semantics = [#tpu.dimension_semantics<parallel>, #tpu.dimension_semantics<arbitrary>], iteration_bounds = array<i64: 1, 4>, scalar_prefetch = 0 : i64, scratch_operands = 1 : i64, tpu.core_type = #tpu.core_type<tc>, window_params = [{transform_indices = @transform_0, window_bounds = array<i64: 2, 512>}, {transform_indices = @transform_1, window_bounds = array<i64: 512, 2048>}, {transform_indices = @transform_2, window_bounds = array<i64: 1, 2048>}, {transform_indices = @transform_3, window_bounds = array<i64: 2, 2048>}]} {
    %c0_i32 = arith.constant 0 : i32
    %0 = arith.cmpi eq, %arg1, %c0_i32 : i32
    %1 = arith.extui %0 : i1 to i32
    %c0_i32_0 = arith.constant 0 : i32
    %2 = arith.cmpi ne, %1, %c0_i32_0 : i32
    scf.if %2 {
      %cst_9 = arith.constant 0.000000e+00 : f32
      %12 = vector.broadcast %cst_9 : f32 to vector<2x2048xf32>
      %c0_10 = arith.constant 0 : index
      %c0_11 = arith.constant 0 : index
      %13 = vector.load %arg6[%c0_10, %c0_11] : memref<2x2048xf32, #tpu.memory_space<vmem>>, vector<2x2048xf32>
      tpu.vector_store %arg6[%c0_10, %c0_11], %12 {strides = array<i32>} : memref<2x2048xf32, #tpu.memory_space<vmem>>, vector<2x2048xf32>,
    } else {
    }
    %c0 = arith.constant 0 : index
    %c0_1 = arith.constant 0 : index
    %3 = vector.load %arg6[%c0, %c0_1] : memref<2x2048xf32, #tpu.memory_space<vmem>>, vector<2x2048xf32>
    %c0_2 = arith.constant 0 : index
    %c0_3 = arith.constant 0 : index
    %4 = vector.load %arg2[%c0_2, %c0_3] : memref<2x512xbf16, #tpu.memory_space<vmem>>, vector<2x512xbf16>
    %c0_4 = arith.constant 0 : index
    %c0_5 = arith.constant 0 : index
    %5 = vector.load %arg3[%c0_4, %c0_5] : memref<512x2048xbf16, #tpu.memory_space<vmem>>, vector<512x2048xbf16>
    %cst = arith.constant dense<0.000000e+00> : vector<2x2048xf32>
    %6 = tpu.matmul %4, %5, %cst {dimension_numbers = #tpu.dot_dimension_numbers<[1], [0], [0], [1], [0, 0, 1, 1], [], []>} : vector<2x512xbf16>, vector<512x2048xbf16>, vector<2x2048xf32> -> vector<2x2048xf32>
    %7 = arith.addf %3, %6 : vector<2x2048xf32>
    %c0_6 = arith.constant 0 : index
    %c0_7 = arith.constant 0 : index
    %8 = vector.load %arg6[%c0_6, %c0_7] : memref<2x2048xf32, #tpu.memory_space<vmem>>, vector<2x2048xf32>
    tpu.vector_store %arg6[%c0_6, %c0_7], %7 {strides = array<i32>} : memref<2x2048xf32, #tpu.memory_space<vmem>>, vector<2x2048xf32>,
    %c3_i32 = arith.constant 3 : i32
    %9 = arith.cmpi eq, %arg1, %c3_i32 : i32
    %10 = arith.extui %9 : i1 to i32
    %c0_i32_8 = arith.constant 0 : i32
    %11 = arith.cmpi ne, %10, %c0_i32_8 : i32
    scf.if %11 {
      %c0_9 = arith.constant 0 : index
      %c0_10 = arith.constant 0 : index
      %12 = vector.load %arg6[%c0_9, %c0_10] : memref<2x2048xf32, #tpu.memory_space<vmem>>, vector<2x2048xf32>
      %c0_11 = arith.constant 0 : index
      %c0_12 = arith.constant 0 : index
      %13 = vector.load %arg4[%c0_11, %c0_12] : memref<1x2048xf32, #tpu.memory_space<vmem>>, vector<1x2048xf32>
      %14 = vector.broadcast %13 : vector<1x2048xf32> to vector<2x2048xf32>
      %15 = arith.addf %12, %14 : vector<2x2048xf32>
      %c0_13 = arith.constant 0 : index
      %c0_14 = arith.constant 0 : index
      %16 = vector.load %arg5[%c0_13, %c0_14] : memref<2x2048xf32, #tpu.memory_space<vmem>>, vector<2x2048xf32>
      tpu.vector_store %arg5[%c0_13, %c0_14], %15 {strides = array<i32>} : memref<2x2048xf32, #tpu.memory_space<vmem>>, vector<2x2048xf32>,
    } else {
    }
    return
  }
  func.func @transform_0(%arg0: i32, %arg1: i32) -> (i32, i32) {
    %c0_i32 = arith.constant 0 : i32
    %c0_i32_0 = arith.constant 0 : i32
    return %c0_i32, %arg1 : i32, i32
  }
  func.func @transform_1(%arg0: i32, %arg1: i32) -> (i32, i32) {
    %c0_i32 = arith.constant 0 : i32
    return %arg1, %arg0 : i32, i32
  }
  func.func @transform_2(%arg0: i32, %arg1: i32) -> (i32, i32) {
    %c0_i32 = arith.constant 0 : i32
    %c0_i32_0 = arith.constant 0 : i32
    return %c0_i32, %arg0 : i32, i32
  }
  func.func @transform_3(%arg0: i32, %arg1: i32) -> (i32, i32) {
    %c0_i32 = arith.constant 0 : i32
    %c0_i32_0 = arith.constant 0 : i32
    return %c0_i32, %arg0 : i32, i32
  }
}

</mosaic_0001>

<bundles_post_ra>
// kernel: forward.2
= control target key start
LH: loop header
LB: loop body
LE: loop exit
PB: predicated region body
PF: predicated region fallthrough
CT: control target
= control target key end

     0   :  { %8 = vsyncpa [#allocation4], 0  ;;  %s6172_s0 = inlined_call_operand.vmem [shape: bf16[2,9728], index: 0, kind: input, shape index: {}]   ;;  %s6173_s1 = inlined_call_operand.hbm [shape: bf16[9728,2048], index: 1, kind: input, shape index: {}]   ;;  %s6174_s2 = inlined_call_operand.hbm [shape: f32[1,2048], index: 2, kind: input, shape index: {}]   ;;  %s6175_s3 = inlined_call_operand.vmem [shape: bf16[2,2048], index: 3, kind: output, shape index: {}]  }
   0x1   :  { %10 = vsyncpa [#allocation4 + $0x1], 0 }
   0x2   :  { %11 = vsyncpa [#allocation6], 0  ;;  %s5370_s12 = smov 0   ;;  %s5372_s13 = smov 0  }
   0x3   :  { %s5374_s14 = smov 0   ;;  %s5376_s15 = smov 0  }
   0x4   :  { %s5378_s16 = smov 0   ;;  %s5380_s17 = smov 0  }
   0x5 LB: > { %s4585_s18 = sadd.s32 4294967295, %s5341_s17   ;;  %s64_s19 = sadd.s32 1, %s5329_s14  ;;  %s5341_s17 = sphi %s5380_s17, %s17_s17   ;;  %s5337_s16 = sphi %s5378_s16, %s6195_s16   ;;  %s5333_s15 = sphi %s5376_s15, %s6194_s15   ;;  %s5329_s14 = sphi %s5374_s14, %s6193_s14   ;;  %s5325_s13 = sphi %s5372_s13, %s6192_s13   ;;  %s5321_s12 = sphi %s5370_s12, %s6191_s12  }
   0x6   : > { %p71_p0 = scmp.ne.s32.totalorder %s5329_s14, %s5325_s13  ;;  %p72_p1 = scmp.eq.s32.totalorder %s5341_s17, 0 }
   0x7   : > { %p77_p2 = scmp.ne.s32.totalorder %s5325_s13, %s5321_s12  ;;  %p5404_p3 = scmp.eq.s32.totalorder %s4585_s18, 0 }
   0x8   : > { %p73_p4 = por %p72_p1, %p71_p0  ;;  %p4586_p5 = scmp.ge.s32.totalorder %s5341_s17, 1 }
   0x9   : > { %s6181_s20 = scalar_select %p5404_p3, 1, 0 }
   0xa   : > { %p5411_p6 = por %p5404_p3, %p77_p2  ;;  %p140_p7 = scmp.lt.s32.totalorder %s5341_s17, 20 }
   0xb   : > { %s5343_s23 = smov [#allocation5]   ;;  %p5173_p10 = scmp.lt.s32.totalorder %s5341_s17, 19 }
   0xc   : > { %s6182_s21 = scalar_select %p5411_p6, 1, 0 }
   0xd   : > { %p5416_p8 = pnand %p4586_p5, %p140_p7  ;;  %s156_s24 = sshll.u32 %s5343_s23, 4  ;;  %s157_s24 = int_to_ptr.vmem [resolvable:$true] %s156_s24 }
   0xe   : > { %s175_s25 = sand.u32 1, %s5329_s14   ;;  %p5430_p12 = pnand %p5173_p10, %p73_p4 }
   0xf   : > { %s6183_s22 = scalar_select %p5416_p8, 1, 0 }
  0x10   : > { %p5164_p9 = pneg %p5416_p8  ;;  %s5229_s30 = scalar_lea.hbm %s6174_s2, 256 }
  0x11   : > { %s6185_s27 = scalar_select %p5430_p12, 1, 0 }
  0x12   : > { %p5426_p11 = pnand %p5164_p9, %p5404_p3  ;;  %p5230_p13 = scmp.ne.s32.totalorder %s6174_s2, %s5229_s30 }
  0x13   : > { %p5236_p5 = scmp.lt.u32.totalorder %s5229_s30, %s6174_s2 }
  0x14   : > { %p5231_p0 = pneg %p5426_p11 }
  0x16   : > { %p5232_p1 = pnand %p5231_p0, %p5230_p13 }
  0x18   : > { %p5233_p2 = pneg %p5232_p1 }
  0x1a   : > { %p5238_p4 = pnand %p5236_p5, %p5233_p2 }
  0x1c   : > { %5241 = shalt.err (!%p5238_p4)
}
  0x1d   : > { %s5242_s8 = scalar_lea.vmem %s157_s24, 256  ;;  %p5250_p3 = scmp.lt.s32.totalorder %s157_s24, %s157_s24 }
  0x1e   : > { %p5243_p7 = scmp.ne.s32.totalorder %s157_s24, %s5242_s8  ;;  %p5251_p6 = scmp.lt.s32.totalorder %s5242_s8, %s5242_s8 }
  0x20   : > { %p5245_p9 = pnand %p5243_p7, %p5231_p0  ;;  %p5252_p8 = por %p5251_p6, %p5250_p3 }
  0x22   : > { %p5246_p10 = pneg %p5245_p9 }
  0x24   : > { %p5253_p12 = pnand %p5252_p8, %p5246_p10 }
  0x26   : > { %5256 = shalt.err (!%p5253_p12)
}
  0x27   : > { %5167 = dma.hbm_to_vmem [thread:$0]  (!%p5426_p11), %s6174_s2, 256, %s157_s24, [#allocation6]  }
  0x28   : > { %s26_s11 = sadd.s32 1, %s5337_s16  ;;  %s4589_s12 = sshll.u32 %s175_s25, 12 }
  0x29   : > { %p27_p13 = scmp.ge.s32.totalorder %s26_s11, 19  ;;  %s5125_s18 = sshll.u32 %s5337_s16, 16 }
  0x2a   : > { %s179_s23 = scalar_lea.vmem [#allocation3], %s4589_s12  ;;  %s5459_s30 = scalar_lea.hbm %s6173_s1, %s5125_s18 }
  0x2b   : > { %s189_s28 = sshll.u32 %s179_s23, 4  ;;  %s6197_s11 = smov (%p27_p13, %s26_s11), 0  ;;  %s5461_s28 = int_to_ptr.vmem [resolvable:$true] %s189_s28 }
  0x2c   : > { %s59_s24 = ssub.s32 %s5337_s16, %s6197_s11  ;;  %s5471_s5 = scalar_lea.sflag [#allocation4], %s175_s25 }
  0x2d   : > { %p5465_p3 = scmp.eq.s32.totalorder %s59_s24, 0  ;;  %s5257_s6 = scalar_lea.hbm %s5459_s30, 65536 }
  0x2e   : > { %p5258_p6 = scmp.ne.s32.totalorder %s5459_s30, %s5257_s6  ;;  %p6187_p8 = scmp.ne.s32.totalorder %s6185_s27, 0 }
  0x2f   : > { %s5262_s9 = scalar_lea.hbm %s6173_s1, 1245184  ;;  %p5263_p1 = scmp.lt.u32.totalorder %s5459_s30, %s6173_s1 }
  0x30   : > { %p5259_p11 = pneg %p6187_p8  ;;  %p5264_p2 = scmp.lt.u32.totalorder %s5262_s9, %s5257_s6 }
  0x31   : > { %p5266_p4 = scmp.lt.u32.totalorder %s5257_s6, %s5459_s30 }
  0x32   : > { %p5260_p12 = pnand %p5259_p11, %p5258_p6  ;;  %p5265_p5 = por %p5264_p2, %p5263_p1 }
  0x34   : > { %p5261_p0 = pneg %p5260_p12  ;;  %p5267_p7 = por %p5266_p4, %p5265_p5 }
  0x36   : > { %p5268_p9 = pnand %p5267_p7, %p5261_p0 }
  0x38   : > { %5271 = shalt.err (!%p5268_p9)
}
  0x39   : > { %s5272_s25 = scalar_lea.vmem %s5461_s28, 65536  ;;  %s5344_s18 = smov [#allocation3]  }
  0x3a   : > { %p5273_p10 = scmp.ne.s32.totalorder %s5461_s28, %s5272_s25  ;;  %s5277_s23 = sshll.u32 %s5344_s18, 4  ;;  %s5278_s23 = int_to_ptr.vmem [resolvable:$false] %s5277_s23 }
  0x3b   : > { %s5279_s26 = scalar_lea.vmem %s5278_s23, 131072  ;;  %p5280_p12 = scmp.lt.s32.totalorder %s5461_s28, %s5278_s23 }
  0x3c   : > { %p5275_p13 = pnand %p5273_p10, %p5259_p11  ;;  %p5281_p1 = scmp.lt.s32.totalorder %s5279_s26, %s5272_s25 }
  0x3e   : > { %p5276_p6 = pneg %p5275_p13  ;;  %p5282_p2 = por %p5281_p1, %p5280_p12 }
  0x40   : > { %p5283_p5 = pnand %p5282_p2, %p5276_p6 }
  0x42   : > { %5286 = shalt.err (!%p5283_p5)
}
  0x43   : > { %s5345_s29 = smov 1024   ;;  %s5346_s24 = smov 64  }
  0x44   : > { %5171 = dma.hbm_to_vmem [thread:$0]  (!%p6187_p8), %s5459_s30, 65536, %s5461_s28, %s5471_s5, %s5345_s29, %s5345_s29, %s5346_s24  }
  0x45   : > { %s5504_s6 = scalar_select %p5465_p3, %s5329_s14, %s64_s19  }
  0x46   : > { %p6188_p11 = scmp.ne.s32.totalorder %s6183_s22, 0 }
  0x47   : > { %s203_s7 = sand.u32 (!%p6188_p11), 1, %s5325_s13   ;;  %p6189_p0 = scmp.ne.s32.totalorder (!%p6188_p11), %s6182_s21, 0 }
  0x48   : > { %201 = sbr.rel (%p6188_p11) target bundleno = 858 (0x35a), region = 32  ;;  %s4594_s8 = sshll.u32 (!%p6188_p11), %s203_s7, 12 }
  0x49   : > { %s204_s9 = scalar_lea.sflag (!%p6188_p11), [#allocation4], %s203_s7  ;;  %s5509_s10 = scalar_lea.vmem (!%p6188_p11), [#allocation3], %s4594_s8 }
  0x4f   : > { %5312 = dma.done.wait (%p6189_p0), %s204_s9, 65536  }
  0x50   : > { %5314 = vsyncadd (%p6189_p0), %s204_s9, 4294901760  ;;  %p6190_p8 = scmp.ne.s32.totalorder %s6181_s20, 0 }
  0x52   : > { %5316 = dma.done.wait (%p6190_p8), [#allocation6], 256  }
  0x53   : > { %5318 = vsyncadd (%p6190_p8), [#allocation6], 4294967040  ;;  %s4596_s19 = sshll.u32 %s5333_s15, 2  ;;  %p4597_p4 = scmp.ne.s32.totalorder %s5333_s15, 0 }
  0x54   : > { %p238_p3 = scmp.lt.s32.totalorder %s4596_s19, 75  ;;  %v5347_v0 = vmov (!%p4597_p4), 0.0  }
  0x55   : > { %253 = sbr.rel (%p4597_p4) target bundleno = 92 (0x5c), region = 44  ;;  %254 = vst [vmem:[#allocation2] sm:$0xff] (!%p4597_p4), %v5347_v0  ;;  %255 = vst [vmem:[#allocation2 + $0x8] sm:$0xff] (!%p4597_p4), %v5347_v0 }
  0x56   : > { %s6199_s19 = smov (!%p238_p3, %s4596_s19), 75  ;;  %256 = vst [vmem:[#allocation2 + $0x10] sm:$0xff] (!%p4597_p4), %v5347_v0  ;;  %257 = vst [vmem:[#allocation2 + $0x18] sm:$0xff] (!%p4597_p4), %v5347_v0 }
  0x57   : > { %s240_s28 = scalar_lea.vmem %s6172_s0, %s6199_s19 }
  0x5c PF: > { %v263_v1 = vld [vmem:[%s5509_s10] sm:$0xff]  ;;  %v264_v3 = vld [vmem:[%s5509_s10 + $0x8] sm:$0xff]  ;;  %v5348_v36 = vmov 1966171168   ;;  %v787_v38 = vlaneseq  ;;  %p5111_p7 = scmp.ne.s32.totalorder %s5333_s15, 18 }
  0x5d   : > { %v271_v2 = vld [vmem:[%s5509_s10 + $0x40] sm:$0xff]  ;;  %v272_v5 = vld [vmem:[%s5509_s10 + $0x48] sm:$0xff]  ;;  %v785_v37 = vunpack.c.l.s4 %v5348_v36  ;;  %v5565_v60 = vld.sshfl [vmem:[%s240_s28] sm:$0x33 pattern:$0x75316420] }
  0x5e   : > { %v4600_v4 = vcombine.high %v263_v1, %v271_v2  ;;  %v4599_v6 = vcombine.low %v263_v1, %v271_v2  ;;  %v279_v7 = vld [vmem:[%s5509_s10 + $0x80] sm:$0xff]  ;;  %v4602_v9 = vcombine.high %v264_v3, %v272_v5  ;;  %v4601_v10 = vcombine.low %v264_v3, %v272_v5  ;;  %v280_v12 = vld [vmem:[%s5509_s10 + $0x88] sm:$0xff] }
  0x5f   : > { %v287_v8 = vld [vmem:[%s5509_s10 + $0xc0] sm:$0xff]  ;;  %v288_v13 = vld [vmem:[%s5509_s10 + $0xc8] sm:$0xff]  ;;  %v786_v47 = vunpack.c.0.s8 %v785_v37  ;;  %v5551_v48 = vshrl.u32 %v787_v38, 7  ;;  %v783_v0 = vcombine.high %v5565_v60, %v5565_v60 }
  0x60   : > { %v4616_v11 = vcombine.high %v279_v7, %v287_v8  ;;  %v295_v14 = vld [vmem:[%s5509_s10 + $0x100] sm:$0xff]  ;;  %3364 = vmatprep.subr.bf16.mxu0 %v4600_v4  ;;  %v4618_v15 = vcombine.high %v280_v12, %v288_v13  ;;  %v296_v17 = vld [vmem:[%s5509_s10 + $0x108] sm:$0xff]  ;;  %3446 = vmatprep.subr.bf16.mxu1 %v4602_v9  ;;  %v4615_v19 = vcombine.low %v279_v7, %v287_v8 }
  0x61   : > { %v303_v16 = vld [vmem:[%s5509_s10 + $0x140] sm:$0xff]  ;;  %v304_v18 = vld [vmem:[%s5509_s10 + $0x148] sm:$0xff]  ;;  %3365 = vmatpush1.bf16.msra.mxu0 %v4599_v6  ;;  %3447 = vmatpush1.bf16.msra.mxu1 %v4601_v10  ;;  %v4617_v20 = vcombine.low %v280_v12, %v288_v13  ;;  %v5558_v57 = vsub.s32 %v786_v47, %v5551_v48 }
  0x62   : > { %3366 = vmatprep.subr.bf16.mxu0 %v4616_v11  ;;  %v4632_v21 = vcombine.high %v295_v14, %v303_v16  ;;  %3448 = vmatprep.subr.bf16.mxu1 %v4618_v15  ;;  %v4634_v22 = vcombine.high %v296_v17, %v304_v18  ;;  %v311_v23 = vld [vmem:[%s5509_s10 + $0x180] sm:$0xff]  ;;  %v312_v25 = vld [vmem:[%s5509_s10 + $0x188] sm:$0xff]  ;;  %v4631_v27 = vcombine.low %v295_v14, %v303_v16 }
  0x63   : > { %v319_v24 = vld [vmem:[%s5509_s10 + $0x1c0] sm:$0xff]  ;;  %v320_v26 = vld [vmem:[%s5509_s10 + $0x1c8] sm:$0xff]  ;;  %v4633_v28 = vcombine.low %v296_v17, %v304_v18  ;;  %v5574_v4 = vrot.slane %v783_v0, %v5558_v57 }
  0x64   : > { %v4648_v29 = vcombine.high %v311_v23, %v319_v24  ;;  %v4650_v30 = vcombine.high %v312_v25, %v320_v26  ;;  %v327_v31 = vld [vmem:[%s5509_s10 + $0x200] sm:$0xff]  ;;  %v328_v33 = vld [vmem:[%s5509_s10 + $0x208] sm:$0xff]  ;;  %v4647_v35 = vcombine.low %v311_v23, %v319_v24  ;;  %v4649_v39 = vcombine.low %v312_v25, %v320_v26 }
  0x65   : > { %3367 = vmatpush1.bf16.msra.mxu0 %v4615_v19  ;;  %3449 = vmatpush1.bf16.msra.mxu1 %v4617_v20  ;;  %v335_v32 = vld [vmem:[%s5509_s10 + $0x240] sm:$0xff]  ;;  %v336_v34 = vld [vmem:[%s5509_s10 + $0x248] sm:$0xff] }
  0x66   : > { %3368 = vmatprep.subr.bf16.mxu0 %v4632_v21  ;;  %3450 = vmatprep.subr.bf16.mxu1 %v4634_v22  ;;  %v4664_v40 = vcombine.high %v327_v31, %v335_v32  ;;  %v4666_v41 = vcombine.high %v328_v33, %v336_v34  ;;  %v343_v42 = vld [vmem:[%s5509_s10 + $0x280] sm:$0xff]  ;;  %v344_v44 = vld [vmem:[%s5509_s10 + $0x288] sm:$0xff]  ;;  %v4663_v46 = vcombine.low %v327_v31, %v335_v32 }
  0x67   : > { %v351_v43 = vld [vmem:[%s5509_s10 + $0x2c0] sm:$0xff]  ;;  %v352_v45 = vld [vmem:[%s5509_s10 + $0x2c8] sm:$0xff]  ;;  %v4665_v49 = vcombine.low %v328_v33, %v336_v34  ;;  %3396 = vmatprep.mubr.bf16.mxu0 %v5574_v4  ;;  %3478 = vmatprep.mubr.bf16.mxu1 %v5574_v4 }
  0x68   : > { %v4680_v50 = vcombine.high %v343_v42, %v351_v43  ;;  %v4682_v51 = vcombine.high %v344_v44, %v352_v45  ;;  %v359_v52 = vld [vmem:[%s5509_s10 + $0x300] sm:$0xff]  ;;  %v360_v54 = vld [vmem:[%s5509_s10 + $0x308] sm:$0xff]  ;;  %v4679_v56 = vcombine.low %v343_v42, %v351_v43  ;;  %v4681_v58 = vcombine.low %v344_v44, %v352_v45 }
  0x69   : > { %3369 = vmatpush1.bf16.msra.mxu0 %v4631_v27  ;;  %3451 = vmatpush1.bf16.msra.mxu1 %v4633_v28  ;;  %v367_v53 = vld [vmem:[%s5509_s10 + $0x340] sm:$0xff]  ;;  %v368_v55 = vld [vmem:[%s5509_s10 + $0x348] sm:$0xff] }
  0x6a   : > { %3370 = vmatprep.subr.bf16.mxu0 %v4648_v29  ;;  %3452 = vmatprep.subr.bf16.mxu1 %v4650_v30  ;;  %v4696_v59 = vcombine.high %v359_v52, %v367_v53  ;;  %v4698_v61 = vcombine.high %v360_v54, %v368_v55  ;;  %v375_v62 = vld [vmem:[%s5509_s10 + $0x380] sm:$0xff]  ;;  %v376_v1 = vld [vmem:[%s5509_s10 + $0x388] sm:$0xff]  ;;  %v4695_v3 = vcombine.low %v359_v52, %v367_v53 }
  0x6b   : > { %v383_v63 = vld [vmem:[%s5509_s10 + $0x3c0] sm:$0xff]  ;;  %v384_v2 = vld [vmem:[%s5509_s10 + $0x3c8] sm:$0xff]  ;;  %v4697_v5 = vcombine.low %v360_v54, %v368_v55 }
  0x6c   : > { %v4712_v6 = vcombine.high %v375_v62, %v383_v63  ;;  %v4714_v7 = vcombine.high %v376_v1, %v384_v2  ;;  %v391_v8 = vld [vmem:[%s5509_s10 + $0x400] sm:$0xff]  ;;  %v392_v10 = vld [vmem:[%s5509_s10 + $0x408] sm:$0xff]  ;;  %v4711_v12 = vcombine.low %v375_v62, %v383_v63  ;;  %v4713_v13 = vcombine.low %v376_v1, %v384_v2 }
  0x6d   : > { %3371 = vmatpush1.bf16.msra.mxu0 %v4647_v35  ;;  %3453 = vmatpush1.bf16.msra.mxu1 %v4649_v39  ;;  %v399_v9 = vld [vmem:[%s5509_s10 + $0x440] sm:$0xff]  ;;  %v400_v11 = vld [vmem:[%s5509_s10 + $0x448] sm:$0xff] }
  0x6e   : > { %3372 = vmatprep.subr.bf16.mxu0 %v4664_v40  ;;  %3454 = vmatprep.subr.bf16.mxu1 %v4666_v41  ;;  %v4728_v14 = vcombine.high %v391_v8, %v399_v9  ;;  %v4730_v15 = vcombine.high %v392_v10, %v400_v11  ;;  %v407_v16 = vld [vmem:[%s5509_s10 + $0x480] sm:$0xff]  ;;  %v408_v18 = vld [vmem:[%s5509_s10 + $0x488] sm:$0xff]  ;;  %v4727_v20 = vcombine.low %v391_v8, %v399_v9 }
  0x6f   : > { %v415_v17 = vld [vmem:[%s5509_s10 + $0x4c0] sm:$0xff]  ;;  %v416_v19 = vld [vmem:[%s5509_s10 + $0x4c8] sm:$0xff]  ;;  %v4729_v21 = vcombine.low %v392_v10, %v400_v11 }
  0x70   : > { %v4744_v22 = vcombine.high %v407_v16, %v415_v17  ;;  %v4746_v23 = vcombine.high %v408_v18, %v416_v19  ;;  %v423_v24 = vld [vmem:[%s5509_s10 + $0x500] sm:$0xff]  ;;  %v424_v26 = vld [vmem:[%s5509_s10 + $0x508] sm:$0xff]  ;;  %v4743_v28 = vcombine.low %v407_v16, %v415_v17  ;;  %v4745_v29 = vcombine.low %v408_v18, %v416_v19 }
  0x71   : > { %3373 = vmatpush1.bf16.msra.mxu0 %v4663_v46  ;;  %3455 = vmatpush1.bf16.msra.mxu1 %v4665_v49  ;;  %v431_v25 = vld [vmem:[%s5509_s10 + $0x540] sm:$0xff]  ;;  %v432_v27 = vld [vmem:[%s5509_s10 + $0x548] sm:$0xff] }
  0x72   : > { %3374 = vmatprep.subr.bf16.mxu0 %v4680_v50  ;;  %3456 = vmatprep.subr.bf16.mxu1 %v4682_v51  ;;  %v4760_v30 = vcombine.high %v423_v24, %v431_v25  ;;  %v4762_v31 = vcombine.high %v424_v26, %v432_v27  ;;  %v439_v32 = vld [vmem:[%s5509_s10 + $0x580] sm:$0xff]  ;;  %v440_v34 = vld [vmem:[%s5509_s10 + $0x588] sm:$0xff]  ;;  %v4759_v36 = vcombine.low %v423_v24, %v431_v25 }
  0x73   : > { %v447_v33 = vld [vmem:[%s5509_s10 + $0x5c0] sm:$0xff]  ;;  %v448_v35 = vld [vmem:[%s5509_s10 + $0x5c8] sm:$0xff]  ;;  %v4761_v37 = vcombine.low %v424_v26, %v432_v27 }
  0x74   : > { %v4776_v38 = vcombine.high %v439_v32, %v447_v33  ;;  %v4778_v39 = vcombine.high %v440_v34, %v448_v35  ;;  %v455_v40 = vld [vmem:[%s5509_s10 + $0x600] sm:$0xff]  ;;  %v456_v42 = vld [vmem:[%s5509_s10 + $0x608] sm:$0xff]  ;;  %v4775_v44 = vcombine.low %v439_v32, %v447_v33  ;;  %v4777_v45 = vcombine.low %v440_v34, %v448_v35 }
  0x75   : > { %3375 = vmatpush1.bf16.msra.mxu0 %v4679_v56  ;;  %3457 = vmatpush1.bf16.msra.mxu1 %v4681_v58  ;;  %v463_v41 = vld [vmem:[%s5509_s10 + $0x640] sm:$0xff]  ;;  %v464_v43 = vld [vmem:[%s5509_s10 + $0x648] sm:$0xff] }
  0x76   : > { %3376 = vmatprep.subr.bf16.mxu0 %v4696_v59  ;;  %3458 = vmatprep.subr.bf16.mxu1 %v4698_v61  ;;  %v4792_v46 = vcombine.high %v455_v40, %v463_v41  ;;  %v4794_v47 = vcombine.high %v456_v42, %v464_v43  ;;  %v471_v49 = vld [vmem:[%s5509_s10 + $0x680] sm:$0xff]  ;;  %v472_v51 = vld [vmem:[%s5509_s10 + $0x688] sm:$0xff]  ;;  %v4791_v53 = vcombine.low %v455_v40, %v463_v41 }
  0x77   : > { %v479_v50 = vld [vmem:[%s5509_s10 + $0x6c0] sm:$0xff]  ;;  %v480_v52 = vld [vmem:[%s5509_s10 + $0x6c8] sm:$0xff]  ;;  %v4793_v54 = vcombine.low %v456_v42, %v464_v43 }
  0x78   : > { %v4808_v55 = vcombine.high %v471_v49, %v479_v50  ;;  %v4810_v56 = vcombine.high %v472_v51, %v480_v52  ;;  %v487_v58 = vld [vmem:[%s5509_s10 + $0x700] sm:$0xff]  ;;  %v488_v61 = vld [vmem:[%s5509_s10 + $0x708] sm:$0xff]  ;;  %v4807_v63 = vcombine.low %v471_v49, %v479_v50  ;;  %v4809_v0 = vcombine.low %v472_v51, %v480_v52 }
  0x79   : > { %3377 = vmatpush1.bf16.msra.mxu0 %v4695_v3  ;;  %3459 = vmatpush1.bf16.msra.mxu1 %v4697_v5  ;;  %v495_v59 = vld [vmem:[%s5509_s10 + $0x740] sm:$0xff]  ;;  %v496_v62 = vld [vmem:[%s5509_s10 + $0x748] sm:$0xff] }
  0x7a   : > { %3378 = vmatprep.subr.bf16.mxu0 %v4712_v6  ;;  %3460 = vmatprep.subr.bf16.mxu1 %v4714_v7  ;;  %v4824_v1 = vcombine.high %v487_v58, %v495_v59  ;;  %v4826_v2 = vcombine.high %v488_v61, %v496_v62  ;;  %v503_v3 = vld [vmem:[%s5509_s10 + $0x780] sm:$0xff]  ;;  %v504_v6 = vld [vmem:[%s5509_s10 + $0x788] sm:$0xff]  ;;  %v4823_v8 = vcombine.low %v487_v58, %v495_v59 }
  0x7b   : > { %v511_v5 = vld [vmem:[%s5509_s10 + $0x7c0] sm:$0xff]  ;;  %v512_v7 = vld [vmem:[%s5509_s10 + $0x7c8] sm:$0xff]  ;;  %v4825_v9 = vcombine.low %v488_v61, %v496_v62 }
  0x7c   : > { %v4840_v10 = vcombine.high %v503_v3, %v511_v5  ;;  %v4842_v11 = vcombine.high %v504_v6, %v512_v7  ;;  %v4839_v16 = vcombine.low %v503_v3, %v511_v5  ;;  %v4841_v17 = vcombine.low %v504_v6, %v512_v7  ;;  %v544_v24 = vld [vmem:[%s5509_s10 + $0x8c8] sm:$0xff] }
  0x7d   : > { %3379 = vmatpush1.bf16.msra.mxu0 %v4711_v12  ;;  %3461 = vmatpush1.bf16.msra.mxu1 %v4713_v13  ;;  %v519_v12 = vld [vmem:[%s5509_s10 + $0x800] sm:$0xff]  ;;  %v560_v32 = vld [vmem:[%s5509_s10 + $0x948] sm:$0xff] }
  0x7e   : > { %3380 = vmatprep.subr.bf16.mxu0 %v4728_v14  ;;  %3462 = vmatprep.subr.bf16.mxu1 %v4730_v15  ;;  %v527_v13 = vld [vmem:[%s5509_s10 + $0x840] sm:$0xff]  ;;  %v520_v14 = vld [vmem:[%s5509_s10 + $0x808] sm:$0xff] }
  0x7f   : > { %v528_v15 = vld [vmem:[%s5509_s10 + $0x848] sm:$0xff]  ;;  %v4856_v18 = vcombine.high %v519_v12, %v527_v13  ;;  %v4855_v25 = vcombine.low %v519_v12, %v527_v13 }
  0x80   : > { %v4858_v19 = vcombine.high %v520_v14, %v528_v15  ;;  %v4857_v26 = vcombine.low %v520_v14, %v528_v15  ;;  %v576_v40 = vld [vmem:[%s5509_s10 + $0x9c8] sm:$0xff] }
  0x81   : > { %3381 = vmatpush1.bf16.msra.mxu0 %v4727_v20  ;;  %3463 = vmatpush1.bf16.msra.mxu1 %v4729_v21  ;;  %v535_v20 = vld [vmem:[%s5509_s10 + $0x880] sm:$0xff]  ;;  %v592_v49 = vld [vmem:[%s5509_s10 + $0xa48] sm:$0xff] }
  0x82   : > { %3382 = vmatprep.subr.bf16.mxu0 %v4744_v22  ;;  %3464 = vmatprep.subr.bf16.mxu1 %v4746_v23  ;;  %v543_v21 = vld [vmem:[%s5509_s10 + $0x8c0] sm:$0xff]  ;;  %v5618_v22 = vrot.slane %v5565_v60, %v5558_v57  ;;  %v536_v23 = vld [vmem:[%s5509_s10 + $0x888] sm:$0xff] }
  0x83   : > { %v4872_v27 = vcombine.high %v535_v20, %v543_v21  ;;  %v552_v60 = vld [vmem:[%s5509_s10 + $0x908] sm:$0xff]  ;;  %v4871_v33 = vcombine.low %v535_v20, %v543_v21  ;;  %v4873_v34 = vcombine.low %v536_v23, %v544_v24 }
  0x84   : > { %v4889_v42 = vcombine.low %v552_v60, %v560_v32  ;;  %v608_v58 = vld [vmem:[%s5509_s10 + $0xac8] sm:$0xff] }
  0x85   : > { %3383 = vmatpush1.bf16.msra.mxu0 %v4743_v28  ;;  %3465 = vmatpush1.bf16.msra.mxu1 %v4745_v29  ;;  %v4874_v28 = vcombine.high %v536_v23, %v544_v24  ;;  %v551_v29 = vld [vmem:[%s5509_s10 + $0x900] sm:$0xff]  ;;  %v624_v3 = vld [vmem:[%s5509_s10 + $0xb48] sm:$0xff] }
  0x86   : > { %3384 = vmatprep.subr.bf16.mxu0 %v4760_v30  ;;  %3466 = vmatprep.subr.bf16.mxu1 %v4762_v31  ;;  %v559_v30 = vld [vmem:[%s5509_s10 + $0x940] sm:$0xff]  ;;  %v5626_v31 = vcombine.high %v5574_v4, %v5574_v4  ;;  %v640_v12 = vld [vmem:[%s5509_s10 + $0xbc8] sm:$0xff] }
  0x87   : > { %v4888_v35 = vcombine.high %v551_v29, %v559_v30  ;;  %v4887_v41 = vcombine.low %v551_v29, %v559_v30  ;;  %v656_v20 = vld [vmem:[%s5509_s10 + $0xc48] sm:$0xff] }
  0x88   : > { %v672_v29 = vld [vmem:[%s5509_s10 + $0xcc8] sm:$0xff] }
  0x89   : > { %3385 = vmatpush1.bf16.msra.mxu0 %v4759_v36  ;;  %3467 = vmatpush1.bf16.msra.mxu1 %v4761_v37  ;;  %v4890_v36 = vcombine.high %v552_v60, %v560_v32  ;;  %v567_v37 = vld [vmem:[%s5509_s10 + $0x980] sm:$0xff] }
  0x8a   : > { %3386 = vmatprep.subr.bf16.mxu0 %v4776_v38  ;;  %3468 = vmatprep.subr.bf16.mxu1 %v4778_v39  ;;  %v575_v38 = vld [vmem:[%s5509_s10 + $0x9c0] sm:$0xff]  ;;  %v568_v39 = vld [vmem:[%s5509_s10 + $0x988] sm:$0xff] }
  0x8b   : > { %v4904_v43 = vcombine.high %v567_v37, %v575_v38  ;;  %v4903_v50 = vcombine.low %v567_v37, %v575_v38  ;;  %v4905_v51 = vcombine.low %v568_v39, %v576_v40  ;;  %v688_v37 = vld [vmem:[%s5509_s10 + $0xd48] sm:$0xff] }
  0x8d   : > { %3387 = vmatpush1.bf16.msra.mxu0 %v4775_v44  ;;  %3469 = vmatpush1.bf16.msra.mxu1 %v4777_v45  ;;  %v4906_v44 = vcombine.high %v568_v39, %v576_v40  ;;  %v583_v45 = vld [vmem:[%s5509_s10 + $0xa00] sm:$0xff] }
  0x8e   : > { %3388 = vmatprep.subr.bf16.mxu0 %v4792_v46  ;;  %3470 = vmatprep.subr.bf16.mxu1 %v4794_v47  ;;  %v591_v46 = vld [vmem:[%s5509_s10 + $0xa40] sm:$0xff]  ;;  %v584_v47 = vld [vmem:[%s5509_s10 + $0xa08] sm:$0xff] }
  0x8f   : > { %v4920_v52 = vcombine.high %v583_v45, %v591_v46  ;;  %v4919_v59 = vcombine.low %v583_v45, %v591_v46  ;;  %v4921_v61 = vcombine.low %v584_v47, %v592_v49  ;;  %v704_v45 = vld [vmem:[%s5509_s10 + $0xdc8] sm:$0xff] }
  0x91   : > { %3389 = vmatpush1.bf16.msra.mxu0 %v4791_v53  ;;  %3471 = vmatpush1.bf16.msra.mxu1 %v4793_v54  ;;  %v4922_v53 = vcombine.high %v584_v47, %v592_v49  ;;  %v599_v54 = vld [vmem:[%s5509_s10 + $0xa80] sm:$0xff] }
  0x92   : > { %3390 = vmatprep.subr.bf16.mxu0 %v4808_v55  ;;  %3472 = vmatprep.subr.bf16.mxu1 %v4810_v56  ;;  %v607_v55 = vld [vmem:[%s5509_s10 + $0xac0] sm:$0xff]  ;;  %v600_v56 = vld [vmem:[%s5509_s10 + $0xa88] sm:$0xff] }
  0x93   : > { %v4936_v62 = vcombine.high %v599_v54, %v607_v55  ;;  %v4935_v5 = vcombine.low %v599_v54, %v607_v55  ;;  %v4937_v6 = vcombine.low %v600_v56, %v608_v58  ;;  %v720_v54 = vld [vmem:[%s5509_s10 + $0xe48] sm:$0xff] }
  0x95   : > { %3391 = vmatpush1.bf16.msra.mxu0 %v4807_v63  ;;  %3473 = vmatpush1.bf16.msra.mxu1 %v4809_v0  ;;  %v4938_v63 = vcombine.high %v600_v56, %v608_v58  ;;  %v615_v0 = vld [vmem:[%s5509_s10 + $0xb00] sm:$0xff] }
  0x96   : > { %3392 = vmatprep.subr.bf16.mxu0 %v4824_v1  ;;  %3474 = vmatprep.subr.bf16.mxu1 %v4826_v2  ;;  %v623_v1 = vld [vmem:[%s5509_s10 + $0xb40] sm:$0xff]  ;;  %v616_v2 = vld [vmem:[%s5509_s10 + $0xb08] sm:$0xff] }
  0x97   : > { %v4952_v7 = vcombine.high %v615_v0, %v623_v1  ;;  %v4951_v13 = vcombine.low %v615_v0, %v623_v1  ;;  %v4953_v14 = vcombine.low %v616_v2, %v624_v3  ;;  %v736_v0 = vld [vmem:[%s5509_s10 + $0xec8] sm:$0xff] }
  0x99   : > { %3393 = vmatpush1.bf16.msra.mxu0 %v4823_v8  ;;  %3475 = vmatpush1.bf16.msra.mxu1 %v4825_v9  ;;  %v4954_v8 = vcombine.high %v616_v2, %v624_v3  ;;  %v631_v9 = vld [vmem:[%s5509_s10 + $0xb80] sm:$0xff] }
  0x9a   : > { %3394 = vmatprep.subr.bf16.mxu0 %v4840_v10  ;;  %3476 = vmatprep.subr.bf16.mxu1 %v4842_v11  ;;  %v639_v10 = vld [vmem:[%s5509_s10 + $0xbc0] sm:$0xff]  ;;  %v632_v11 = vld [vmem:[%s5509_s10 + $0xb88] sm:$0xff] }
  0x9b   : > { %v4968_v15 = vcombine.high %v631_v9, %v639_v10  ;;  %v4967_v21 = vcombine.low %v631_v9, %v639_v10  ;;  %v4969_v23 = vcombine.low %v632_v11, %v640_v12  ;;  %v752_v9 = vld [vmem:[%s5509_s10 + $0xf48] sm:$0xff] }
  0x9d   : > { %3395 = vmatpush1.bf16.msra.mxu0 %v4839_v16  ;;  %3477 = vmatpush1.bf16.msra.mxu1 %v4841_v17  ;;  %v4970_v16 = vcombine.high %v632_v11, %v640_v12  ;;  %v647_v17 = vld [vmem:[%s5509_s10 + $0xc00] sm:$0xff] }
  0x9e   : > { %3405 = vmatprep.subr.bf16.mxu0 %v4856_v18  ;;  %3487 = vmatprep.subr.bf16.mxu1 %v4858_v19  ;;  %v655_v18 = vld [vmem:[%s5509_s10 + $0xc40] sm:$0xff]  ;;  %v648_v19 = vld [vmem:[%s5509_s10 + $0xc08] sm:$0xff] }
  0x9f   : > { %v4984_v24 = vcombine.high %v647_v17, %v655_v18  ;;  %v4983_v30 = vcombine.low %v647_v17, %v655_v18  ;;  %v4985_v60 = vcombine.low %v648_v19, %v656_v20  ;;  %v768_v17 = vld [vmem:[%s5509_s10 + $0xfc8] sm:$0xff] }
  0xa0   : > { %3397 = vmatmul.mubr.bf16.vlgmr.msra.gmra.mrb[0].mxu0 %v5618_v22  ;;  %3479 = vmatmul.mubr.bf16.vlgmr.msra.gmra.mrb[0].mxu1 %v5618_v22 }
  0xa1   : > { %3406 = vmatpush1.bf16.msra.mxu0 %v4855_v25  ;;  %3488 = vmatpush1.bf16.msra.mxu1 %v4857_v26  ;;  %v4986_v25 = vcombine.high %v648_v19, %v656_v20  ;;  %v663_v26 = vld [vmem:[%s5509_s10 + $0xc80] sm:$0xff] }
  0xa2   : > { %3407 = vmatprep.subr.bf16.mxu0 %v4872_v27  ;;  %3489 = vmatprep.subr.bf16.mxu1 %v4874_v28  ;;  %v671_v27 = vld [vmem:[%s5509_s10 + $0xcc0] sm:$0xff]  ;;  %v664_v28 = vld [vmem:[%s5509_s10 + $0xc88] sm:$0xff] }
  0xa3   : > { %3437 = vmatprep.mubr.bf16.mxu0 %v5626_v31  ;;  %3519 = vmatprep.mubr.bf16.mxu1 %v5626_v31  ;;  %v5000_v32 = vcombine.high %v663_v26, %v671_v27  ;;  %v4999_v38 = vcombine.low %v663_v26, %v671_v27  ;;  %v5001_v39 = vcombine.low %v664_v28, %v672_v29  ;;  %v274_v26 = vld [vmem:[%s5509_s10 + $0x58] sm:$0xff] }
  0xa5   : > { %3408 = vmatpush1.bf16.msra.mxu0 %v4871_v33  ;;  %3490 = vmatpush1.bf16.msra.mxu1 %v4873_v34  ;;  %v5002_v33 = vcombine.high %v664_v28, %v672_v29  ;;  %v679_v34 = vld [vmem:[%s5509_s10 + $0xd00] sm:$0xff] }
  0xa6   : > { %3409 = vmatprep.subr.bf16.mxu0 %v4888_v35  ;;  %3491 = vmatprep.subr.bf16.mxu1 %v4890_v36  ;;  %v687_v35 = vld [vmem:[%s5509_s10 + $0xd40] sm:$0xff]  ;;  %v680_v36 = vld [vmem:[%s5509_s10 + $0xd08] sm:$0xff] }
  0xa7   : > { %v5016_v40 = vcombine.high %v679_v34, %v687_v35  ;;  %v5015_v46 = vcombine.low %v679_v34, %v687_v35  ;;  %v5017_v47 = vcombine.low %v680_v36, %v688_v37  ;;  %v282_v34 = vld [vmem:[%s5509_s10 + $0x98] sm:$0xff] }
  0xa8   : > { %v290_v35 = vld [vmem:[%s5509_s10 + $0xd8] sm:$0xff] }
  0xa9   : > { %3410 = vmatpush1.bf16.msra.mxu0 %v4887_v41  ;;  %3492 = vmatpush1.bf16.msra.mxu1 %v4889_v42  ;;  %v5018_v41 = vcombine.high %v680_v36, %v688_v37  ;;  %v695_v42 = vld [vmem:[%s5509_s10 + $0xd80] sm:$0xff] }
  0xaa   : > { %3411 = vmatprep.subr.bf16.mxu0 %v4904_v43  ;;  %3493 = vmatprep.subr.bf16.mxu1 %v4906_v44  ;;  %v703_v43 = vld [vmem:[%s5509_s10 + $0xdc0] sm:$0xff]  ;;  %v696_v44 = vld [vmem:[%s5509_s10 + $0xd88] sm:$0xff] }
  0xab   : > { %v5032_v49 = vcombine.high %v695_v42, %v703_v43  ;;  %v5031_v55 = vcombine.low %v695_v42, %v703_v43  ;;  %v5033_v56 = vcombine.low %v696_v44, %v704_v45  ;;  %v298_v42 = vld [vmem:[%s5509_s10 + $0x118] sm:$0xff] }
  0xac   : > { %v306_v43 = vld [vmem:[%s5509_s10 + $0x158] sm:$0xff] }
  0xad   : > { %3412 = vmatpush1.bf16.msra.mxu0 %v4903_v50  ;;  %3494 = vmatpush1.bf16.msra.mxu1 %v4905_v51  ;;  %v5034_v50 = vcombine.high %v696_v44, %v704_v45  ;;  %v711_v51 = vld [vmem:[%s5509_s10 + $0xe00] sm:$0xff]  ;;  %v4621_v45 = vcombine.low %v282_v34, %v290_v35 }
  0xae   : > { %3413 = vmatprep.subr.bf16.mxu0 %v4920_v52  ;;  %3495 = vmatprep.subr.bf16.mxu1 %v4922_v53  ;;  %v719_v52 = vld [vmem:[%s5509_s10 + $0xe40] sm:$0xff]  ;;  %v712_v53 = vld [vmem:[%s5509_s10 + $0xe08] sm:$0xff] }
  0xaf   : > { %v5048_v58 = vcombine.high %v711_v51, %v719_v52  ;;  %v5047_v1 = vcombine.low %v711_v51, %v719_v52  ;;  %v5049_v2 = vcombine.low %v712_v53, %v720_v54  ;;  %v314_v51 = vld [vmem:[%s5509_s10 + $0x198] sm:$0xff] }
  0xb0   : > { %v322_v52 = vld [vmem:[%s5509_s10 + $0x1d8] sm:$0xff] }
  0xb1   : > { %3414 = vmatpush1.bf16.msra.mxu0 %v4919_v59  ;;  %3496 = vmatpush1.bf16.msra.mxu1 %v4921_v61  ;;  %v5050_v59 = vcombine.high %v712_v53, %v720_v54  ;;  %v727_v61 = vld [vmem:[%s5509_s10 + $0xe80] sm:$0xff]  ;;  %v4637_v54 = vcombine.low %v298_v42, %v306_v43 }
  0xb2   : > { %3415 = vmatprep.subr.bf16.mxu0 %v4936_v62  ;;  %3497 = vmatprep.subr.bf16.mxu1 %v4938_v63  ;;  %v735_v62 = vld [vmem:[%s5509_s10 + $0xec0] sm:$0xff]  ;;  %v728_v63 = vld [vmem:[%s5509_s10 + $0xe88] sm:$0xff] }
  0xb3   : > { %v5064_v3 = vcombine.high %v727_v61, %v735_v62  ;;  %v5063_v10 = vcombine.low %v727_v61, %v735_v62  ;;  %v5065_v11 = vcombine.low %v728_v63, %v736_v0  ;;  %v330_v61 = vld [vmem:[%s5509_s10 + $0x218] sm:$0xff] }
  0xb4   : > { %v338_v62 = vld [vmem:[%s5509_s10 + $0x258] sm:$0xff] }
  0xb5   : > { %3416 = vmatpush1.bf16.msra.mxu0 %v4935_v5  ;;  %3498 = vmatpush1.bf16.msra.mxu1 %v4937_v6  ;;  %v5066_v5 = vcombine.high %v728_v63, %v736_v0  ;;  %v743_v6 = vld [vmem:[%s5509_s10 + $0xf00] sm:$0xff]  ;;  %v4653_v0 = vcombine.low %v314_v51, %v322_v52 }
  0xb6   : > { %3417 = vmatprep.subr.bf16.mxu0 %v4952_v7  ;;  %3499 = vmatprep.subr.bf16.mxu1 %v4954_v8  ;;  %v751_v7 = vld [vmem:[%s5509_s10 + $0xf40] sm:$0xff]  ;;  %v744_v8 = vld [vmem:[%s5509_s10 + $0xf08] sm:$0xff] }
  0xb7   : > { %v5080_v12 = vcombine.high %v743_v6, %v751_v7  ;;  %v5079_v18 = vcombine.low %v743_v6, %v751_v7  ;;  %v5081_v19 = vcombine.low %v744_v8, %v752_v9  ;;  %v346_v6 = vld [vmem:[%s5509_s10 + $0x298] sm:$0xff] }
  0xb8   : > { %v354_v7 = vld [vmem:[%s5509_s10 + $0x2d8] sm:$0xff] }
  0xb9   : > { %3418 = vmatpush1.bf16.msra.mxu0 %v4951_v13  ;;  %3500 = vmatpush1.bf16.msra.mxu1 %v4953_v14  ;;  %v5082_v13 = vcombine.high %v744_v8, %v752_v9  ;;  %v759_v14 = vld [vmem:[%s5509_s10 + $0xf80] sm:$0xff]  ;;  %v4669_v9 = vcombine.low %v330_v61, %v338_v62 }
  0xba   : > { %3419 = vmatprep.subr.bf16.mxu0 %v4968_v15  ;;  %3501 = vmatprep.subr.bf16.mxu1 %v4970_v16  ;;  %v767_v15 = vld [vmem:[%s5509_s10 + $0xfc0] sm:$0xff]  ;;  %v760_v16 = vld [vmem:[%s5509_s10 + $0xf88] sm:$0xff] }
  0xbb   : > { %v5096_v20 = vcombine.high %v759_v14, %v767_v15  ;;  %v5095_v27 = vcombine.low %v759_v14, %v767_v15  ;;  %v5097_v28 = vcombine.low %v760_v16, %v768_v17  ;;  %v362_v14 = vld [vmem:[%s5509_s10 + $0x318] sm:$0xff] }
  0xbc   : > { %v370_v15 = vld [vmem:[%s5509_s10 + $0x358] sm:$0xff] }
  0xbd   : > { %3420 = vmatpush1.bf16.msra.mxu0 %v4967_v21  ;;  %3502 = vmatpush1.bf16.msra.mxu1 %v4969_v23  ;;  %v5098_v21 = vcombine.high %v760_v16, %v768_v17  ;;  %v265_v23 = vld [vmem:[%s5509_s10 + $0x10] sm:$0xff]  ;;  %v4685_v17 = vcombine.low %v346_v6, %v354_v7 }
  0xbe   : > { %3421 = vmatprep.subr.bf16.mxu0 %v4984_v24  ;;  %3503 = vmatprep.subr.bf16.mxu1 %v4986_v25  ;;  %v273_v24 = vld [vmem:[%s5509_s10 + $0x50] sm:$0xff]  ;;  %v266_v25 = vld [vmem:[%s5509_s10 + $0x18] sm:$0xff] }
  0xbf   : > { %v4604_v29 = vcombine.high %v265_v23, %v273_v24  ;;  %v4603_v36 = vcombine.low %v265_v23, %v273_v24  ;;  %v4605_v37 = vcombine.low %v266_v25, %v274_v26  ;;  %v378_v23 = vld [vmem:[%s5509_s10 + $0x398] sm:$0xff] }
  0xc0   : > { %v386_v24 = vld [vmem:[%s5509_s10 + $0x3d8] sm:$0xff] }
  0xc1   : > { %3422 = vmatpush1.bf16.msra.mxu0 %v4983_v30  ;;  %3504 = vmatpush1.bf16.msra.mxu1 %v4985_v60  ;;  %v4606_v30 = vcombine.high %v266_v25, %v274_v26  ;;  %v281_v60 = vld [vmem:[%s5509_s10 + $0x90] sm:$0xff]  ;;  %v4701_v26 = vcombine.low %v362_v14, %v370_v15 }
  0xc2   : > { %3423 = vmatprep.subr.bf16.mxu0 %v5000_v32  ;;  %3505 = vmatprep.subr.bf16.mxu1 %v5002_v33  ;;  %v289_v32 = vld [vmem:[%s5509_s10 + $0xd0] sm:$0xff]  ;;  %v5694_v33 = vcombine.high %v5618_v22, %v5618_v22 }
  0xc3   : > { %v4619_v44 = vcombine.low %v281_v60, %v289_v32 }
  0xc5   : > { %3424 = vmatpush1.bf16.msra.mxu0 %v4999_v38  ;;  %3506 = vmatpush1.bf16.msra.mxu1 %v5001_v39  ;;  %v4620_v38 = vcombine.high %v281_v60, %v289_v32  ;;  %v4622_v39 = vcombine.high %v282_v34, %v290_v35  ;;  %v394_v60 = vld [vmem:[%s5509_s10 + $0x418] sm:$0xff]  ;;  %v4717_v35 = vcombine.low %v378_v23, %v386_v24 }
  0xc6   : > { %3425 = vmatprep.subr.bf16.mxu0 %v5016_v40  ;;  %3507 = vmatprep.subr.bf16.mxu1 %v5018_v41  ;;  %v297_v40 = vld [vmem:[%s5509_s10 + $0x110] sm:$0xff]  ;;  %v402_v32 = vld [vmem:[%s5509_s10 + $0x458] sm:$0xff] }
  0xc7   : > { %v305_v41 = vld [vmem:[%s5509_s10 + $0x150] sm:$0xff] }
  0xc8   : > { %v4635_v53 = vcombine.low %v297_v40, %v305_v41 }
  0xc9   : > { %3426 = vmatpush1.bf16.msra.mxu0 %v5015_v46  ;;  %3508 = vmatpush1.bf16.msra.mxu1 %v5017_v47  ;;  %v4636_v46 = vcombine.high %v297_v40, %v305_v41  ;;  %v4638_v47 = vcombine.high %v298_v42, %v306_v43  ;;  %v410_v40 = vld [vmem:[%s5509_s10 + $0x498] sm:$0xff]  ;;  %v4733_v43 = vcombine.low %v394_v60, %v402_v32 }
  0xca   : > { %3427 = vmatprep.subr.bf16.mxu0 %v5032_v49  ;;  %3509 = vmatprep.subr.bf16.mxu1 %v5034_v50  ;;  %v313_v49 = vld [vmem:[%s5509_s10 + $0x190] sm:$0xff]  ;;  %v418_v41 = vld [vmem:[%s5509_s10 + $0x4d8] sm:$0xff] }
  0xcb   : > { %v321_v50 = vld [vmem:[%s5509_s10 + $0x1d0] sm:$0xff] }
  0xcc   : > { %v4651_v63 = vcombine.low %v313_v49, %v321_v50 }
  0xcd   : > { %3428 = vmatpush1.bf16.msra.mxu0 %v5031_v55  ;;  %3510 = vmatpush1.bf16.msra.mxu1 %v5033_v56  ;;  %v4652_v55 = vcombine.high %v313_v49, %v321_v50  ;;  %v4654_v56 = vcombine.high %v314_v51, %v322_v52  ;;  %v426_v49 = vld [vmem:[%s5509_s10 + $0x518] sm:$0xff]  ;;  %v4749_v52 = vcombine.low %v410_v40, %v418_v41 }
  0xce   : > { %3429 = vmatprep.subr.bf16.mxu0 %v5048_v58  ;;  %3511 = vmatprep.subr.bf16.mxu1 %v5050_v59  ;;  %v329_v58 = vld [vmem:[%s5509_s10 + $0x210] sm:$0xff]  ;;  %v434_v50 = vld [vmem:[%s5509_s10 + $0x558] sm:$0xff] }
  0xcf   : > { %v337_v59 = vld [vmem:[%s5509_s10 + $0x250] sm:$0xff] }
  0xd0   : > { %v4667_v8 = vcombine.low %v329_v58, %v337_v59 }
  0xd1   : > { %3430 = vmatpush1.bf16.msra.mxu0 %v5047_v1  ;;  %3512 = vmatpush1.bf16.msra.mxu1 %v5049_v2  ;;  %v4668_v1 = vcombine.high %v329_v58, %v337_v59  ;;  %v4670_v2 = vcombine.high %v330_v61, %v338_v62  ;;  %v442_v58 = vld [vmem:[%s5509_s10 + $0x598] sm:$0xff]  ;;  %v4765_v62 = vcombine.low %v426_v49, %v434_v50 }
  0xd2   : > { %3431 = vmatprep.subr.bf16.mxu0 %v5064_v3  ;;  %3513 = vmatprep.subr.bf16.mxu1 %v5066_v5  ;;  %v345_v3 = vld [vmem:[%s5509_s10 + $0x290] sm:$0xff]  ;;  %v450_v59 = vld [vmem:[%s5509_s10 + $0x5d8] sm:$0xff] }
  0xd3   : > { %v353_v5 = vld [vmem:[%s5509_s10 + $0x2d0] sm:$0xff] }
  0xd4   : > { %v4683_v16 = vcombine.low %v345_v3, %v353_v5 }
  0xd5   : > { %3432 = vmatpush1.bf16.msra.mxu0 %v5063_v10  ;;  %3514 = vmatpush1.bf16.msra.mxu1 %v5065_v11  ;;  %v4684_v10 = vcombine.high %v345_v3, %v353_v5  ;;  %v4686_v11 = vcombine.high %v346_v6, %v354_v7  ;;  %v458_v3 = vld [vmem:[%s5509_s10 + $0x618] sm:$0xff]  ;;  %v4781_v7 = vcombine.low %v442_v58, %v450_v59 }
  0xd6   : > { %3433 = vmatprep.subr.bf16.mxu0 %v5080_v12  ;;  %3515 = vmatprep.subr.bf16.mxu1 %v5082_v13  ;;  %v361_v12 = vld [vmem:[%s5509_s10 + $0x310] sm:$0xff]  ;;  %v466_v5 = vld [vmem:[%s5509_s10 + $0x658] sm:$0xff] }
  0xd7   : > { %v369_v13 = vld [vmem:[%s5509_s10 + $0x350] sm:$0xff] }
  0xd8   : > { %v4699_v25 = vcombine.low %v361_v12, %v369_v13 }
  0xd9   : > { %3434 = vmatpush1.bf16.msra.mxu0 %v5079_v18  ;;  %3516 = vmatpush1.bf16.msra.mxu1 %v5081_v19  ;;  %v4700_v18 = vcombine.high %v361_v12, %v369_v13  ;;  %v4702_v19 = vcombine.high %v362_v14, %v370_v15  ;;  %v474_v12 = vld [vmem:[%s5509_s10 + $0x698] sm:$0xff]  ;;  %v4797_v15 = vcombine.low %v458_v3, %v466_v5 }
  0xda   : > { %3435 = vmatprep.subr.bf16.mxu0 %v5096_v20  ;;  %3517 = vmatprep.subr.bf16.mxu1 %v5098_v21  ;;  %v377_v20 = vld [vmem:[%s5509_s10 + $0x390] sm:$0xff]  ;;  %v482_v13 = vld [vmem:[%s5509_s10 + $0x6d8] sm:$0xff] }
  0xdb   : > { %v385_v21 = vld [vmem:[%s5509_s10 + $0x3d0] sm:$0xff] }
  0xdc   : > { %v4715_v34 = vcombine.low %v377_v20, %v385_v21 }
  0xdd   : > { %3436 = vmatpush1.bf16.msra.mxu0 %v5095_v27  ;;  %3518 = vmatpush1.bf16.msra.mxu1 %v5097_v28  ;;  %v4716_v27 = vcombine.high %v377_v20, %v385_v21  ;;  %v4718_v28 = vcombine.high %v378_v23, %v386_v24  ;;  %v490_v20 = vld [vmem:[%s5509_s10 + $0x718] sm:$0xff]  ;;  %v4813_v24 = vcombine.low %v474_v12, %v482_v13 }
  0xde   : > { %3528 = vmatprep.subr.bf16.mxu0 %v4604_v29  ;;  %3610 = vmatprep.subr.bf16.mxu1 %v4606_v30  ;;  %v393_v29 = vld [vmem:[%s5509_s10 + $0x410] sm:$0xff]  ;;  %v498_v21 = vld [vmem:[%s5509_s10 + $0x758] sm:$0xff] }
  0xdf   : > { %v401_v30 = vld [vmem:[%s5509_s10 + $0x450] sm:$0xff] }
  0xe0   : > { %3438 = vmatmul.mubr.bf16.vlgmr.msra.gmra.mrb[0].mxu0 %v5694_v33  ;;  %3520 = vmatmul.mubr.bf16.vlgmr.msra.gmra.mrb[0].mxu1 %v5694_v33  ;;  %v4731_v42 = vcombine.low %v393_v29, %v401_v30 }
  0xe1   : > { %3529 = vmatpush1.bf16.msra.mxu0 %v4603_v36  ;;  %3611 = vmatpush1.bf16.msra.mxu1 %v4605_v37  ;;  %v4732_v36 = vcombine.high %v393_v29, %v401_v30  ;;  %v4734_v37 = vcombine.high %v394_v60, %v402_v32  ;;  %v506_v29 = vld [vmem:[%s5509_s10 + $0x798] sm:$0xff]  ;;  %v4829_v32 = vcombine.low %v490_v20, %v498_v21 }
  0xe2   : > { %3530 = vmatprep.subr.bf16.mxu0 %v4620_v38  ;;  %3612 = vmatprep.subr.bf16.mxu1 %v4622_v39  ;;  %v409_v38 = vld [vmem:[%s5509_s10 + $0x490] sm:$0xff]  ;;  %v514_v30 = vld [vmem:[%s5509_s10 + $0x7d8] sm:$0xff] }
  0xe3   : > { %3560 = vmatprep.mubr.bf16.mxu0 %v5574_v4  ;;  %3642 = vmatprep.mubr.bf16.mxu1 %v5574_v4  ;;  %v417_v39 = vld [vmem:[%s5509_s10 + $0x4d0] sm:$0xff] }
  0xe4   : > { %v4747_v51 = vcombine.low %v409_v38, %v417_v39 }
  0xe5   : > { %3531 = vmatpush1.bf16.msra.mxu0 %v4619_v44  ;;  %3613 = vmatpush1.bf16.msra.mxu1 %v4621_v45  ;;  %v4748_v44 = vcombine.high %v409_v38, %v417_v39  ;;  %v4750_v45 = vcombine.high %v410_v40, %v418_v41  ;;  %v522_v38 = vld [vmem:[%s5509_s10 + $0x818] sm:$0xff]  ;;  %v4845_v41 = vcombine.low %v506_v29, %v514_v30 }
  0xe6   : > { %3532 = vmatprep.subr.bf16.mxu0 %v4636_v46  ;;  %3614 = vmatprep.subr.bf16.mxu1 %v4638_v47  ;;  %v425_v46 = vld [vmem:[%s5509_s10 + $0x510] sm:$0xff]  ;;  %v530_v39 = vld [vmem:[%s5509_s10 + $0x858] sm:$0xff] }
  0xe7   : > { %v433_v47 = vld [vmem:[%s5509_s10 + $0x550] sm:$0xff] }
  0xe8   : > { %v4763_v61 = vcombine.low %v425_v46, %v433_v47 }
  0xe9   : > { %3533 = vmatpush1.bf16.msra.mxu0 %v4635_v53  ;;  %3615 = vmatpush1.bf16.msra.mxu1 %v4637_v54  ;;  %v4764_v53 = vcombine.high %v425_v46, %v433_v47  ;;  %v4766_v54 = vcombine.high %v426_v49, %v434_v50  ;;  %v538_v46 = vld [vmem:[%s5509_s10 + $0x898] sm:$0xff]  ;;  %v4861_v50 = vcombine.low %v522_v38, %v530_v39 }
  0xea   : > { %3534 = vmatprep.subr.bf16.mxu0 %v4652_v55  ;;  %3616 = vmatprep.subr.bf16.mxu1 %v4654_v56  ;;  %v441_v55 = vld [vmem:[%s5509_s10 + $0x590] sm:$0xff]  ;;  %v546_v47 = vld [vmem:[%s5509_s10 + $0x8d8] sm:$0xff] }
  0xeb   : > { %v449_v56 = vld [vmem:[%s5509_s10 + $0x5d0] sm:$0xff] }
  0xec   : > { %v4779_v6 = vcombine.low %v441_v55, %v449_v56 }
  0xed   : > { %3535 = vmatpush1.bf16.msra.mxu0 %v4651_v63  ;;  %3617 = vmatpush1.bf16.msra.mxu1 %v4653_v0  ;;  %v4780_v63 = vcombine.high %v441_v55, %v449_v56  ;;  %v4782_v0 = vcombine.high %v442_v58, %v450_v59  ;;  %v554_v55 = vld [vmem:[%s5509_s10 + $0x918] sm:$0xff]  ;;  %v4877_v59 = vcombine.low %v538_v46, %v546_v47 }
  0xee   : > { %3536 = vmatprep.subr.bf16.mxu0 %v4668_v1  ;;  %3618 = vmatprep.subr.bf16.mxu1 %v4670_v2  ;;  %v457_v1 = vld [vmem:[%s5509_s10 + $0x610] sm:$0xff]  ;;  %v562_v56 = vld [vmem:[%s5509_s10 + $0x958] sm:$0xff] }
  0xef   : > { %v465_v2 = vld [vmem:[%s5509_s10 + $0x650] sm:$0xff] }
  0xf0   : > { %v4795_v14 = vcombine.low %v457_v1, %v465_v2 }
  0xf1   : > { %3537 = vmatpush1.bf16.msra.mxu0 %v4667_v8  ;;  %3619 = vmatpush1.bf16.msra.mxu1 %v4669_v9  ;;  %v4796_v8 = vcombine.high %v457_v1, %v465_v2  ;;  %v4798_v9 = vcombine.high %v458_v3, %v466_v5  ;;  %v570_v1 = vld [vmem:[%s5509_s10 + $0x998] sm:$0xff]  ;;  %v4893_v5 = vcombine.low %v554_v55, %v562_v56 }
  0xf2   : > { %3538 = vmatprep.subr.bf16.mxu0 %v4684_v10  ;;  %3620 = vmatprep.subr.bf16.mxu1 %v4686_v11  ;;  %v473_v10 = vld [vmem:[%s5509_s10 + $0x690] sm:$0xff]  ;;  %v578_v2 = vld [vmem:[%s5509_s10 + $0x9d8] sm:$0xff] }
  0xf3   : > { %v481_v11 = vld [vmem:[%s5509_s10 + $0x6d0] sm:$0xff] }
  0xf4   : > { %v4811_v23 = vcombine.low %v473_v10, %v481_v11 }
  0xf5   : > { %3539 = vmatpush1.bf16.msra.mxu0 %v4683_v16  ;;  %3621 = vmatpush1.bf16.msra.mxu1 %v4685_v17  ;;  %v4812_v16 = vcombine.high %v473_v10, %v481_v11  ;;  %v4814_v17 = vcombine.high %v474_v12, %v482_v13  ;;  %v586_v10 = vld [vmem:[%s5509_s10 + $0xa18] sm:$0xff]  ;;  %v4909_v13 = vcombine.low %v570_v1, %v578_v2 }
  0xf6   : > { %3540 = vmatprep.subr.bf16.mxu0 %v4700_v18  ;;  %3622 = vmatprep.subr.bf16.mxu1 %v4702_v19  ;;  %v489_v18 = vld [vmem:[%s5509_s10 + $0x710] sm:$0xff]  ;;  %v594_v11 = vld [vmem:[%s5509_s10 + $0xa58] sm:$0xff] }
  0xf7   : > { %v497_v19 = vld [vmem:[%s5509_s10 + $0x750] sm:$0xff] }
  0xf8   : > { %v4827_v60 = vcombine.low %v489_v18, %v497_v19 }
  0xf9   : > { %3541 = vmatpush1.bf16.msra.mxu0 %v4699_v25  ;;  %3623 = vmatpush1.bf16.msra.mxu1 %v4701_v26  ;;  %v4828_v25 = vcombine.high %v489_v18, %v497_v19  ;;  %v4830_v26 = vcombine.high %v490_v20, %v498_v21  ;;  %v602_v18 = vld [vmem:[%s5509_s10 + $0xa98] sm:$0xff]  ;;  %v4925_v21 = vcombine.low %v586_v10, %v594_v11 }
  0xfa   : > { %3542 = vmatprep.subr.bf16.mxu0 %v4716_v27  ;;  %3624 = vmatprep.subr.bf16.mxu1 %v4718_v28  ;;  %v505_v27 = vld [vmem:[%s5509_s10 + $0x790] sm:$0xff]  ;;  %v610_v19 = vld [vmem:[%s5509_s10 + $0xad8] sm:$0xff] }
  0xfb   : > { %v513_v28 = vld [vmem:[%s5509_s10 + $0x7d0] sm:$0xff] }
  0xfc   : > { %v4843_v40 = vcombine.low %v505_v27, %v513_v28 }
  0xfd   : > { %3543 = vmatpush1.bf16.msra.mxu0 %v4715_v34  ;;  %3625 = vmatpush1.bf16.msra.mxu1 %v4717_v35  ;;  %v4844_v34 = vcombine.high %v505_v27, %v513_v28  ;;  %v4846_v35 = vcombine.high %v506_v29, %v514_v30  ;;  %v618_v27 = vld [vmem:[%s5509_s10 + $0xb18] sm:$0xff]  ;;  %v4941_v30 = vcombine.low %v602_v18, %v610_v19 }
  0xfe   : > { %3544 = vmatprep.subr.bf16.mxu0 %v4732_v36  ;;  %3626 = vmatprep.subr.bf16.mxu1 %v4734_v37  ;;  %v521_v36 = vld [vmem:[%s5509_s10 + $0x810] sm:$0xff]  ;;  %v626_v28 = vld [vmem:[%s5509_s10 + $0xb58] sm:$0xff] }
  0xff   : > { %v529_v37 = vld [vmem:[%s5509_s10 + $0x850] sm:$0xff] }
 0x100   : > { %v4859_v49 = vcombine.low %v521_v36, %v529_v37 }
 0x101   : > { %3545 = vmatpush1.bf16.msra.mxu0 %v4731_v42  ;;  %3627 = vmatpush1.bf16.msra.mxu1 %v4733_v43  ;;  %v4860_v42 = vcombine.high %v521_v36, %v529_v37  ;;  %v4862_v43 = vcombine.high %v522_v38, %v530_v39  ;;  %v634_v36 = vld [vmem:[%s5509_s10 + $0xb98] sm:$0xff]  ;;  %v4957_v39 = vcombine.low %v618_v27, %v626_v28 }
 0x102   : > { %3546 = vmatprep.subr.bf16.mxu0 %v4748_v44  ;;  %3628 = vmatprep.subr.bf16.mxu1 %v4750_v45  ;;  %v537_v44 = vld [vmem:[%s5509_s10 + $0x890] sm:$0xff]  ;;  %v642_v37 = vld [vmem:[%s5509_s10 + $0xbd8] sm:$0xff] }
 0x103   : > { %v545_v45 = vld [vmem:[%s5509_s10 + $0x8d0] sm:$0xff] }
 0x104   : > { %v4875_v58 = vcombine.low %v537_v44, %v545_v45 }
 0x105   : > { %3547 = vmatpush1.bf16.msra.mxu0 %v4747_v51  ;;  %3629 = vmatpush1.bf16.msra.mxu1 %v4749_v52  ;;  %v4876_v51 = vcombine.high %v537_v44, %v545_v45  ;;  %v4878_v52 = vcombine.high %v538_v46, %v546_v47  ;;  %v650_v44 = vld [vmem:[%s5509_s10 + $0xc18] sm:$0xff]  ;;  %v4973_v47 = vcombine.low %v634_v36, %v642_v37 }
 0x106   : > { %3548 = vmatprep.subr.bf16.mxu0 %v4764_v53  ;;  %3630 = vmatprep.subr.bf16.mxu1 %v4766_v54  ;;  %v553_v53 = vld [vmem:[%s5509_s10 + $0x910] sm:$0xff]  ;;  %v658_v45 = vld [vmem:[%s5509_s10 + $0xc58] sm:$0xff] }
 0x107   : > { %v561_v54 = vld [vmem:[%s5509_s10 + $0x950] sm:$0xff] }
 0x108   : > { %v4891_v3 = vcombine.low %v553_v53, %v561_v54 }
 0x109   : > { %3549 = vmatpush1.bf16.msra.mxu0 %v4763_v61  ;;  %3631 = vmatpush1.bf16.msra.mxu1 %v4765_v62  ;;  %v4892_v61 = vcombine.high %v553_v53, %v561_v54  ;;  %v4894_v62 = vcombine.high %v554_v55, %v562_v56  ;;  %v666_v53 = vld [vmem:[%s5509_s10 + $0xc98] sm:$0xff]  ;;  %v4989_v56 = vcombine.low %v650_v44, %v658_v45 }
 0x10a   : > { %3550 = vmatprep.subr.bf16.mxu0 %v4780_v63  ;;  %3632 = vmatprep.subr.bf16.mxu1 %v4782_v0  ;;  %v569_v63 = vld [vmem:[%s5509_s10 + $0x990] sm:$0xff]  ;;  %v674_v54 = vld [vmem:[%s5509_s10 + $0xcd8] sm:$0xff] }
 0x10b   : > { %v577_v0 = vld [vmem:[%s5509_s10 + $0x9d0] sm:$0xff] }
 0x10c   : > { %v4907_v12 = vcombine.low %v569_v63, %v577_v0 }
 0x10d   : > { %3551 = vmatpush1.bf16.msra.mxu0 %v4779_v6  ;;  %3633 = vmatpush1.bf16.msra.mxu1 %v4781_v7  ;;  %v4908_v6 = vcombine.high %v569_v63, %v577_v0  ;;  %v4910_v7 = vcombine.high %v570_v1, %v578_v2  ;;  %v682_v63 = vld [vmem:[%s5509_s10 + $0xd18] sm:$0xff]  ;;  %v5005_v2 = vcombine.low %v666_v53, %v674_v54 }
 0x10e   : > { %3552 = vmatprep.subr.bf16.mxu0 %v4796_v8  ;;  %3634 = vmatprep.subr.bf16.mxu1 %v4798_v9  ;;  %v585_v8 = vld [vmem:[%s5509_s10 + $0xa10] sm:$0xff]  ;;  %v690_v0 = vld [vmem:[%s5509_s10 + $0xd58] sm:$0xff] }
 0x10f   : > { %v593_v9 = vld [vmem:[%s5509_s10 + $0xa50] sm:$0xff] }
 0x110   : > { %v4923_v20 = vcombine.low %v585_v8, %v593_v9 }
 0x111   : > { %3553 = vmatpush1.bf16.msra.mxu0 %v4795_v14  ;;  %3635 = vmatpush1.bf16.msra.mxu1 %v4797_v15  ;;  %v4924_v14 = vcombine.high %v585_v8, %v593_v9  ;;  %v4926_v15 = vcombine.high %v586_v10, %v594_v11  ;;  %v698_v8 = vld [vmem:[%s5509_s10 + $0xd98] sm:$0xff]  ;;  %v5021_v11 = vcombine.low %v682_v63, %v690_v0 }
 0x112   : > { %3554 = vmatprep.subr.bf16.mxu0 %v4812_v16  ;;  %3636 = vmatprep.subr.bf16.mxu1 %v4814_v17  ;;  %v601_v16 = vld [vmem:[%s5509_s10 + $0xa90] sm:$0xff]  ;;  %v706_v9 = vld [vmem:[%s5509_s10 + $0xdd8] sm:$0xff] }
 0x113   : > { %v609_v17 = vld [vmem:[%s5509_s10 + $0xad0] sm:$0xff] }
 0x114   : > { %v4939_v29 = vcombine.low %v601_v16, %v609_v17 }
 0x115   : > { %3555 = vmatpush1.bf16.msra.mxu0 %v4811_v23  ;;  %3637 = vmatpush1.bf16.msra.mxu1 %v4813_v24  ;;  %v4940_v23 = vcombine.high %v601_v16, %v609_v17  ;;  %v4942_v24 = vcombine.high %v602_v18, %v610_v19  ;;  %v714_v16 = vld [vmem:[%s5509_s10 + $0xe18] sm:$0xff]  ;;  %v5037_v19 = vcombine.low %v698_v8, %v706_v9 }
 0x116   : > { %3556 = vmatprep.subr.bf16.mxu0 %v4828_v25  ;;  %3638 = vmatprep.subr.bf16.mxu1 %v4830_v26  ;;  %v617_v25 = vld [vmem:[%s5509_s10 + $0xb10] sm:$0xff]  ;;  %v722_v17 = vld [vmem:[%s5509_s10 + $0xe58] sm:$0xff] }
 0x117   : > { %v625_v26 = vld [vmem:[%s5509_s10 + $0xb50] sm:$0xff] }
 0x118   : > { %v4955_v38 = vcombine.low %v617_v25, %v625_v26 }
 0x119   : > { %3557 = vmatpush1.bf16.msra.mxu0 %v4827_v60  ;;  %3639 = vmatpush1.bf16.msra.mxu1 %v4829_v32  ;;  %v4956_v60 = vcombine.high %v617_v25, %v625_v26  ;;  %v4958_v32 = vcombine.high %v618_v27, %v626_v28  ;;  %v730_v25 = vld [vmem:[%s5509_s10 + $0xe98] sm:$0xff]  ;;  %v5053_v28 = vcombine.low %v714_v16, %v722_v17 }
 0x11a   : > { %3558 = vmatprep.subr.bf16.mxu0 %v4844_v34  ;;  %3640 = vmatprep.subr.bf16.mxu1 %v4846_v35  ;;  %v633_v34 = vld [vmem:[%s5509_s10 + $0xb90] sm:$0xff]  ;;  %v738_v26 = vld [vmem:[%s5509_s10 + $0xed8] sm:$0xff] }
 0x11b   : > { %v641_v35 = vld [vmem:[%s5509_s10 + $0xbd0] sm:$0xff] }
 0x11c   : > { %v4971_v46 = vcombine.low %v633_v34, %v641_v35 }
 0x11d   : > { %3559 = vmatpush1.bf16.msra.mxu0 %v4843_v40  ;;  %3641 = vmatpush1.bf16.msra.mxu1 %v4845_v41  ;;  %v4972_v40 = vcombine.high %v633_v34, %v641_v35  ;;  %v4974_v41 = vcombine.high %v634_v36, %v642_v37  ;;  %v746_v34 = vld [vmem:[%s5509_s10 + $0xf18] sm:$0xff]  ;;  %v5069_v37 = vcombine.low %v730_v25, %v738_v26 }
 0x11e   : > { %3569 = vmatprep.subr.bf16.mxu0 %v4860_v42  ;;  %3651 = vmatprep.subr.bf16.mxu1 %v4862_v43  ;;  %v649_v42 = vld [vmem:[%s5509_s10 + $0xc10] sm:$0xff]  ;;  %v754_v35 = vld [vmem:[%s5509_s10 + $0xf58] sm:$0xff] }
 0x11f   : > { %v657_v43 = vld [vmem:[%s5509_s10 + $0xc50] sm:$0xff] }
 0x120   : > { %3561 = vmatmul.mubr.bf16.vlgmr.msra.gmra.mrb[4].mxu0 %v5618_v22  ;;  %3643 = vmatmul.mubr.bf16.vlgmr.msra.gmra.mrb[4].mxu1 %v5618_v22  ;;  %v4987_v55 = vcombine.low %v649_v42, %v657_v43 }
 0x121   : > { %3570 = vmatpush1.bf16.msra.mxu0 %v4859_v49  ;;  %3652 = vmatpush1.bf16.msra.mxu1 %v4861_v50  ;;  %v4988_v49 = vcombine.high %v649_v42, %v657_v43  ;;  %v4990_v50 = vcombine.high %v650_v44, %v658_v45  ;;  %v762_v42 = vld [vmem:[%s5509_s10 + $0xf98] sm:$0xff]  ;;  %v5085_v45 = vcombine.low %v746_v34, %v754_v35 }
 0x122   : > { %3571 = vmatprep.subr.bf16.mxu0 %v4876_v51  ;;  %3653 = vmatprep.subr.bf16.mxu1 %v4878_v52  ;;  %v665_v51 = vld [vmem:[%s5509_s10 + $0xc90] sm:$0xff]  ;;  %v770_v43 = vld [vmem:[%s5509_s10 + $0xfd8] sm:$0xff] }
 0x123   : > { %3601 = vmatprep.mubr.bf16.mxu0 %v5626_v31  ;;  %3683 = vmatprep.mubr.bf16.mxu1 %v5626_v31  ;;  %v673_v52 = vld [vmem:[%s5509_s10 + $0xcd0] sm:$0xff] }
 0x124   : > { %v5003_v1 = vcombine.low %v665_v51, %v673_v52 }
 0x125   : > { %3572 = vmatpush1.bf16.msra.mxu0 %v4875_v58  ;;  %3654 = vmatpush1.bf16.msra.mxu1 %v4877_v59  ;;  %v5004_v58 = vcombine.high %v665_v51, %v673_v52  ;;  %v5006_v59 = vcombine.high %v666_v53, %v674_v54  ;;  %v268_v51 = vld [vmem:[%s5509_s10 + $0x28] sm:$0xff]  ;;  %v5101_v54 = vcombine.low %v762_v42, %v770_v43 }
 0x126   : > { %3573 = vmatprep.subr.bf16.mxu0 %v4892_v61  ;;  %3655 = vmatprep.subr.bf16.mxu1 %v4894_v62  ;;  %v681_v61 = vld [vmem:[%s5509_s10 + $0xd10] sm:$0xff]  ;;  %v276_v52 = vld [vmem:[%s5509_s10 + $0x68] sm:$0xff] }
 0x127   : > { %v689_v62 = vld [vmem:[%s5509_s10 + $0xd50] sm:$0xff] }
 0x128   : > { %v5019_v10 = vcombine.low %v681_v61, %v689_v62 }
 0x129   : > { %3574 = vmatpush1.bf16.msra.mxu0 %v4891_v3  ;;  %3656 = vmatpush1.bf16.msra.mxu1 %v4893_v5  ;;  %v5020_v3 = vcombine.high %v681_v61, %v689_v62  ;;  %v5022_v5 = vcombine.high %v682_v63, %v690_v0  ;;  %v284_v61 = vld [vmem:[%s5509_s10 + $0xa8] sm:$0xff]  ;;  %v4609_v0 = vcombine.low %v268_v51, %v276_v52 }
 0x12a   : > { %3575 = vmatprep.subr.bf16.mxu0 %v4908_v6  ;;  %3657 = vmatprep.subr.bf16.mxu1 %v4910_v7  ;;  %v697_v6 = vld [vmem:[%s5509_s10 + $0xd90] sm:$0xff]  ;;  %v292_v62 = vld [vmem:[%s5509_s10 + $0xe8] sm:$0xff] }
 0x12b   : > { %v705_v7 = vld [vmem:[%s5509_s10 + $0xdd0] sm:$0xff] }
 0x12c   : > { %v5035_v18 = vcombine.low %v697_v6, %v705_v7 }
 0x12d   : > { %3576 = vmatpush1.bf16.msra.mxu0 %v4907_v12  ;;  %3658 = vmatpush1.bf16.msra.mxu1 %v4909_v13  ;;  %v5036_v12 = vcombine.high %v697_v6, %v705_v7  ;;  %v5038_v13 = vcombine.high %v698_v8, %v706_v9  ;;  %v300_v6 = vld [vmem:[%s5509_s10 + $0x128] sm:$0xff]  ;;  %v4625_v9 = vcombine.low %v284_v61, %v292_v62 }
 0x12e   : > { %3577 = vmatprep.subr.bf16.mxu0 %v4924_v14  ;;  %3659 = vmatprep.subr.bf16.mxu1 %v4926_v15  ;;  %v713_v14 = vld [vmem:[%s5509_s10 + $0xe10] sm:$0xff]  ;;  %v308_v7 = vld [vmem:[%s5509_s10 + $0x168] sm:$0xff] }
 0x12f   : > { %v721_v15 = vld [vmem:[%s5509_s10 + $0xe50] sm:$0xff] }
 0x130   : > { %v5051_v27 = vcombine.low %v713_v14, %v721_v15 }
 0x131   : > { %3578 = vmatpush1.bf16.msra.mxu0 %v4923_v20  ;;  %3660 = vmatpush1.bf16.msra.mxu1 %v4925_v21  ;;  %v5052_v20 = vcombine.high %v713_v14, %v721_v15  ;;  %v5054_v21 = vcombine.high %v714_v16, %v722_v17  ;;  %v316_v14 = vld [vmem:[%s5509_s10 + $0x1a8] sm:$0xff]  ;;  %v4641_v17 = vcombine.low %v300_v6, %v308_v7 }
 0x132   : > { %3579 = vmatprep.subr.bf16.mxu0 %v4940_v23  ;;  %3661 = vmatprep.subr.bf16.mxu1 %v4942_v24  ;;  %v729_v23 = vld [vmem:[%s5509_s10 + $0xe90] sm:$0xff]  ;;  %v324_v15 = vld [vmem:[%s5509_s10 + $0x1e8] sm:$0xff] }
 0x133   : > { %v737_v24 = vld [vmem:[%s5509_s10 + $0xed0] sm:$0xff] }
 0x134   : > { %v5067_v36 = vcombine.low %v729_v23, %v737_v24 }
 0x135   : > { %3580 = vmatpush1.bf16.msra.mxu0 %v4939_v29  ;;  %3662 = vmatpush1.bf16.msra.mxu1 %v4941_v30  ;;  %v5068_v29 = vcombine.high %v729_v23, %v737_v24  ;;  %v5070_v30 = vcombine.high %v730_v25, %v738_v26  ;;  %v332_v23 = vld [vmem:[%s5509_s10 + $0x228] sm:$0xff]  ;;  %v4657_v26 = vcombine.low %v316_v14, %v324_v15 }
 0x136   : > { %3581 = vmatprep.subr.bf16.mxu0 %v4956_v60  ;;  %3663 = vmatprep.subr.bf16.mxu1 %v4958_v32  ;;  %v745_v60 = vld [vmem:[%s5509_s10 + $0xf10] sm:$0xff]  ;;  %v340_v24 = vld [vmem:[%s5509_s10 + $0x268] sm:$0xff] }
 0x137   : > { %v753_v32 = vld [vmem:[%s5509_s10 + $0xf50] sm:$0xff] }
 0x138   : > { %v5083_v44 = vcombine.low %v745_v60, %v753_v32 }
 0x139   : > { %3582 = vmatpush1.bf16.msra.mxu0 %v4955_v38  ;;  %3664 = vmatpush1.bf16.msra.mxu1 %v4957_v39  ;;  %v5084_v38 = vcombine.high %v745_v60, %v753_v32  ;;  %v5086_v39 = vcombine.high %v746_v34, %v754_v35  ;;  %v348_v60 = vld [vmem:[%s5509_s10 + $0x2a8] sm:$0xff]  ;;  %v4673_v35 = vcombine.low %v332_v23, %v340_v24 }
 0x13a   : > { %3583 = vmatprep.subr.bf16.mxu0 %v4972_v40  ;;  %3665 = vmatprep.subr.bf16.mxu1 %v4974_v41  ;;  %v761_v40 = vld [vmem:[%s5509_s10 + $0xf90] sm:$0xff]  ;;  %v356_v32 = vld [vmem:[%s5509_s10 + $0x2e8] sm:$0xff] }
 0x13b   : > { %v769_v41 = vld [vmem:[%s5509_s10 + $0xfd0] sm:$0xff] }
 0x13c   : > { %v5099_v53 = vcombine.low %v761_v40, %v769_v41 }
 0x13d   : > { %3584 = vmatpush1.bf16.msra.mxu0 %v4971_v46  ;;  %3666 = vmatpush1.bf16.msra.mxu1 %v4973_v47  ;;  %v5100_v46 = vcombine.high %v761_v40, %v769_v41  ;;  %v5102_v47 = vcombine.high %v762_v42, %v770_v43  ;;  %v364_v40 = vld [vmem:[%s5509_s10 + $0x328] sm:$0xff]  ;;  %v4689_v43 = vcombine.low %v348_v60, %v356_v32 }
 0x13e   : > { %3585 = vmatprep.subr.bf16.mxu0 %v4988_v49  ;;  %3667 = vmatprep.subr.bf16.mxu1 %v4990_v50  ;;  %v267_v49 = vld [vmem:[%s5509_s10 + $0x20] sm:$0xff]  ;;  %v372_v41 = vld [vmem:[%s5509_s10 + $0x368] sm:$0xff] }
 0x13f   : > { %v275_v50 = vld [vmem:[%s5509_s10 + $0x60] sm:$0xff] }
 0x140   : > { %v4607_v63 = vcombine.low %v267_v49, %v275_v50 }
 0x141   : > { %3586 = vmatpush1.bf16.msra.mxu0 %v4987_v55  ;;  %3668 = vmatpush1.bf16.msra.mxu1 %v4989_v56  ;;  %v4608_v55 = vcombine.high %v267_v49, %v275_v50  ;;  %v4610_v56 = vcombine.high %v268_v51, %v276_v52  ;;  %v380_v49 = vld [vmem:[%s5509_s10 + $0x3a8] sm:$0xff]  ;;  %v4705_v52 = vcombine.low %v364_v40, %v372_v41 }
 0x142   : > { %3587 = vmatprep.subr.bf16.mxu0 %v5004_v58  ;;  %3669 = vmatprep.subr.bf16.mxu1 %v5006_v59  ;;  %v283_v58 = vld [vmem:[%s5509_s10 + $0xa0] sm:$0xff]  ;;  %v388_v50 = vld [vmem:[%s5509_s10 + $0x3e8] sm:$0xff] }
 0x143   : > { %v291_v59 = vld [vmem:[%s5509_s10 + $0xe0] sm:$0xff] }
 0x144   : > { %v4623_v8 = vcombine.low %v283_v58, %v291_v59 }
 0x145   : > { %3588 = vmatpush1.bf16.msra.mxu0 %v5003_v1  ;;  %3670 = vmatpush1.bf16.msra.mxu1 %v5005_v2  ;;  %v4624_v1 = vcombine.high %v283_v58, %v291_v59  ;;  %v4626_v2 = vcombine.high %v284_v61, %v292_v62  ;;  %v396_v58 = vld [vmem:[%s5509_s10 + $0x428] sm:$0xff]  ;;  %v4721_v62 = vcombine.low %v380_v49, %v388_v50 }
 0x146   : > { %3589 = vmatprep.subr.bf16.mxu0 %v5020_v3  ;;  %3671 = vmatprep.subr.bf16.mxu1 %v5022_v5  ;;  %v299_v3 = vld [vmem:[%s5509_s10 + $0x120] sm:$0xff]  ;;  %v404_v59 = vld [vmem:[%s5509_s10 + $0x468] sm:$0xff] }
 0x147   : > { %v307_v5 = vld [vmem:[%s5509_s10 + $0x160] sm:$0xff] }
 0x148   : > { %v4639_v16 = vcombine.low %v299_v3, %v307_v5 }
 0x149   : > { %3590 = vmatpush1.bf16.msra.mxu0 %v5019_v10  ;;  %3672 = vmatpush1.bf16.msra.mxu1 %v5021_v11  ;;  %v4640_v10 = vcombine.high %v299_v3, %v307_v5  ;;  %v4642_v11 = vcombine.high %v300_v6, %v308_v7  ;;  %v412_v3 = vld [vmem:[%s5509_s10 + $0x4a8] sm:$0xff]  ;;  %v4737_v7 = vcombine.low %v396_v58, %v404_v59 }
 0x14a   : > { %3591 = vmatprep.subr.bf16.mxu0 %v5036_v12  ;;  %3673 = vmatprep.subr.bf16.mxu1 %v5038_v13  ;;  %v315_v12 = vld [vmem:[%s5509_s10 + $0x1a0] sm:$0xff]  ;;  %v420_v5 = vld [vmem:[%s5509_s10 + $0x4e8] sm:$0xff] }
 0x14b   : > { %v323_v13 = vld [vmem:[%s5509_s10 + $0x1e0] sm:$0xff] }
 0x14c   : > { %v4655_v25 = vcombine.low %v315_v12, %v323_v13 }
 0x14d   : > { %3592 = vmatpush1.bf16.msra.mxu0 %v5035_v18  ;;  %3674 = vmatpush1.bf16.msra.mxu1 %v5037_v19  ;;  %v4656_v18 = vcombine.high %v315_v12, %v323_v13  ;;  %v4658_v19 = vcombine.high %v316_v14, %v324_v15  ;;  %v428_v12 = vld [vmem:[%s5509_s10 + $0x528] sm:$0xff]  ;;  %v4753_v15 = vcombine.low %v412_v3, %v420_v5 }
 0x14e   : > { %3593 = vmatprep.subr.bf16.mxu0 %v5052_v20  ;;  %3675 = vmatprep.subr.bf16.mxu1 %v5054_v21  ;;  %v331_v20 = vld [vmem:[%s5509_s10 + $0x220] sm:$0xff]  ;;  %v436_v13 = vld [vmem:[%s5509_s10 + $0x568] sm:$0xff] }
 0x14f   : > { %v339_v21 = vld [vmem:[%s5509_s10 + $0x260] sm:$0xff] }
 0x150   : > { %v4671_v34 = vcombine.low %v331_v20, %v339_v21 }
 0x151   : > { %3594 = vmatpush1.bf16.msra.mxu0 %v5051_v27  ;;  %3676 = vmatpush1.bf16.msra.mxu1 %v5053_v28  ;;  %v4672_v27 = vcombine.high %v331_v20, %v339_v21  ;;  %v4674_v28 = vcombine.high %v332_v23, %v340_v24  ;;  %v444_v20 = vld [vmem:[%s5509_s10 + $0x5a8] sm:$0xff]  ;;  %v4769_v24 = vcombine.low %v428_v12, %v436_v13 }
 0x152   : > { %3595 = vmatprep.subr.bf16.mxu0 %v5068_v29  ;;  %3677 = vmatprep.subr.bf16.mxu1 %v5070_v30  ;;  %v347_v29 = vld [vmem:[%s5509_s10 + $0x2a0] sm:$0xff]  ;;  %v452_v21 = vld [vmem:[%s5509_s10 + $0x5e8] sm:$0xff] }
 0x153   : > { %v355_v30 = vld [vmem:[%s5509_s10 + $0x2e0] sm:$0xff] }
 0x154   : > { %v4687_v42 = vcombine.low %v347_v29, %v355_v30 }
 0x155   : > { %3596 = vmatpush1.bf16.msra.mxu0 %v5067_v36  ;;  %3678 = vmatpush1.bf16.msra.mxu1 %v5069_v37  ;;  %v4688_v36 = vcombine.high %v347_v29, %v355_v30  ;;  %v4690_v37 = vcombine.high %v348_v60, %v356_v32  ;;  %v460_v29 = vld [vmem:[%s5509_s10 + $0x628] sm:$0xff]  ;;  %v4785_v32 = vcombine.low %v444_v20, %v452_v21 }
 0x156   : > { %3597 = vmatprep.subr.bf16.mxu0 %v5084_v38  ;;  %3679 = vmatprep.subr.bf16.mxu1 %v5086_v39  ;;  %v363_v38 = vld [vmem:[%s5509_s10 + $0x320] sm:$0xff]  ;;  %v468_v30 = vld [vmem:[%s5509_s10 + $0x668] sm:$0xff] }
 0x157   : > { %v371_v39 = vld [vmem:[%s5509_s10 + $0x360] sm:$0xff] }
 0x158   : > { %v4703_v51 = vcombine.low %v363_v38, %v371_v39 }
 0x159   : > { %3598 = vmatpush1.bf16.msra.mxu0 %v5083_v44  ;;  %3680 = vmatpush1.bf16.msra.mxu1 %v5085_v45  ;;  %v4704_v44 = vcombine.high %v363_v38, %v371_v39  ;;  %v4706_v45 = vcombine.high %v364_v40, %v372_v41  ;;  %v476_v38 = vld [vmem:[%s5509_s10 + $0x6a8] sm:$0xff]  ;;  %v4801_v41 = vcombine.low %v460_v29, %v468_v30 }
 0x15a   : > { %3599 = vmatprep.subr.bf16.mxu0 %v5100_v46  ;;  %3681 = vmatprep.subr.bf16.mxu1 %v5102_v47  ;;  %v379_v46 = vld [vmem:[%s5509_s10 + $0x3a0] sm:$0xff]  ;;  %v484_v39 = vld [vmem:[%s5509_s10 + $0x6e8] sm:$0xff] }
 0x15b   : > { %v387_v47 = vld [vmem:[%s5509_s10 + $0x3e0] sm:$0xff] }
 0x15c   : > { %v4719_v61 = vcombine.low %v379_v46, %v387_v47 }
 0x15d   : > { %3600 = vmatpush1.bf16.msra.mxu0 %v5099_v53  ;;  %3682 = vmatpush1.bf16.msra.mxu1 %v5101_v54  ;;  %v4720_v53 = vcombine.high %v379_v46, %v387_v47  ;;  %v4722_v54 = vcombine.high %v380_v49, %v388_v50  ;;  %v492_v46 = vld [vmem:[%s5509_s10 + $0x728] sm:$0xff]  ;;  %v4817_v50 = vcombine.low %v476_v38, %v484_v39 }
 0x15e   : > { %3692 = vmatprep.subr.bf16.mxu0 %v4608_v55  ;;  %3774 = vmatprep.subr.bf16.mxu1 %v4610_v56  ;;  %v395_v55 = vld [vmem:[%s5509_s10 + $0x420] sm:$0xff]  ;;  %v500_v47 = vld [vmem:[%s5509_s10 + $0x768] sm:$0xff] }
 0x15f   : > { %v403_v56 = vld [vmem:[%s5509_s10 + $0x460] sm:$0xff] }
 0x160   : > { %3602 = vmatmul.mubr.bf16.vlgmr.msra.gmra.mrb[4].mxu0 %v5694_v33  ;;  %3684 = vmatmul.mubr.bf16.vlgmr.msra.gmra.mrb[4].mxu1 %v5694_v33  ;;  %v4735_v6 = vcombine.low %v395_v55, %v403_v56 }
 0x161   : > { %3693 = vmatpush1.bf16.msra.mxu0 %v4607_v63  ;;  %3775 = vmatpush1.bf16.msra.mxu1 %v4609_v0  ;;  %v4736_v63 = vcombine.high %v395_v55, %v403_v56  ;;  %v4738_v0 = vcombine.high %v396_v58, %v404_v59  ;;  %v508_v55 = vld [vmem:[%s5509_s10 + $0x7a8] sm:$0xff]  ;;  %v4833_v59 = vcombine.low %v492_v46, %v500_v47 }
 0x162   : > { %3694 = vmatprep.subr.bf16.mxu0 %v4624_v1  ;;  %3776 = vmatprep.subr.bf16.mxu1 %v4626_v2  ;;  %v411_v1 = vld [vmem:[%s5509_s10 + $0x4a0] sm:$0xff]  ;;  %v516_v56 = vld [vmem:[%s5509_s10 + $0x7e8] sm:$0xff] }
 0x163   : > { %3724 = vmatprep.mubr.bf16.mxu0 %v5574_v4  ;;  %3806 = vmatprep.mubr.bf16.mxu1 %v5574_v4  ;;  %v419_v2 = vld [vmem:[%s5509_s10 + $0x4e0] sm:$0xff] }
 0x164   : > { %v4751_v14 = vcombine.low %v411_v1, %v419_v2 }
 0x165   : > { %3695 = vmatpush1.bf16.msra.mxu0 %v4623_v8  ;;  %3777 = vmatpush1.bf16.msra.mxu1 %v4625_v9  ;;  %v4752_v8 = vcombine.high %v411_v1, %v419_v2  ;;  %v4754_v9 = vcombine.high %v412_v3, %v420_v5  ;;  %v524_v1 = vld [vmem:[%s5509_s10 + $0x828] sm:$0xff]  ;;  %v4849_v5 = vcombine.low %v508_v55, %v516_v56 }
 0x166   : > { %3696 = vmatprep.subr.bf16.mxu0 %v4640_v10  ;;  %3778 = vmatprep.subr.bf16.mxu1 %v4642_v11  ;;  %v427_v10 = vld [vmem:[%s5509_s10 + $0x520] sm:$0xff]  ;;  %v532_v2 = vld [vmem:[%s5509_s10 + $0x868] sm:$0xff] }
 0x167   : > { %v435_v11 = vld [vmem:[%s5509_s10 + $0x560] sm:$0xff] }
 0x168   : > { %v4767_v23 = vcombine.low %v427_v10, %v435_v11 }
 0x169   : > { %3697 = vmatpush1.bf16.msra.mxu0 %v4639_v16  ;;  %3779 = vmatpush1.bf16.msra.mxu1 %v4641_v17  ;;  %v4768_v16 = vcombine.high %v427_v10, %v435_v11  ;;  %v4770_v17 = vcombine.high %v428_v12, %v436_v13  ;;  %v540_v10 = vld [vmem:[%s5509_s10 + $0x8a8] sm:$0xff]  ;;  %v4865_v13 = vcombine.low %v524_v1, %v532_v2 }
 0x16a   : > { %3698 = vmatprep.subr.bf16.mxu0 %v4656_v18  ;;  %3780 = vmatprep.subr.bf16.mxu1 %v4658_v19  ;;  %v443_v18 = vld [vmem:[%s5509_s10 + $0x5a0] sm:$0xff]  ;;  %v548_v11 = vld [vmem:[%s5509_s10 + $0x8e8] sm:$0xff] }
 0x16b   : > { %v451_v19 = vld [vmem:[%s5509_s10 + $0x5e0] sm:$0xff] }
 0x16c   : > { %v4783_v60 = vcombine.low %v443_v18, %v451_v19 }
 0x16d   : > { %3699 = vmatpush1.bf16.msra.mxu0 %v4655_v25  ;;  %3781 = vmatpush1.bf16.msra.mxu1 %v4657_v26  ;;  %v4784_v25 = vcombine.high %v443_v18, %v451_v19  ;;  %v4786_v26 = vcombine.high %v444_v20, %v452_v21  ;;  %v556_v18 = vld [vmem:[%s5509_s10 + $0x928] sm:$0xff]  ;;  %v4881_v21 = vcombine.low %v540_v10, %v548_v11 }
 0x16e   : > { %3700 = vmatprep.subr.bf16.mxu0 %v4672_v27  ;;  %3782 = vmatprep.subr.bf16.mxu1 %v4674_v28  ;;  %v459_v27 = vld [vmem:[%s5509_s10 + $0x620] sm:$0xff]  ;;  %v564_v19 = vld [vmem:[%s5509_s10 + $0x968] sm:$0xff] }
 0x16f   : > { %v467_v28 = vld [vmem:[%s5509_s10 + $0x660] sm:$0xff] }
 0x170   : > { %v4799_v40 = vcombine.low %v459_v27, %v467_v28 }
 0x171   : > { %3701 = vmatpush1.bf16.msra.mxu0 %v4671_v34  ;;  %3783 = vmatpush1.bf16.msra.mxu1 %v4673_v35  ;;  %v4800_v34 = vcombine.high %v459_v27, %v467_v28  ;;  %v4802_v35 = vcombine.high %v460_v29, %v468_v30  ;;  %v572_v27 = vld [vmem:[%s5509_s10 + $0x9a8] sm:$0xff]  ;;  %v4897_v30 = vcombine.low %v556_v18, %v564_v19 }
 0x172   : > { %3702 = vmatprep.subr.bf16.mxu0 %v4688_v36  ;;  %3784 = vmatprep.subr.bf16.mxu1 %v4690_v37  ;;  %v475_v36 = vld [vmem:[%s5509_s10 + $0x6a0] sm:$0xff]  ;;  %v580_v28 = vld [vmem:[%s5509_s10 + $0x9e8] sm:$0xff] }
 0x173   : > { %v483_v37 = vld [vmem:[%s5509_s10 + $0x6e0] sm:$0xff] }
 0x174   : > { %v4815_v49 = vcombine.low %v475_v36, %v483_v37 }
 0x175   : > { %3703 = vmatpush1.bf16.msra.mxu0 %v4687_v42  ;;  %3785 = vmatpush1.bf16.msra.mxu1 %v4689_v43  ;;  %v4816_v42 = vcombine.high %v475_v36, %v483_v37  ;;  %v4818_v43 = vcombine.high %v476_v38, %v484_v39  ;;  %v588_v36 = vld [vmem:[%s5509_s10 + $0xa28] sm:$0xff]  ;;  %v4913_v39 = vcombine.low %v572_v27, %v580_v28 }
 0x176   : > { %3704 = vmatprep.subr.bf16.mxu0 %v4704_v44  ;;  %3786 = vmatprep.subr.bf16.mxu1 %v4706_v45  ;;  %v491_v44 = vld [vmem:[%s5509_s10 + $0x720] sm:$0xff]  ;;  %v596_v37 = vld [vmem:[%s5509_s10 + $0xa68] sm:$0xff] }
 0x177   : > { %v499_v45 = vld [vmem:[%s5509_s10 + $0x760] sm:$0xff] }
 0x178   : > { %v4831_v58 = vcombine.low %v491_v44, %v499_v45 }
 0x179   : > { %3705 = vmatpush1.bf16.msra.mxu0 %v4703_v51  ;;  %3787 = vmatpush1.bf16.msra.mxu1 %v4705_v52  ;;  %v4832_v51 = vcombine.high %v491_v44, %v499_v45  ;;  %v4834_v52 = vcombine.high %v492_v46, %v500_v47  ;;  %v603_v44 = vld [vmem:[%s5509_s10 + $0xaa0] sm:$0xff]  ;;  %v604_v46 = vld [vmem:[%s5509_s10 + $0xaa8] sm:$0xff] }
 0x17a   : > { %3706 = vmatprep.subr.bf16.mxu0 %v4720_v53  ;;  %3788 = vmatprep.subr.bf16.mxu1 %v4722_v54  ;;  %v507_v53 = vld [vmem:[%s5509_s10 + $0x7a0] sm:$0xff]  ;;  %v612_v47 = vld [vmem:[%s5509_s10 + $0xae8] sm:$0xff] }
 0x17b   : > { %v515_v54 = vld [vmem:[%s5509_s10 + $0x7e0] sm:$0xff] }
 0x17c   : > { %v4847_v3 = vcombine.low %v507_v53, %v515_v54  ;;  %v611_v45 = vld [vmem:[%s5509_s10 + $0xae0] sm:$0xff] }
 0x17d   : > { %3707 = vmatpush1.bf16.msra.mxu0 %v4719_v61  ;;  %3789 = vmatpush1.bf16.msra.mxu1 %v4721_v62  ;;  %v4848_v61 = vcombine.high %v507_v53, %v515_v54  ;;  %v4850_v62 = vcombine.high %v508_v55, %v516_v56  ;;  %v4946_v53 = vcombine.high %v604_v46, %v612_v47  ;;  %v619_v54 = vld [vmem:[%s5509_s10 + $0xb20] sm:$0xff]  ;;  %v620_v56 = vld [vmem:[%s5509_s10 + $0xb28] sm:$0xff] }
 0x17e   : > { %3708 = vmatprep.subr.bf16.mxu0 %v4736_v63  ;;  %3790 = vmatprep.subr.bf16.mxu1 %v4738_v0  ;;  %v523_v63 = vld [vmem:[%s5509_s10 + $0x820] sm:$0xff] }
 0x17f   : > { %v531_v0 = vld [vmem:[%s5509_s10 + $0x860] sm:$0xff] }
 0x180   : > { %v4863_v12 = vcombine.low %v523_v63, %v531_v0  ;;  %v627_v55 = vld [vmem:[%s5509_s10 + $0xb60] sm:$0xff] }
 0x181   : > { %3709 = vmatpush1.bf16.msra.mxu0 %v4735_v6  ;;  %3791 = vmatpush1.bf16.msra.mxu1 %v4737_v7  ;;  %v4864_v6 = vcombine.high %v523_v63, %v531_v0  ;;  %v4866_v7 = vcombine.high %v524_v1, %v532_v2  ;;  %v635_v2 = vld [vmem:[%s5509_s10 + $0xba0] sm:$0xff] }
 0x182   : > { %3710 = vmatprep.subr.bf16.mxu0 %v4752_v8  ;;  %3792 = vmatprep.subr.bf16.mxu1 %v4754_v9  ;;  %v539_v8 = vld [vmem:[%s5509_s10 + $0x8a0] sm:$0xff] }
 0x183   : > { %v547_v9 = vld [vmem:[%s5509_s10 + $0x8e0] sm:$0xff] }
 0x184   : > { %v4879_v20 = vcombine.low %v539_v8, %v547_v9 }
 0x185   : > { %3711 = vmatpush1.bf16.msra.mxu0 %v4751_v14  ;;  %3793 = vmatpush1.bf16.msra.mxu1 %v4753_v15  ;;  %v4880_v14 = vcombine.high %v539_v8, %v547_v9  ;;  %v4882_v15 = vcombine.high %v540_v10, %v548_v11  ;;  %v644_v8 = vld [vmem:[%s5509_s10 + $0xbe8] sm:$0xff] }
 0x186   : > { %3712 = vmatprep.subr.bf16.mxu0 %v4768_v16  ;;  %3794 = vmatprep.subr.bf16.mxu1 %v4770_v17  ;;  %v555_v16 = vld [vmem:[%s5509_s10 + $0x920] sm:$0xff] }
 0x187   : > { %v563_v17 = vld [vmem:[%s5509_s10 + $0x960] sm:$0xff] }
 0x188   : > { %v4895_v29 = vcombine.low %v555_v16, %v563_v17 }
 0x189   : > { %3713 = vmatpush1.bf16.msra.mxu0 %v4767_v23  ;;  %3795 = vmatpush1.bf16.msra.mxu1 %v4769_v24  ;;  %v4896_v23 = vcombine.high %v555_v16, %v563_v17  ;;  %v4898_v24 = vcombine.high %v556_v18, %v564_v19 }
 0x18a   : > { %3714 = vmatprep.subr.bf16.mxu0 %v4784_v25  ;;  %3796 = vmatprep.subr.bf16.mxu1 %v4786_v26  ;;  %v571_v25 = vld [vmem:[%s5509_s10 + $0x9a0] sm:$0xff] }
 0x18b   : > { %v579_v26 = vld [vmem:[%s5509_s10 + $0x9e0] sm:$0xff] }
 0x18c   : > { %v4911_v38 = vcombine.low %v571_v25, %v579_v26 }
 0x18d   : > { %3715 = vmatpush1.bf16.msra.mxu0 %v4783_v60  ;;  %3797 = vmatpush1.bf16.msra.mxu1 %v4785_v32  ;;  %v4912_v60 = vcombine.high %v571_v25, %v579_v26  ;;  %v4914_v32 = vcombine.high %v572_v27, %v580_v28  ;;  %v652_v25 = vld [vmem:[%s5509_s10 + $0xc28] sm:$0xff]  ;;  %v258_v27 = vld [vmem:[#allocation2] sm:$0xff] }
 0x18e   : > { %3716 = vmatprep.subr.bf16.mxu0 %v4800_v34  ;;  %3798 = vmatprep.subr.bf16.mxu1 %v4802_v35  ;;  %v587_v34 = vld [vmem:[%s5509_s10 + $0xa20] sm:$0xff]  ;;  %v660_v26 = vld [vmem:[%s5509_s10 + $0xc68] sm:$0xff] }
 0x18f   : > { %v595_v35 = vld [vmem:[%s5509_s10 + $0xa60] sm:$0xff] }
 0x191   : > { %3717 = vmatpush1.bf16.msra.mxu0 %v4799_v40  ;;  %3799 = vmatpush1.bf16.msra.mxu1 %v4801_v41  ;;  %v4928_v40 = vcombine.high %v587_v34, %v595_v35  ;;  %v4930_v41 = vcombine.high %v588_v36, %v596_v37 }
 0x192   : > { %3718 = vmatprep.subr.bf16.mxu0 %v4816_v42  ;;  %3800 = vmatprep.subr.bf16.mxu1 %v4818_v43  ;;  %v5349_v42 = vmov 1983009808  }
 0x193   : > { %v4039_v43 = vunpack.c.l.s4 %v5349_v42 }
 0x195   : > { %3719 = vmatpush1.bf16.msra.mxu0 %v4815_v49  ;;  %3801 = vmatpush1.bf16.msra.mxu1 %v4817_v50  ;;  %v4927_v49 = vcombine.low %v587_v34, %v595_v35  ;;  %v4929_v50 = vcombine.low %v588_v36, %v596_v37  ;;  %v667_v34 = vld [vmem:[%s5509_s10 + $0xca0] sm:$0xff]  ;;  %v668_v37 = vld [vmem:[%s5509_s10 + $0xca8] sm:$0xff] }
 0x196   : > { %3720 = vmatprep.subr.bf16.mxu0 %v4832_v51  ;;  %3802 = vmatprep.subr.bf16.mxu1 %v4834_v52  ;;  %v4944_v51 = vcombine.high %v603_v44, %v611_v45  ;;  %v4040_v52 = vunpack.c.0.s8 %v4039_v43  ;;  %v675_v35 = vld [vmem:[%s5509_s10 + $0xce0] sm:$0xff] }
 0x197   : > { %v683_v43 = vld [vmem:[%s5509_s10 + $0xd20] sm:$0xff] }
 0x198   : > { %v5927_v0 = vsub.s32 %v4040_v52, %v5551_v48  ;;  %v699_v52 = vld [vmem:[%s5509_s10 + $0xda0] sm:$0xff] }
 0x199   : > { %3721 = vmatpush1.bf16.msra.mxu0 %v4831_v58  ;;  %3803 = vmatpush1.bf16.msra.mxu1 %v4833_v59  ;;  %v628_v58 = vld [vmem:[%s5509_s10 + $0xb68] sm:$0xff]  ;;  %v4943_v59 = vcombine.low %v603_v44, %v611_v45  ;;  %v691_v44 = vld [vmem:[%s5509_s10 + $0xd60] sm:$0xff] }
 0x19a   : > { %3722 = vmatprep.subr.bf16.mxu0 %v4848_v61  ;;  %3804 = vmatprep.subr.bf16.mxu1 %v4850_v62  ;;  %v4945_v61 = vcombine.low %v604_v46, %v612_v47  ;;  %v4960_v62 = vcombine.high %v619_v54, %v627_v55  ;;  %v4962_v1 = vcombine.high %v620_v56, %v628_v58  ;;  %v684_v45 = vld [vmem:[%s5509_s10 + $0xd28] sm:$0xff] }
 0x19b   : > { %v4961_v16 = vcombine.low %v620_v56, %v628_v58  ;;  %v692_v46 = vld [vmem:[%s5509_s10 + $0xd68] sm:$0xff]  ;;  %v5007_v47 = vcombine.low %v667_v34, %v675_v35  ;;  %v5023_v56 = vcombine.low %v683_v43, %v691_v44 }
 0x19c   : > { %v5025_v58 = vcombine.low %v684_v45, %v692_v46 }
 0x19d   : > { %3723 = vmatpush1.bf16.msra.mxu0 %v4847_v3  ;;  %3805 = vmatpush1.bf16.msra.mxu1 %v4849_v5  ;;  %v643_v3 = vld [vmem:[%s5509_s10 + $0xbe0] sm:$0xff] }
 0x19e   : > { %3733 = vmatprep.subr.bf16.mxu0 %v4864_v6  ;;  %3815 = vmatprep.subr.bf16.mxu1 %v4866_v7  ;;  %v636_v7 = vld [vmem:[%s5509_s10 + $0xba8] sm:$0xff]  ;;  %v4976_v17 = vcombine.high %v635_v2, %v643_v3  ;;  %v4975_v28 = vcombine.low %v635_v2, %v643_v3 }
 0x19f   : > { %v724_v2 = vld [vmem:[%s5509_s10 + $0xe68] sm:$0xff] }
 0x1a0   : > { %3725 = vmatmul.mubr.bf16.vlgmr.msra.gmra.mrb[8].mxu0 %v5618_v22  ;;  %3807 = vmatmul.mubr.bf16.vlgmr.msra.gmra.mrb[8].mxu1 %v5618_v22 }
 0x1a1   : > { %3734 = vmatpush1.bf16.msra.mxu0 %v4863_v12  ;;  %3816 = vmatpush1.bf16.msra.mxu1 %v4865_v13  ;;  %v4959_v12 = vcombine.low %v619_v54, %v627_v55  ;;  %v700_v54 = vld [vmem:[%s5509_s10 + $0xda8] sm:$0xff] }
 0x1a2   : > { %3735 = vmatprep.subr.bf16.mxu0 %v4880_v14  ;;  %3817 = vmatprep.subr.bf16.mxu1 %v4882_v15  ;;  %v708_v55 = vld [vmem:[%s5509_s10 + $0xde8] sm:$0xff] }
 0x1a3   : > { %3765 = vmatprep.mubr.bf16.mxu0 %v5626_v31  ;;  %3847 = vmatprep.mubr.bf16.mxu1 %v5626_v31 }
 0x1a5   : > { %3736 = vmatpush1.bf16.msra.mxu0 %v4879_v20  ;;  %3818 = vmatpush1.bf16.msra.mxu1 %v4881_v21  ;;  %v4978_v20 = vcombine.high %v636_v7, %v644_v8  ;;  %v651_v21 = vld [vmem:[%s5509_s10 + $0xc20] sm:$0xff] }
 0x1a6   : > { %3737 = vmatprep.subr.bf16.mxu0 %v4896_v23  ;;  %3819 = vmatprep.subr.bf16.mxu1 %v4898_v24  ;;  %v659_v23 = vld [vmem:[%s5509_s10 + $0xc60] sm:$0xff] }
 0x1a9   : > { %3738 = vmatpush1.bf16.msra.mxu0 %v4895_v29  ;;  %3820 = vmatpush1.bf16.msra.mxu1 %v4897_v30  ;;  %v4977_v30 = vcombine.low %v636_v7, %v644_v8  ;;  %v731_v8 = vld [vmem:[%s5509_s10 + $0xea0] sm:$0xff] }
 0x1aa   : > { %3739 = vmatprep.subr.bf16.mxu0 %v4912_v60  ;;  %3821 = vmatprep.subr.bf16.mxu1 %v4914_v32  ;;  %v4992_v60 = vcombine.high %v651_v21, %v659_v23  ;;  %v4994_v32 = vcombine.high %v652_v25, %v660_v26 }
 0x1ad   : > { %3740 = vmatpush1.bf16.msra.mxu0 %v4911_v38  ;;  %3822 = vmatpush1.bf16.msra.mxu1 %v4913_v39  ;;  %v676_v38 = vld [vmem:[%s5509_s10 + $0xce8] sm:$0xff]  ;;  %v4991_v39 = vcombine.low %v651_v21, %v659_v23 }
 0x1ae   : > { %3741 = vmatprep.subr.bf16.mxu0 %v4928_v40  ;;  %3823 = vmatprep.subr.bf16.mxu1 %v4930_v41  ;;  %v4993_v40 = vcombine.low %v652_v25, %v660_v26  ;;  %v5008_v41 = vcombine.high %v667_v34, %v675_v35  ;;  %v5010_v42 = vcombine.high %v668_v37, %v676_v38  ;;  %v763_v25 = vld [vmem:[%s5509_s10 + $0xfa0] sm:$0xff]  ;;  %v269_v34 = vld [vmem:[%s5509_s10 + $0x30] sm:$0xff] }
 0x1af   : > { %v771_v26 = vld [vmem:[%s5509_s10 + $0xfe0] sm:$0xff]  ;;  %v277_v35 = vld [vmem:[%s5509_s10 + $0x70] sm:$0xff] }
 0x1b1   : > { %3742 = vmatpush1.bf16.msra.mxu0 %v4927_v49  ;;  %3824 = vmatpush1.bf16.msra.mxu1 %v4929_v50  ;;  %v5009_v49 = vcombine.low %v668_v37, %v676_v38  ;;  %v5024_v50 = vcombine.high %v683_v43, %v691_v44  ;;  %v278_v37 = vld [vmem:[%s5509_s10 + $0x78] sm:$0xff]  ;;  %v5103_v38 = vcombine.low %v763_v25, %v771_v26  ;;  %v293_v43 = vld [vmem:[%s5509_s10 + $0xf0] sm:$0xff] }
 0x1b2   : > { %3743 = vmatprep.subr.bf16.mxu0 %v4944_v51  ;;  %3825 = vmatprep.subr.bf16.mxu1 %v4946_v53  ;;  %v5026_v51 = vcombine.high %v684_v45, %v692_v46  ;;  %v707_v53 = vld [vmem:[%s5509_s10 + $0xde0] sm:$0xff]  ;;  %v286_v44 = vld [vmem:[%s5509_s10 + $0xb8] sm:$0xff]  ;;  %v4611_v46 = vcombine.low %v269_v34, %v277_v35 }
 0x1b3   : > { %v3439_v63 = vpop.f32.mrb[0].mxu0  ;;  %v3521_v5 = vpop.f32.mrb[0].mxu1  ;;  %v5039_v3 = vcombine.low %v699_v52, %v707_v53  ;;  %v294_v45 = vld [vmem:[%s5509_s10 + $0xf8] sm:$0xff] }
 0x1b4   : > { %v3441_v6 = vpop.f32.mrb[1].mxu0  ;;  %v3523_v10 = vpop.f32.mrb[1].mxu1 }
 0x1b5   : > { %v4036_v9 = vcombine.low %v3439_v63, %v3441_v6  ;;  %v3443_v11 = vpop.f32.mrb[2].mxu0  ;;  %3744 = vmatpush1.bf16.msra.mxu0 %v4943_v59  ;;  %v4037_v13 = vcombine.low %v3521_v5, %v3523_v10  ;;  %v3525_v14 = vpop.f32.mrb[2].mxu1  ;;  %3826 = vmatpush1.bf16.msra.mxu1 %v4945_v61  ;;  %v5040_v59 = vcombine.high %v699_v52, %v707_v53  ;;  %v723_v63 = vld [vmem:[%s5509_s10 + $0xe60] sm:$0xff]  ;;  %v732_v10 = vld [vmem:[%s5509_s10 + $0xea8] sm:$0xff]  ;;  %v309_v52 = vld [vmem:[%s5509_s10 + $0x170] sm:$0xff] }
 0x1b6   : > { %v3444_v15 = vpop.f32.mrb[3].mxu0  ;;  %3745 = vmatprep.subr.bf16.mxu0 %v4960_v62  ;;  %v3526_v19 = vpop.f32.mrb[3].mxu1  ;;  %3827 = vmatprep.subr.bf16.mxu1 %v4962_v1  ;;  %v5042_v61 = vcombine.high %v700_v54, %v708_v55  ;;  %v715_v62 = vld [vmem:[%s5509_s10 + $0xe20] sm:$0xff]  ;;  %v716_v1 = vld [vmem:[%s5509_s10 + $0xe28] sm:$0xff]  ;;  %v5041_v5 = vcombine.low %v700_v54, %v708_v55  ;;  %v302_v53 = vld [vmem:[%s5509_s10 + $0x138] sm:$0xff] }
 0x1b7   : > { %v4044_v18 = vrot.slane %v4036_v9, %v5927_v0  ;;  %v4051_v24 = vrot.slane %v4037_v13, %v5927_v0  ;;  %v5056_v6 = vcombine.high %v715_v62, %v723_v63  ;;  %v5058_v7 = vcombine.high %v716_v1, %v724_v2  ;;  %v739_v9 = vld [vmem:[%s5509_s10 + $0xee0] sm:$0xff]  ;;  %v740_v11 = vld [vmem:[%s5509_s10 + $0xee8] sm:$0xff]  ;;  %v310_v54 = vld [vmem:[%s5509_s10 + $0x178] sm:$0xff] }
 0x1b8   : > { %v5057_v13 = vcombine.low %v716_v1, %v724_v2  ;;  %v5072_v14 = vcombine.high %v731_v8, %v739_v9  ;;  %v5074_v15 = vcombine.high %v732_v10, %v740_v11  ;;  %v756_v19 = vld [vmem:[%s5509_s10 + $0xf68] sm:$0xff]  ;;  %v5073_v21 = vcombine.low %v732_v10, %v740_v11  ;;  %v326_v1 = vld [vmem:[%s5509_s10 + $0x1f8] sm:$0xff] }
 0x1b9   : > { %3746 = vmatpush1.bf16.msra.mxu0 %v4959_v12  ;;  %v4052_v29 = vcombine.low %v4044_v18, %v4051_v24  ;;  %3828 = vmatpush1.bf16.msra.mxu1 %v4961_v16  ;;  %v5055_v12 = vcombine.low %v715_v62, %v723_v63  ;;  %v747_v16 = vld [vmem:[%s5509_s10 + $0xf20] sm:$0xff]  ;;  %v748_v18 = vld [vmem:[%s5509_s10 + $0xf28] sm:$0xff]  ;;  %v325_v62 = vld [vmem:[%s5509_s10 + $0x1f0] sm:$0xff] }
 0x1ba   : > { %3747 = vmatprep.subr.bf16.mxu0 %v4976_v17  ;;  %3829 = vmatprep.subr.bf16.mxu1 %v4978_v20  ;;  %v755_v17 = vld [vmem:[%s5509_s10 + $0xf60] sm:$0xff]  ;;  %v5071_v20 = vcombine.low %v731_v8, %v739_v9  ;;  %v5090_v24 = vcombine.high %v748_v18, %v756_v19  ;;  %v318_v63 = vld [vmem:[%s5509_s10 + $0x1b8] sm:$0xff]  ;;  %v341_v8 = vld [vmem:[%s5509_s10 + $0x270] sm:$0xff] }
 0x1bb   : > { %v4108_v36 = vadd.f32 %v4052_v29, %v258_v27  ;;  %v5088_v23 = vcombine.high %v747_v16, %v755_v17  ;;  %v764_v27 = vld [vmem:[%s5509_s10 + $0xfa8] sm:$0xff]  ;;  %v5087_v29 = vcombine.low %v747_v16, %v755_v17  ;;  %v334_v9 = vld [vmem:[%s5509_s10 + $0x238] sm:$0xff] }
 0x1bc   : > { %v342_v10 = vld [vmem:[%s5509_s10 + $0x278] sm:$0xff] }
 0x1bd   : > { %3748 = vmatpush1.bf16.msra.mxu0 %v4975_v28  ;;  %4112 = vst [vmem:[#allocation2] sm:$0xff] %v4108_v36  ;;  %3830 = vmatpush1.bf16.msra.mxu1 %v4977_v30  ;;  %v772_v28 = vld [vmem:[%s5509_s10 + $0xfe8] sm:$0xff]  ;;  %v5089_v30 = vcombine.low %v748_v18, %v756_v19  ;;  %v270_v36 = vld [vmem:[%s5509_s10 + $0x38] sm:$0xff]  ;;  %v4677_v19 = vcombine.low %v334_v9, %v342_v10 }
 0x1be   : > { %3749 = vmatprep.subr.bf16.mxu0 %v4992_v60  ;;  %3831 = vmatprep.subr.bf16.mxu1 %v4994_v32  ;;  %v5104_v60 = vcombine.high %v763_v25, %v771_v26  ;;  %v5106_v32 = vcombine.high %v764_v27, %v772_v28  ;;  %v350_v16 = vld [vmem:[%s5509_s10 + $0x2b8] sm:$0xff] }
 0x1bf   : > { %v358_v17 = vld [vmem:[%s5509_s10 + $0x2f8] sm:$0xff] }
 0x1c0   : > { %v366_v25 = vld [vmem:[%s5509_s10 + $0x338] sm:$0xff] }
 0x1c1   : > { %3750 = vmatpush1.bf16.msra.mxu0 %v4991_v39  ;;  %3832 = vmatpush1.bf16.msra.mxu1 %v4993_v40  ;;  %v5105_v39 = vcombine.low %v764_v27, %v772_v28  ;;  %v4612_v40 = vcombine.high %v269_v34, %v277_v35  ;;  %v374_v26 = vld [vmem:[%s5509_s10 + $0x378] sm:$0xff]  ;;  %v4693_v28 = vcombine.low %v350_v16, %v358_v17 }
 0x1c2   : > { %3751 = vmatprep.subr.bf16.mxu0 %v5008_v41  ;;  %3833 = vmatprep.subr.bf16.mxu1 %v5010_v42  ;;  %v4614_v41 = vcombine.high %v270_v36, %v278_v37  ;;  %v285_v42 = vld [vmem:[%s5509_s10 + $0xb0] sm:$0xff]  ;;  %v382_v34 = vld [vmem:[%s5509_s10 + $0x3b8] sm:$0xff] }
 0x1c3   : > { %v4627_v55 = vcombine.low %v285_v42, %v293_v43  ;;  %v390_v35 = vld [vmem:[%s5509_s10 + $0x3f8] sm:$0xff] }
 0x1c5   : > { %3752 = vmatpush1.bf16.msra.mxu0 %v5007_v47  ;;  %3834 = vmatpush1.bf16.msra.mxu1 %v5009_v49  ;;  %v4613_v47 = vcombine.low %v270_v36, %v278_v37  ;;  %v4628_v49 = vcombine.high %v285_v42, %v293_v43  ;;  %v4709_v37 = vcombine.low %v366_v25, %v374_v26  ;;  %v398_v42 = vld [vmem:[%s5509_s10 + $0x438] sm:$0xff] }
 0x1c6   : > { %3753 = vmatprep.subr.bf16.mxu0 %v5024_v50  ;;  %3835 = vmatprep.subr.bf16.mxu1 %v5026_v51  ;;  %v4630_v50 = vcombine.high %v286_v44, %v294_v45  ;;  %v301_v51 = vld [vmem:[%s5509_s10 + $0x130] sm:$0xff]  ;;  %v406_v43 = vld [vmem:[%s5509_s10 + $0x478] sm:$0xff] }
 0x1c7   : > { %v4643_v2 = vcombine.low %v301_v51, %v309_v52 }
 0x1c9   : > { %3754 = vmatpush1.bf16.msra.mxu0 %v5023_v56  ;;  %3836 = vmatpush1.bf16.msra.mxu1 %v5025_v58  ;;  %v4629_v56 = vcombine.low %v286_v44, %v294_v45  ;;  %v4644_v58 = vcombine.high %v301_v51, %v309_v52  ;;  %v4725_v45 = vcombine.low %v382_v34, %v390_v35  ;;  %v414_v51 = vld [vmem:[%s5509_s10 + $0x4b8] sm:$0xff] }
 0x1ca   : > { %3755 = vmatprep.subr.bf16.mxu0 %v5040_v59  ;;  %3837 = vmatprep.subr.bf16.mxu1 %v5042_v61  ;;  %v4646_v59 = vcombine.high %v302_v53, %v310_v54  ;;  %v317_v61 = vld [vmem:[%s5509_s10 + $0x1b0] sm:$0xff]  ;;  %v422_v52 = vld [vmem:[%s5509_s10 + $0x4f8] sm:$0xff] }
 0x1cb   : > { %v4659_v11 = vcombine.low %v317_v61, %v325_v62 }
 0x1cd   : > { %3756 = vmatpush1.bf16.msra.mxu0 %v5039_v3  ;;  %3838 = vmatpush1.bf16.msra.mxu1 %v5041_v5  ;;  %v4645_v3 = vcombine.low %v302_v53, %v310_v54  ;;  %v4660_v5 = vcombine.high %v317_v61, %v325_v62  ;;  %v4741_v54 = vcombine.low %v398_v42, %v406_v43  ;;  %v430_v61 = vld [vmem:[%s5509_s10 + $0x538] sm:$0xff] }
 0x1ce   : > { %3757 = vmatprep.subr.bf16.mxu0 %v5056_v6  ;;  %3839 = vmatprep.subr.bf16.mxu1 %v5058_v7  ;;  %v4662_v6 = vcombine.high %v318_v63, %v326_v1  ;;  %v333_v7 = vld [vmem:[%s5509_s10 + $0x230] sm:$0xff]  ;;  %v438_v62 = vld [vmem:[%s5509_s10 + $0x578] sm:$0xff] }
 0x1cf   : > { %v4675_v18 = vcombine.low %v333_v7, %v341_v8 }
 0x1d1   : > { %3758 = vmatpush1.bf16.msra.mxu0 %v5055_v12  ;;  %3840 = vmatpush1.bf16.msra.mxu1 %v5057_v13  ;;  %v4676_v12 = vcombine.high %v333_v7, %v341_v8  ;;  %v4678_v13 = vcombine.high %v334_v9, %v342_v10  ;;  %v446_v7 = vld [vmem:[%s5509_s10 + $0x5b8] sm:$0xff]  ;;  %v4773_v10 = vcombine.low %v430_v61, %v438_v62 }
 0x1d2   : > { %3759 = vmatprep.subr.bf16.mxu0 %v5072_v14  ;;  %3841 = vmatprep.subr.bf16.mxu1 %v5074_v15  ;;  %v349_v14 = vld [vmem:[%s5509_s10 + $0x2b0] sm:$0xff]  ;;  %v454_v8 = vld [vmem:[%s5509_s10 + $0x5f8] sm:$0xff] }
 0x1d3   : > { %v357_v15 = vld [vmem:[%s5509_s10 + $0x2f0] sm:$0xff] }
 0x1d4   : > { %v4691_v27 = vcombine.low %v349_v14, %v357_v15 }
 0x1d5   : > { %3760 = vmatpush1.bf16.msra.mxu0 %v5071_v20  ;;  %3842 = vmatpush1.bf16.msra.mxu1 %v5073_v21  ;;  %v4692_v20 = vcombine.high %v349_v14, %v357_v15  ;;  %v4694_v21 = vcombine.high %v350_v16, %v358_v17  ;;  %v462_v14 = vld [vmem:[%s5509_s10 + $0x638] sm:$0xff]  ;;  %v4789_v17 = vcombine.low %v446_v7, %v454_v8 }
 0x1d6   : > { %3761 = vmatprep.subr.bf16.mxu0 %v5088_v23  ;;  %3843 = vmatprep.subr.bf16.mxu1 %v5090_v24  ;;  %v365_v23 = vld [vmem:[%s5509_s10 + $0x330] sm:$0xff]  ;;  %v470_v15 = vld [vmem:[%s5509_s10 + $0x678] sm:$0xff] }
 0x1d7   : > { %v373_v24 = vld [vmem:[%s5509_s10 + $0x370] sm:$0xff] }
 0x1d8   : > { %v4707_v36 = vcombine.low %v365_v23, %v373_v24 }
 0x1d9   : > { %3762 = vmatpush1.bf16.msra.mxu0 %v5087_v29  ;;  %3844 = vmatpush1.bf16.msra.mxu1 %v5089_v30  ;;  %v4708_v29 = vcombine.high %v365_v23, %v373_v24  ;;  %v4710_v30 = vcombine.high %v366_v25, %v374_v26  ;;  %v478_v23 = vld [vmem:[%s5509_s10 + $0x6b8] sm:$0xff]  ;;  %v4805_v26 = vcombine.low %v462_v14, %v470_v15 }
 0x1da   : > { %3763 = vmatprep.subr.bf16.mxu0 %v5104_v60  ;;  %3845 = vmatprep.subr.bf16.mxu1 %v5106_v32  ;;  %v381_v60 = vld [vmem:[%s5509_s10 + $0x3b0] sm:$0xff]  ;;  %v486_v24 = vld [vmem:[%s5509_s10 + $0x6f8] sm:$0xff] }
 0x1db   : > { %v389_v32 = vld [vmem:[%s5509_s10 + $0x3f0] sm:$0xff] }
 0x1dc   : > { %v4723_v44 = vcombine.low %v381_v60, %v389_v32 }
 0x1dd   : > { %3764 = vmatpush1.bf16.msra.mxu0 %v5103_v38  ;;  %3846 = vmatpush1.bf16.msra.mxu1 %v5105_v39  ;;  %v4724_v38 = vcombine.high %v381_v60, %v389_v32  ;;  %v4726_v39 = vcombine.high %v382_v34, %v390_v35  ;;  %v494_v60 = vld [vmem:[%s5509_s10 + $0x738] sm:$0xff]  ;;  %v4821_v35 = vcombine.low %v478_v23, %v486_v24 }
 0x1de   : > { %3856 = vmatprep.subr.bf16.mxu0 %v4612_v40  ;;  %3938 = vmatprep.subr.bf16.mxu1 %v4614_v41  ;;  %v397_v40 = vld [vmem:[%s5509_s10 + $0x430] sm:$0xff]  ;;  %v502_v32 = vld [vmem:[%s5509_s10 + $0x778] sm:$0xff] }
 0x1df   : > { %v405_v41 = vld [vmem:[%s5509_s10 + $0x470] sm:$0xff] }
 0x1e0   : > { %3766 = vmatmul.mubr.bf16.vlgmr.msra.gmra.mrb[8].mxu0 %v5694_v33  ;;  %3848 = vmatmul.mubr.bf16.vlgmr.msra.gmra.mrb[8].mxu1 %v5694_v33  ;;  %v4739_v53 = vcombine.low %v397_v40, %v405_v41 }
 0x1e1   : > { %3857 = vmatpush1.bf16.msra.mxu0 %v4611_v46  ;;  %3939 = vmatpush1.bf16.msra.mxu1 %v4613_v47  ;;  %v4740_v46 = vcombine.high %v397_v40, %v405_v41  ;;  %v4742_v47 = vcombine.high %v398_v42, %v406_v43  ;;  %v510_v40 = vld [vmem:[%s5509_s10 + $0x7b8] sm:$0xff]  ;;  %v4837_v43 = vcombine.low %v494_v60, %v502_v32 }
 0x1e2   : > { %3858 = vmatprep.subr.bf16.mxu0 %v4628_v49  ;;  %3940 = vmatprep.subr.bf16.mxu1 %v4630_v50  ;;  %v413_v49 = vld [vmem:[%s5509_s10 + $0x4b0] sm:$0xff]  ;;  %v518_v41 = vld [vmem:[%s5509_s10 + $0x7f8] sm:$0xff] }
 0x1e3   : > { %3888 = vmatprep.mubr.bf16.mxu0 %v5574_v4  ;;  %3970 = vmatprep.mubr.bf16.mxu1 %v5574_v4  ;;  %v4661_v4 = vcombine.low %v318_v63, %v326_v1  ;;  %v421_v50 = vld [vmem:[%s5509_s10 + $0x4f0] sm:$0xff]  ;;  %v4757_v1 = vcombine.low %v414_v51, %v422_v52 }
 0x1e4   : > { %v4755_v63 = vcombine.low %v413_v49, %v421_v50 }
 0x1e5   : > { %3859 = vmatpush1.bf16.msra.mxu0 %v4627_v55  ;;  %3941 = vmatpush1.bf16.msra.mxu1 %v4629_v56  ;;  %v4756_v55 = vcombine.high %v413_v49, %v421_v50  ;;  %v4758_v56 = vcombine.high %v414_v51, %v422_v52  ;;  %v526_v49 = vld [vmem:[%s5509_s10 + $0x838] sm:$0xff]  ;;  %v4853_v52 = vcombine.low %v510_v40, %v518_v41 }
 0x1e6   : > { %3860 = vmatprep.subr.bf16.mxu0 %v4644_v58  ;;  %3942 = vmatprep.subr.bf16.mxu1 %v4646_v59  ;;  %v429_v58 = vld [vmem:[%s5509_s10 + $0x530] sm:$0xff]  ;;  %v534_v50 = vld [vmem:[%s5509_s10 + $0x878] sm:$0xff] }
 0x1e7   : > { %v437_v59 = vld [vmem:[%s5509_s10 + $0x570] sm:$0xff] }
 0x1e8   : > { %v4771_v9 = vcombine.low %v429_v58, %v437_v59 }
 0x1e9   : > { %3861 = vmatpush1.bf16.msra.mxu0 %v4643_v2  ;;  %3943 = vmatpush1.bf16.msra.mxu1 %v4645_v3  ;;  %v4772_v2 = vcombine.high %v429_v58, %v437_v59  ;;  %v4774_v3 = vcombine.high %v430_v61, %v438_v62  ;;  %v542_v58 = vld [vmem:[%s5509_s10 + $0x8b8] sm:$0xff]  ;;  %v4869_v62 = vcombine.low %v526_v49, %v534_v50 }
 0x1ea   : > { %3862 = vmatprep.subr.bf16.mxu0 %v4660_v5  ;;  %3944 = vmatprep.subr.bf16.mxu1 %v4662_v6  ;;  %v445_v5 = vld [vmem:[%s5509_s10 + $0x5b0] sm:$0xff]  ;;  %v550_v59 = vld [vmem:[%s5509_s10 + $0x8f8] sm:$0xff] }
 0x1eb   : > { %v453_v6 = vld [vmem:[%s5509_s10 + $0x5f0] sm:$0xff] }
 0x1ec   : > { %v4787_v16 = vcombine.low %v445_v5, %v453_v6 }
 0x1ed   : > { %3863 = vmatpush1.bf16.msra.mxu0 %v4659_v11  ;;  %3945 = vmatpush1.bf16.msra.mxu1 %v4661_v4  ;;  %v4788_v11 = vcombine.high %v445_v5, %v453_v6  ;;  %v4790_v4 = vcombine.high %v446_v7, %v454_v8  ;;  %v558_v5 = vld [vmem:[%s5509_s10 + $0x938] sm:$0xff]  ;;  %v4885_v8 = vcombine.low %v542_v58, %v550_v59 }
 0x1ee   : > { %3864 = vmatprep.subr.bf16.mxu0 %v4676_v12  ;;  %3946 = vmatprep.subr.bf16.mxu1 %v4678_v13  ;;  %v461_v12 = vld [vmem:[%s5509_s10 + $0x630] sm:$0xff]  ;;  %v566_v6 = vld [vmem:[%s5509_s10 + $0x978] sm:$0xff] }
 0x1ef   : > { %v469_v13 = vld [vmem:[%s5509_s10 + $0x670] sm:$0xff] }
 0x1f0   : > { %v4803_v25 = vcombine.low %v461_v12, %v469_v13 }
 0x1f1   : > { %3865 = vmatpush1.bf16.msra.mxu0 %v4675_v18  ;;  %3947 = vmatpush1.bf16.msra.mxu1 %v4677_v19  ;;  %v4804_v18 = vcombine.high %v461_v12, %v469_v13  ;;  %v4806_v19 = vcombine.high %v462_v14, %v470_v15  ;;  %v574_v12 = vld [vmem:[%s5509_s10 + $0x9b8] sm:$0xff]  ;;  %v4901_v14 = vcombine.low %v558_v5, %v566_v6 }
 0x1f2   : > { %3866 = vmatprep.subr.bf16.mxu0 %v4692_v20  ;;  %3948 = vmatprep.subr.bf16.mxu1 %v4694_v21  ;;  %v477_v20 = vld [vmem:[%s5509_s10 + $0x6b0] sm:$0xff]  ;;  %v582_v13 = vld [vmem:[%s5509_s10 + $0x9f8] sm:$0xff] }
 0x1f3   : > { %v485_v21 = vld [vmem:[%s5509_s10 + $0x6f0] sm:$0xff] }
 0x1f4   : > { %v4819_v34 = vcombine.low %v477_v20, %v485_v21 }
 0x1f5   : > { %3867 = vmatpush1.bf16.msra.mxu0 %v4691_v27  ;;  %3949 = vmatpush1.bf16.msra.mxu1 %v4693_v28  ;;  %v4820_v27 = vcombine.high %v477_v20, %v485_v21  ;;  %v4822_v28 = vcombine.high %v478_v23, %v486_v24  ;;  %v598_v20 = vld [vmem:[%s5509_s10 + $0xa78] sm:$0xff] }
 0x1f6   : > { %3868 = vmatprep.subr.bf16.mxu0 %v4708_v29  ;;  %3950 = vmatprep.subr.bf16.mxu1 %v4710_v30  ;;  %v493_v29 = vld [vmem:[%s5509_s10 + $0x730] sm:$0xff] }
 0x1f7   : > { %v501_v30 = vld [vmem:[%s5509_s10 + $0x770] sm:$0xff] }
 0x1f8   : > { %v4835_v42 = vcombine.low %v493_v29, %v501_v30 }
 0x1f9   : > { %3869 = vmatpush1.bf16.msra.mxu0 %v4707_v36  ;;  %3951 = vmatpush1.bf16.msra.mxu1 %v4709_v37  ;;  %v4836_v36 = vcombine.high %v493_v29, %v501_v30  ;;  %v4838_v37 = vcombine.high %v494_v60, %v502_v32 }
 0x1fa   : > { %3870 = vmatprep.subr.bf16.mxu0 %v4724_v38  ;;  %3952 = vmatprep.subr.bf16.mxu1 %v4726_v39  ;;  %v509_v38 = vld [vmem:[%s5509_s10 + $0x7b0] sm:$0xff] }
 0x1fb   : > { %v517_v39 = vld [vmem:[%s5509_s10 + $0x7f0] sm:$0xff] }
 0x1fc   : > { %v4851_v51 = vcombine.low %v509_v38, %v517_v39 }
 0x1fd   : > { %3871 = vmatpush1.bf16.msra.mxu0 %v4723_v44  ;;  %3953 = vmatpush1.bf16.msra.mxu1 %v4725_v45  ;;  %v4852_v44 = vcombine.high %v509_v38, %v517_v39  ;;  %v4854_v45 = vcombine.high %v510_v40, %v518_v41 }
 0x1fe   : > { %3872 = vmatprep.subr.bf16.mxu0 %v4740_v46  ;;  %3954 = vmatprep.subr.bf16.mxu1 %v4742_v47  ;;  %v525_v46 = vld [vmem:[%s5509_s10 + $0x830] sm:$0xff] }
 0x1ff   : > { %v533_v47 = vld [vmem:[%s5509_s10 + $0x870] sm:$0xff] }
 0x200   : > { %v4867_v61 = vcombine.low %v525_v46, %v533_v47 }
 0x201   : > { %3873 = vmatpush1.bf16.msra.mxu0 %v4739_v53  ;;  %3955 = vmatpush1.bf16.msra.mxu1 %v4741_v54  ;;  %v4868_v53 = vcombine.high %v525_v46, %v533_v47  ;;  %v4870_v54 = vcombine.high %v526_v49, %v534_v50  ;;  %v638_v47 = vld [vmem:[%s5509_s10 + $0xbb8] sm:$0xff] }
 0x202   : > { %3874 = vmatprep.subr.bf16.mxu0 %v4756_v55  ;;  %3956 = vmatprep.subr.bf16.mxu1 %v4758_v56  ;;  %v541_v55 = vld [vmem:[%s5509_s10 + $0x8b0] sm:$0xff]  ;;  %v646_v49 = vld [vmem:[%s5509_s10 + $0xbf8] sm:$0xff] }
 0x203   : > { %v549_v56 = vld [vmem:[%s5509_s10 + $0x8f0] sm:$0xff] }
 0x204   : > { %v4883_v7 = vcombine.low %v541_v55, %v549_v56 }
 0x205   : > { %3875 = vmatpush1.bf16.msra.mxu0 %v4755_v63  ;;  %3957 = vmatpush1.bf16.msra.mxu1 %v4757_v1  ;;  %v4884_v63 = vcombine.high %v541_v55, %v549_v56  ;;  %v4886_v1 = vcombine.high %v542_v58, %v550_v59 }
 0x206   : > { %3876 = vmatprep.subr.bf16.mxu0 %v4772_v2  ;;  %3958 = vmatprep.subr.bf16.mxu1 %v4774_v3  ;;  %v557_v2 = vld [vmem:[%s5509_s10 + $0x930] sm:$0xff] }
 0x207   : > { %v565_v3 = vld [vmem:[%s5509_s10 + $0x970] sm:$0xff] }
 0x209   : > { %3877 = vmatpush1.bf16.msra.mxu0 %v4771_v9  ;;  %3959 = vmatpush1.bf16.msra.mxu1 %v4773_v10  ;;  %v4900_v9 = vcombine.high %v557_v2, %v565_v3  ;;  %v4902_v10 = vcombine.high %v558_v5, %v566_v6  ;;  %v654_v5 = vld [vmem:[%s5509_s10 + $0xc38] sm:$0xff] }
 0x20a   : > { %3878 = vmatprep.subr.bf16.mxu0 %v4788_v11  ;;  %3960 = vmatprep.subr.bf16.mxu1 %v4790_v4  ;;  %v573_v11 = vld [vmem:[%s5509_s10 + $0x9b0] sm:$0xff]  ;;  %v662_v6 = vld [vmem:[%s5509_s10 + $0xc78] sm:$0xff] }
 0x20b   : > { %v581_v4 = vld [vmem:[%s5509_s10 + $0x9f0] sm:$0xff] }
 0x20c   : > { %v4916_v15 = vcombine.high %v573_v11, %v581_v4  ;;  %v4915_v21 = vcombine.low %v573_v11, %v581_v4  ;;  %v4998_v4 = vcombine.high %v654_v5, %v662_v6 }
 0x20d   : > { %3879 = vmatpush1.bf16.msra.mxu0 %v4787_v16  ;;  %3961 = vmatpush1.bf16.msra.mxu1 %v4789_v17  ;;  %v4918_v16 = vcombine.high %v574_v12, %v582_v13  ;;  %v589_v17 = vld [vmem:[%s5509_s10 + $0xa30] sm:$0xff] }
 0x20e   : > { %3880 = vmatprep.subr.bf16.mxu0 %v4804_v18  ;;  %3962 = vmatprep.subr.bf16.mxu1 %v4806_v19  ;;  %v597_v18 = vld [vmem:[%s5509_s10 + $0xa70] sm:$0xff]  ;;  %v590_v19 = vld [vmem:[%s5509_s10 + $0xa38] sm:$0xff] }
 0x20f   : > { %v4932_v23 = vcombine.high %v589_v17, %v597_v18  ;;  %v4934_v24 = vcombine.high %v590_v19, %v598_v20  ;;  %v4931_v29 = vcombine.low %v589_v17, %v597_v18  ;;  %v4933_v30 = vcombine.low %v590_v19, %v598_v20  ;;  %v685_v20 = vld [vmem:[%s5509_s10 + $0xd30] sm:$0xff] }
 0x210   : > { %v4997_v17 = vcombine.low %v654_v5, %v662_v6  ;;  %v774_v5 = vld [vmem:[%s5509_s10 + $0xff8] sm:$0xff] }
 0x211   : > { %3881 = vmatpush1.bf16.msra.mxu0 %v4803_v25  ;;  %3963 = vmatpush1.bf16.msra.mxu1 %v4805_v26  ;;  %v605_v25 = vld [vmem:[%s5509_s10 + $0xab0] sm:$0xff] }
 0x212   : > { %3882 = vmatprep.subr.bf16.mxu0 %v4820_v27  ;;  %3964 = vmatprep.subr.bf16.mxu1 %v4822_v28  ;;  %v613_v26 = vld [vmem:[%s5509_s10 + $0xaf0] sm:$0xff]  ;;  %v606_v27 = vld [vmem:[%s5509_s10 + $0xab8] sm:$0xff] }
 0x213   : > { %v614_v28 = vld [vmem:[%s5509_s10 + $0xaf8] sm:$0xff]  ;;  %v4948_v60 = vcombine.high %v605_v25, %v613_v26  ;;  %v4947_v38 = vcombine.low %v605_v25, %v613_v26 }
 0x214   : > { %v4950_v32 = vcombine.high %v606_v27, %v614_v28  ;;  %v4949_v39 = vcombine.low %v606_v27, %v614_v28  ;;  %v701_v28 = vld [vmem:[%s5509_s10 + $0xdb0] sm:$0xff] }
 0x215   : > { %3883 = vmatpush1.bf16.msra.mxu0 %v4819_v34  ;;  %3965 = vmatpush1.bf16.msra.mxu1 %v4821_v35  ;;  %v621_v34 = vld [vmem:[%s5509_s10 + $0xb30] sm:$0xff] }
 0x216   : > { %3884 = vmatprep.subr.bf16.mxu0 %v4836_v36  ;;  %3966 = vmatprep.subr.bf16.mxu1 %v4838_v37  ;;  %v629_v35 = vld [vmem:[%s5509_s10 + $0xb70] sm:$0xff]  ;;  %v622_v36 = vld [vmem:[%s5509_s10 + $0xb38] sm:$0xff] }
 0x217   : > { %v630_v37 = vld [vmem:[%s5509_s10 + $0xb78] sm:$0xff]  ;;  %v4964_v40 = vcombine.high %v621_v34, %v629_v35 }
 0x218   : > { %v4965_v58 = vcombine.low %v622_v36, %v630_v37 }
 0x219   : > { %3885 = vmatpush1.bf16.msra.mxu0 %v4835_v42  ;;  %3967 = vmatpush1.bf16.msra.mxu1 %v4837_v43  ;;  %v4966_v42 = vcombine.high %v622_v36, %v630_v37  ;;  %v637_v43 = vld [vmem:[%s5509_s10 + $0xbb0] sm:$0xff] }
 0x21a   : > { %3886 = vmatprep.subr.bf16.mxu0 %v4852_v44  ;;  %3968 = vmatprep.subr.bf16.mxu1 %v4854_v45  ;;  %v645_v44 = vld [vmem:[%s5509_s10 + $0xbf0] sm:$0xff] }
 0x21b   : > { %v4980_v59 = vcombine.high %v637_v43, %v645_v44  ;;  %v717_v37 = vld [vmem:[%s5509_s10 + $0xe30] sm:$0xff] }
 0x21d   : > { %3887 = vmatpush1.bf16.msra.mxu0 %v4851_v51  ;;  %3969 = vmatpush1.bf16.msra.mxu1 %v4853_v52 }
 0x21e   : > { %3897 = vmatprep.subr.bf16.mxu0 %v4868_v53  ;;  %3979 = vmatprep.subr.bf16.mxu1 %v4870_v54  ;;  %v4963_v53 = vcombine.low %v621_v34, %v629_v35 }
 0x220   : > { %3889 = vmatmul.mubr.bf16.vlgmr.msra.gmra.mrb[12].mxu0 %v5618_v22  ;;  %3971 = vmatmul.mubr.bf16.vlgmr.msra.gmra.mrb[12].mxu1 %v5618_v22  ;;  %v4899_v22 = vcombine.low %v557_v2, %v565_v3  ;;  %v661_v2 = vld [vmem:[%s5509_s10 + $0xc70] sm:$0xff] }
 0x221   : > { %3898 = vmatpush1.bf16.msra.mxu0 %v4867_v61  ;;  %3980 = vmatpush1.bf16.msra.mxu1 %v4869_v62 }
 0x222   : > { %3899 = vmatprep.subr.bf16.mxu0 %v4884_v63  ;;  %3981 = vmatprep.subr.bf16.mxu1 %v4886_v1  ;;  %v4982_v63 = vcombine.high %v638_v47, %v646_v49  ;;  %v653_v1 = vld [vmem:[%s5509_s10 + $0xc30] sm:$0xff] }
 0x223   : > { %3929 = vmatprep.mubr.bf16.mxu0 %v5626_v31  ;;  %4011 = vmatprep.mubr.bf16.mxu1 %v5626_v31  ;;  %v4917_v31 = vcombine.low %v574_v12, %v582_v13  ;;  %v4996_v11 = vcombine.high %v653_v1, %v661_v2  ;;  %v669_v12 = vld [vmem:[%s5509_s10 + $0xcb0] sm:$0xff] }
 0x224   : > { %v677_v13 = vld [vmem:[%s5509_s10 + $0xcf0] sm:$0xff] }
 0x225   : > { %3900 = vmatpush1.bf16.msra.mxu0 %v4883_v7  ;;  %3982 = vmatpush1.bf16.msra.mxu1 %v4885_v8  ;;  %v259_v7 = vld [vmem:[#allocation2 + $0x8] sm:$0xff]  ;;  %v4979_v8 = vcombine.low %v637_v43, %v645_v44  ;;  %v5012_v18 = vcombine.high %v669_v12, %v677_v13 }
 0x226   : > { %3901 = vmatprep.subr.bf16.mxu0 %v4900_v9  ;;  %3983 = vmatprep.subr.bf16.mxu1 %v4902_v10  ;;  %v4981_v10 = vcombine.low %v638_v47, %v646_v49  ;;  %v734_v47 = vld [vmem:[%s5509_s10 + $0xeb8] sm:$0xff] }
 0x227   : > { %v742_v49 = vld [vmem:[%s5509_s10 + $0xef8] sm:$0xff] }
 0x229   : > { %3902 = vmatpush1.bf16.msra.mxu0 %v4899_v22  ;;  %3984 = vmatpush1.bf16.msra.mxu1 %v4901_v14  ;;  %v670_v14 = vld [vmem:[%s5509_s10 + $0xcb8] sm:$0xff] }
 0x22a   : > { %3903 = vmatprep.subr.bf16.mxu0 %v4916_v15  ;;  %3985 = vmatprep.subr.bf16.mxu1 %v4918_v16  ;;  %v678_v15 = vld [vmem:[%s5509_s10 + $0xcf8] sm:$0xff]  ;;  %v4995_v16 = vcombine.low %v653_v1, %v661_v2  ;;  %v765_v1 = vld [vmem:[%s5509_s10 + $0xfb0] sm:$0xff] }
 0x22b   : > { %v5014_v19 = vcombine.high %v670_v14, %v678_v15  ;;  %v5013_v25 = vcombine.low %v670_v14, %v678_v15  ;;  %v773_v2 = vld [vmem:[%s5509_s10 + $0xff0] sm:$0xff] }
 0x22d   : > { %3904 = vmatpush1.bf16.msra.mxu0 %v4915_v21  ;;  %3986 = vmatpush1.bf16.msra.mxu1 %v4917_v31  ;;  %v693_v21 = vld [vmem:[%s5509_s10 + $0xd70] sm:$0xff]  ;;  %v686_v31 = vld [vmem:[%s5509_s10 + $0xd38] sm:$0xff] }
 0x22e   : > { %3905 = vmatprep.subr.bf16.mxu0 %v4932_v23  ;;  %3987 = vmatprep.subr.bf16.mxu1 %v4934_v24  ;;  %v694_v23 = vld [vmem:[%s5509_s10 + $0xd78] sm:$0xff]  ;;  %v5011_v24 = vcombine.low %v669_v12, %v677_v13  ;;  %v5028_v26 = vcombine.high %v685_v20, %v693_v21 }
 0x22f   : > { %v5030_v27 = vcombine.high %v686_v31, %v694_v23  ;;  %v5029_v34 = vcombine.low %v686_v31, %v694_v23  ;;  %v260_v31 = vld [vmem:[#allocation2 + $0x10] sm:$0xff] }
 0x231   : > { %3906 = vmatpush1.bf16.msra.mxu0 %v4931_v29  ;;  %3988 = vmatpush1.bf16.msra.mxu1 %v4933_v30  ;;  %v709_v29 = vld [vmem:[%s5509_s10 + $0xdf0] sm:$0xff]  ;;  %v702_v30 = vld [vmem:[%s5509_s10 + $0xdb8] sm:$0xff] }
 0x232   : > { %3907 = vmatprep.subr.bf16.mxu0 %v4948_v60  ;;  %3989 = vmatprep.subr.bf16.mxu1 %v4950_v32  ;;  %v710_v60 = vld [vmem:[%s5509_s10 + $0xdf8] sm:$0xff]  ;;  %v5027_v32 = vcombine.low %v685_v20, %v693_v21  ;;  %v5044_v35 = vcombine.high %v701_v28, %v709_v29 }
 0x233   : > { %v3603_v41 = vpop.f32.mrb[4].mxu0  ;;  %v3685_v45 = vpop.f32.mrb[4].mxu1  ;;  %v5046_v36 = vcombine.high %v702_v30, %v710_v60 }
 0x234   : > { %v3605_v46 = vpop.f32.mrb[5].mxu0  ;;  %v3687_v51 = vpop.f32.mrb[5].mxu1 }
 0x235   : > { %v4053_v50 = vcombine.low %v3603_v41, %v3605_v46  ;;  %v3607_v52 = vpop.f32.mrb[6].mxu0  ;;  %3908 = vmatpush1.bf16.msra.mxu0 %v4947_v38  ;;  %v4054_v54 = vcombine.low %v3685_v45, %v3687_v51  ;;  %v3689_v55 = vpop.f32.mrb[6].mxu1  ;;  %3990 = vmatpush1.bf16.msra.mxu1 %v4949_v39  ;;  %v725_v38 = vld [vmem:[%s5509_s10 + $0xe70] sm:$0xff]  ;;  %v718_v39 = vld [vmem:[%s5509_s10 + $0xe38] sm:$0xff]  ;;  %v5043_v41 = vcombine.low %v701_v28, %v709_v29 }
 0x236   : > { %v3608_v56 = vpop.f32.mrb[7].mxu0  ;;  %3909 = vmatprep.subr.bf16.mxu0 %v4964_v40  ;;  %v3690_v62 = vpop.f32.mrb[7].mxu1  ;;  %3991 = vmatprep.subr.bf16.mxu1 %v4966_v42  ;;  %v726_v40 = vld [vmem:[%s5509_s10 + $0xe78] sm:$0xff]  ;;  %v5045_v42 = vcombine.low %v702_v30, %v710_v60  ;;  %v5060_v43 = vcombine.high %v717_v37, %v725_v38  ;;  %v733_v45 = vld [vmem:[%s5509_s10 + $0xeb0] sm:$0xff] }
 0x237   : > { %v4061_v61 = vrot.slane %v4053_v50, %v5927_v0  ;;  %v4068_v3 = vrot.slane %v4054_v54, %v5927_v0  ;;  %v5062_v44 = vcombine.high %v718_v39, %v726_v40  ;;  %v741_v46 = vld [vmem:[%s5509_s10 + $0xef0] sm:$0xff]  ;;  %v5059_v50 = vcombine.low %v717_v37, %v725_v38  ;;  %v750_v56 = vld [vmem:[%s5509_s10 + $0xf38] sm:$0xff] }
 0x238   : > { %v5061_v51 = vcombine.low %v718_v39, %v726_v40  ;;  %v5076_v52 = vcombine.high %v733_v45, %v741_v46  ;;  %v749_v54 = vld [vmem:[%s5509_s10 + $0xf30] sm:$0xff]  ;;  %v261_v37 = vld [vmem:[#allocation2 + $0x18] sm:$0xff]  ;;  %v4124_v40 = vld [vmem:[#allocation5] sm:$0xff] (!%p5111_p7) }
 0x239   : > { %3910 = vmatpush1.bf16.msra.mxu0 %v4963_v53  ;;  %v4069_v9 = vcombine.low %v4061_v61, %v4068_v3  ;;  %3992 = vmatpush1.bf16.msra.mxu1 %v4965_v58  ;;  %v5078_v53 = vcombine.high %v734_v47, %v742_v49  ;;  %v757_v55 = vld [vmem:[%s5509_s10 + $0xf70] sm:$0xff]  ;;  %v758_v58 = vld [vmem:[%s5509_s10 + $0xf78] sm:$0xff]  ;;  %v5077_v61 = vcombine.low %v734_v47, %v742_v49  ;;  %v4154_v47 = vsub.s32 (!%p5111_p7), 6, %v5551_v48 }
 0x23a   : > { %3911 = vmatprep.subr.bf16.mxu0 %v4980_v59  ;;  %3993 = vmatprep.subr.bf16.mxu1 %v4982_v63  ;;  %v5075_v59 = vcombine.low %v733_v45, %v741_v46  ;;  %v5092_v62 = vcombine.high %v749_v54, %v757_v55  ;;  %v5094_v63 = vcombine.high %v750_v56, %v758_v58  ;;  %v766_v3 = vld [vmem:[%s5509_s10 + $0xfb8] sm:$0xff]  ;;  %v4146_v45 = vsub.s32 (!%p5111_p7), 4, %v5551_v48 }
 0x23b   : > { %v4109_v22 = vadd.f32 %v4069_v9, %v259_v7  ;;  %v5091_v6 = vcombine.low %v749_v54, %v757_v55  ;;  %v5093_v7 = vcombine.low %v750_v56, %v758_v58  ;;  %v5110_v9 = vcombine.high %v766_v3, %v774_v5 }
 0x23c   : > { %v4150_v46 = vsub.s32 (!%p5111_p7), 5, %v5551_v48  ;;  %v4147_v55 = vrot.slane (!%p5111_p7), %v4124_v40, %v4146_v45  ;;  %v4155_v58 = vrot.slane (!%p5111_p7), %v4124_v40, %v4154_v47 }
 0x23d   : > { %3912 = vmatpush1.bf16.msra.mxu0 %v4979_v8  ;;  %4113 = vst [vmem:[#allocation2 + $0x8] sm:$0xff] %v4109_v22  ;;  %3994 = vmatpush1.bf16.msra.mxu1 %v4981_v10  ;;  %v5108_v8 = vcombine.high %v765_v1, %v773_v2  ;;  %v5107_v10 = vcombine.low %v765_v1, %v773_v2 }
 0x23e   : > { %3913 = vmatprep.subr.bf16.mxu0 %v4996_v11  ;;  %3995 = vmatprep.subr.bf16.mxu1 %v4998_v4  ;;  %v5109_v11 = vcombine.low %v766_v3, %v774_v5  ;;  %v4151_v56 = vrot.slane (!%p5111_p7), %v4124_v40, %v4150_v46 }
 0x240   : > { %v4209_v2 = vcombine.low (!%p5111_p7), %v4147_v55, %v4151_v56 }
 0x241   : > { %3914 = vmatpush1.bf16.msra.mxu0 %v4995_v16  ;;  %3996 = vmatpush1.bf16.msra.mxu1 %v4997_v17 }
 0x242   : > { %3915 = vmatprep.subr.bf16.mxu0 %v5012_v18  ;;  %3997 = vmatprep.subr.bf16.mxu1 %v5014_v19 }
 0x245   : > { %3916 = vmatpush1.bf16.msra.mxu0 %v5011_v24  ;;  %3998 = vmatpush1.bf16.msra.mxu1 %v5013_v25 }
 0x246   : > { %3917 = vmatprep.subr.bf16.mxu0 %v5028_v26  ;;  %3999 = vmatprep.subr.bf16.mxu1 %v5030_v27 }
 0x249   : > { %3918 = vmatpush1.bf16.msra.mxu0 %v5027_v32  ;;  %4000 = vmatpush1.bf16.msra.mxu1 %v5029_v34 }
 0x24a   : > { %3919 = vmatprep.subr.bf16.mxu0 %v5044_v35  ;;  %4001 = vmatprep.subr.bf16.mxu1 %v5046_v36 }
 0x24d   : > { %3920 = vmatpush1.bf16.msra.mxu0 %v5043_v41  ;;  %4002 = vmatpush1.bf16.msra.mxu1 %v5045_v42  ;;  %v4130_v41 = vsub.s32 (!%p5111_p7), 0, %v5551_v48  ;;  %v4134_v42 = vsub.s32 (!%p5111_p7), 1, %v5551_v48 }
 0x24e   : > { %3921 = vmatprep.subr.bf16.mxu0 %v5060_v43  ;;  %4003 = vmatprep.subr.bf16.mxu1 %v5062_v44  ;;  %v4138_v43 = vsub.s32 (!%p5111_p7), 2, %v5551_v48  ;;  %v4142_v44 = vsub.s32 (!%p5111_p7), 3, %v5551_v48 }
 0x24f   : > { %v4131_v49 = vrot.slane (!%p5111_p7), %v4124_v40, %v4130_v41 }
 0x250   : > { %v4143_v54 = vrot.slane (!%p5111_p7), %v4124_v40, %v4142_v44 }
 0x251   : > { %3922 = vmatpush1.bf16.msra.mxu0 %v5059_v50  ;;  %4004 = vmatpush1.bf16.msra.mxu1 %v5061_v51  ;;  %v4135_v50 = vrot.slane (!%p5111_p7), %v4124_v40, %v4134_v42  ;;  %v4139_v51 = vrot.slane (!%p5111_p7), %v4124_v40, %v4138_v43 }
 0x252   : > { %3923 = vmatprep.subr.bf16.mxu0 %v5076_v52  ;;  %4005 = vmatprep.subr.bf16.mxu1 %v5078_v53  ;;  %v4158_v52 = vsub.s32 (!%p5111_p7), 7, %v5551_v48  ;;  %v4125_v53 = vld [vmem:[#allocation5 + $0x8] sm:$0xff] (!%p5111_p7) }
 0x253   : > { %v4193_v1 = vcombine.low (!%p5111_p7), %v4139_v51, %v4143_v54  ;;  %v4171_v3 = vrot.slane (!%p5111_p7), %v4125_v53, %v4138_v43  ;;  %v4175_v5 = vrot.slane (!%p5111_p7), %v4125_v53, %v4142_v44 }
 0x255   : > { %3924 = vmatpush1.bf16.msra.mxu0 %v5075_v59  ;;  %4006 = vmatpush1.bf16.msra.mxu1 %v5077_v61  ;;  %v4159_v59 = vrot.slane (!%p5111_p7), %v4124_v40, %v4158_v52  ;;  %v4192_v61 = vcombine.low (!%p5111_p7), %v4131_v49, %v4135_v50  ;;  %v4207_v48 = vrot.slane (!%p5111_p7), %v4193_v1, %v5927_v0 }
 0x256   : > { %3925 = vmatprep.subr.bf16.mxu0 %v5092_v62  ;;  %4007 = vmatprep.subr.bf16.mxu1 %v5094_v63  ;;  %v4163_v62 = vrot.slane (!%p5111_p7), %v4125_v53, %v4130_v41  ;;  %v4167_v63 = vrot.slane (!%p5111_p7), %v4125_v53, %v4134_v42 }
 0x259   : > { %3926 = vmatpush1.bf16.msra.mxu0 %v5091_v6  ;;  %4008 = vmatpush1.bf16.msra.mxu1 %v5093_v7  ;;  %v4200_v6 = vrot.slane (!%p5111_p7), %v4192_v61, %v5927_v0  ;;  %v4210_v7 = vcombine.low (!%p5111_p7), %v4155_v58, %v4159_v59 }
 0x25a   : > { %3927 = vmatprep.subr.bf16.mxu0 %v5108_v8  ;;  %4009 = vmatprep.subr.bf16.mxu1 %v5110_v9  ;;  %v4179_v8 = vrot.slane (!%p5111_p7), %v4125_v53, %v4146_v45  ;;  %v4183_v9 = vrot.slane (!%p5111_p7), %v4125_v53, %v4150_v46 }
 0x25d   : > { %3928 = vmatpush1.bf16.msra.mxu0 %v5107_v10  ;;  %4010 = vmatpush1.bf16.msra.mxu1 %v5109_v11  ;;  %v4217_v10 = vrot.slane (!%p5111_p7), %v4209_v2, %v5927_v0  ;;  %v4187_v11 = vrot.slane (!%p5111_p7), %v4125_v53, %v4154_v47 }
 0x260   : > { %3930 = vmatmul.mubr.bf16.vlgmr.msra.gmra.mrb[12].mxu0 %v5694_v33  ;;  %4012 = vmatmul.mubr.bf16.vlgmr.msra.gmra.mrb[12].mxu1 %v5694_v33 }
 0x2b3   : > { %v3767_v4 = vpop.f32.mrb[8].mxu0  ;;  %v3849_v12 = vpop.f32.mrb[8].mxu1 }
 0x2b4   : > { %v3769_v13 = vpop.f32.mrb[9].mxu0  ;;  %v3851_v14 = vpop.f32.mrb[9].mxu1 }
 0x2b5   : > { %v4070_v22 = vcombine.low %v3767_v4, %v3769_v13  ;;  %v3771_v15 = vpop.f32.mrb[10].mxu0  ;;  %v4071_v16 = vcombine.low %v3849_v12, %v3851_v14  ;;  %v3853_v17 = vpop.f32.mrb[10].mxu1  ;;  %v4191_v4 = vrot.slane (!%p5111_p7), %v4125_v53, %v4158_v52  ;;  %v4120_v12 = vld [vmem:[#allocation2] sm:$0xff] (!%p5111_p7)  ;;  %v4224_v13 = vrot.slane (!%p5111_p7), %v4210_v7, %v5927_v0 }
 0x2b6   : > { %v3772_v18 = vpop.f32.mrb[11].mxu0  ;;  %v3854_v20 = vpop.f32.mrb[11].mxu1  ;;  %v4227_v14 = vcombine.low (!%p5111_p7), %v4171_v3, %v4175_v5  ;;  %v4243_v15 = vcombine.low (!%p5111_p7), %v4179_v8, %v4183_v9  ;;  %v4208_v17 = vcombine.low (!%p5111_p7), %v4200_v6, %v4207_v48 }
 0x2b7   : > { %v4078_v19 = vrot.slane %v4070_v22, %v5927_v0  ;;  %v4085_v21 = vrot.slane %v4071_v16, %v5927_v0  ;;  %v4226_v22 = vcombine.low (!%p5111_p7), %v4163_v62, %v4167_v63  ;;  %v4121_v16 = vld [vmem:[#allocation2 + $0x8] sm:$0xff] (!%p5111_p7)  ;;  %v4244_v18 = vcombine.low (!%p5111_p7), %v4187_v11, %v4191_v4 }
 0x2b9   : > { %v4086_v23 = vcombine.low %v4078_v19, %v4085_v21  ;;  %v4225_v19 = vcombine.low (!%p5111_p7), %v4217_v10, %v4224_v13  ;;  %v4234_v20 = vrot.slane (!%p5111_p7), %v4226_v22, %v5927_v0  ;;  %v4241_v21 = vrot.slane (!%p5111_p7), %v4227_v14, %v5927_v0 }
 0x2bb   : > { %v4110_v24 = vadd.f32 %v4086_v23, %v260_v31  ;;  %v4251_v31 = vrot.slane (!%p5111_p7), %v4243_v15, %v5927_v0  ;;  %v4264_v23 = vadd.f32 (!%p5111_p7), %v4208_v17, %v4120_v12 }
 0x2bd   : > { %4114 = vst [vmem:[#allocation2 + $0x10] sm:$0xff] %v4110_v24 }
 0x2c4   : > { %v4122_v24 = vld [vmem:[#allocation2 + $0x10] sm:$0xff] (!%p5111_p7) }
 0x333   : > { %v3931_v25 = vpop.f32.mrb[12].mxu0  ;;  %v4013_v33 = vpop.f32.mrb[12].mxu1 }
 0x334   : > { %v3933_v26 = vpop.f32.mrb[13].mxu0  ;;  %v4015_v28 = vpop.f32.mrb[13].mxu1 }
 0x335   : > { %v4087_v27 = vcombine.low %v3931_v25, %v3933_v26  ;;  %v3935_v29 = vpop.f32.mrb[14].mxu0  ;;  %v4088_v30 = vcombine.low %v4013_v33, %v4015_v28  ;;  %v4017_v60 = vpop.f32.mrb[14].mxu1  ;;  %v4258_v25 = vrot.slane (!%p5111_p7), %v4244_v18, %v5927_v0  ;;  %v4265_v33 = vadd.f32 (!%p5111_p7), %v4225_v19, %v4121_v16 }
 0x336   : > { %v3936_v32 = vpop.f32.mrb[15].mxu0  ;;  %v4018_v35 = vpop.f32.mrb[15].mxu1  ;;  %v4268_v28 = vmax.f32 (!%p5111_p7), %v4264_v23, 0.0 }
 0x337   : > { %v4095_v34 = vrot.slane %v4087_v27, %v5927_v0  ;;  %v4102_v36 = vrot.slane %v4088_v30, %v5927_v0  ;;  %4119 = sbr.rel (%p5111_p7) target bundleno = 858 (0x35a), region = 48  ;;  %v4242_v27 = vcombine.low (!%p5111_p7), %v4234_v20, %v4241_v21  ;;  %v4259_v29 = vcombine.low (!%p5111_p7), %v4251_v31, %v4258_v25 }
 0x338   : > { %v4269_v30 = vmax.f32 (!%p5111_p7), %v4265_v33, 0.0  ;;  %v4276_v32 = vcombine.high (!%p5111_p7), %v4268_v28, %v4268_v28 }
 0x339   : > { %v4103_v38 = vcombine.low %v4095_v34, %v4102_v36  ;;  %v4266_v60 = vadd.f32 (!%p5111_p7), %v4242_v27, %v4122_v24  ;;  %v4283_v34 = vrot.slane (!%p5111_p7), %v4268_v28, %v5927_v0 }
 0x33a   : > { %v4293_v36 = vcombine.high (!%p5111_p7), %v4269_v30, %v4269_v30 }
 0x33b   : > { %v4111_v39 = vadd.f32 %v4103_v38, %v261_v37  ;;  %v4300_v37 = vrot.slane (!%p5111_p7), %v4269_v30, %v5927_v0  ;;  %v4270_v38 = vmax.f32 (!%p5111_p7), %v4266_v60, 0.0  ;;  %v4291_v40 = vcombine.high (!%p5111_p7), %v4283_v34, %v4283_v34 }
 0x33c   : > { %v4307_v42 = vrot.slane (!%p5111_p7), %v4293_v36, %v5927_v0 }
 0x33d   : > { %4115 = vst [vmem:[#allocation2 + $0x18] sm:$0xff] %v4111_v39  ;;  %v4290_v39 = vrot.slane (!%p5111_p7), %v4276_v32, %v5927_v0  ;;  %v4308_v43 = vcombine.high (!%p5111_p7), %v4300_v37, %v4300_v37  ;;  %v4310_v44 = vcombine.high (!%p5111_p7), %v4270_v38, %v4270_v38  ;;  %v4317_v45 = vrot.slane (!%p5111_p7), %v4270_v38, %v5927_v0 }
 0x33e   : > { %v5112_v47 = vpack.c.bf16 %v4291_v40, %v4283_v34  ;;  %v4309_v51 = vcombine.high %v4307_v42, %v4307_v42 }
 0x33f   : > { %v4292_v46 = vcombine.high %v4290_v39, %v4290_v39  ;;  %v5114_v52 = vpack.c.bf16 %v4308_v43, %v4300_v37  ;;  %v4324_v53 = vrot.slane %v4310_v44, %v5927_v0  ;;  %v4325_v54 = vcombine.high %v4317_v45, %v4317_v45 }
 0x340   : > { %v4402_v56 = vrot.slane %v5112_v47, %v5558_v57  ;;  %v5115_v61 = vpack.c.bf16 %v4309_v51, %v4307_v42 }
 0x341   : > { %v5113_v55 = vpack.c.bf16 %v4292_v46, %v4290_v39  ;;  %v4416_v62 = vrot.slane %v5114_v52, %v5558_v57  ;;  %v4326_v63 = vcombine.high %v4324_v53, %v4324_v53  ;;  %v5116_v1 = vpack.c.bf16 %v4325_v54, %v4317_v45 }
 0x342   : > { %v4423_v6 = vrot.slane %v5115_v61, %v5558_v57 }
 0x343   : > { %v4409_v2 = vrot.slane %v5113_v55, %v5558_v57  ;;  %v5117_v7 = vpack.c.bf16 %v4326_v63, %v4324_v53  ;;  %v4451_v8 = vrot.slane %v5116_v1, %v5558_v57 }
 0x344   : > { %v4123_v26 = vld [vmem:[#allocation2 + $0x18] sm:$0xff] }
 0x345   : > { %v4267_v35 = vadd.f32 %v4259_v29, %v4123_v26  ;;  %v4424_v9 = vcombine.low %v4402_v56, %v4409_v2  ;;  %v4458_v11 = vrot.slane %v5117_v7, %v5558_v57 }
 0x347   : > { %v4271_v41 = vmax.f32 %v4267_v35, 0.0  ;;  %v4432_v4 = vrot.slane %v4424_v9, %v5558_v57  ;;  %v4473_v22 = vcombine.low %v4451_v8, %v4458_v11 }
 0x349   : > { %v4327_v49 = vcombine.high %v4271_v41, %v4271_v41  ;;  %v4334_v50 = vrot.slane %v4271_v41, %v5927_v0  ;;  %v4481_v16 = vrot.slane %v4473_v22, %v5558_v57 }
 0x34b   : > { %v4341_v58 = vrot.slane %v4327_v49, %v5927_v0  ;;  %v4342_v59 = vcombine.high %v4334_v50, %v4334_v50  ;;  %v4425_v0 = vcombine.low %v4416_v62, %v4423_v6 }
 0x34d   : > { %v4343_v3 = vcombine.high %v4341_v58, %v4341_v58  ;;  %v5118_v5 = vpack.c.bf16 %v4342_v59, %v4334_v50  ;;  %v4439_v13 = vrot.slane %v4425_v0, %v5558_v57 }
 0x34f   : > { %v5119_v48 = vpack.c.bf16 %v4343_v3, %v4341_v58  ;;  %v4465_v10 = vrot.slane %v5118_v5, %v5558_v57  ;;  %v4440_v15 = vcombine.low %v4432_v4, %v4439_v13 }
 0x351   : > { %v4472_v12 = vrot.slane %v5119_v48, %v5558_v57  ;;  %4492 = vst [vmem:[%s6175_s3] sm:$0xff] %v4440_v15 }
 0x353   : > { %v4474_v14 = vcombine.low %v4465_v10, %v4472_v12 }
 0x355   : > { %v4488_v17 = vrot.slane %v4474_v14, %v5558_v57 }
 0x357   : > { %v4489_v18 = vcombine.low %v4481_v16, %v4488_v17 }
 0x359   : > { %4493 = vst [vmem:[%s6175_s3 + $0x8] sm:$0xff] %v4489_v18 }
 0x35a PF: > { %s17_s17 = sadd.s32 1, %s5341_s17   ;;  %s6191_s12 = smov %s5325_s13 }
 0x35b   : > { %p14_p9 = scmp.ge.s32.totalorder %s17_s17, 21   ;;  %s6192_s13 = smov %s5329_s14 }
 0x35c   : > { %s6193_s14 = smov %s5504_s6  ;;  %s6194_s15 = smov %s5337_s16 }
 0x35d   : > { %s6195_s16 = smov %s6197_s11  ;;  %16 = sbr.rel (!%p14_p9) target bundleno = 5 (0x5), region = 88 }
 0x364   :  { %4514 = vsyncpa [#allocation4], 1 }
 0x365   :  { %4516 = vsyncpa [#allocation4 + $0x1], 1 }
 0x366   :  { %4517 = vsyncpa [#allocation6], 1 }

// kernel: forward.3
= control target key start
LH: loop header
LB: loop body
LE: loop exit
PB: predicated region body
PF: predicated region fallthrough
CT: control target
= control target key end

     0   :  { %8 = vsyncpa [#allocation4], 0  ;;  %s5016_s12 = smov 0   ;;  %s5018_s13 = smov 0   ;;  %s5695_s0 = inlined_call_operand.vmem [shape: bf16[2,2048], index: 0, kind: input, shape index: {}]   ;;  %s5696_s1 = inlined_call_operand.vmem [shape: bf16[2048,2048], index: 1, kind: input, shape index: {}]   ;;  %s5697_s2 = inlined_call_operand.vmem [shape: f32[1,2048], index: 2, kind: input, shape index: {}]   ;;  %s5698_s3 = inlined_call_operand.hbm [shape: f32[2,2048], index: 3, kind: output, shape index: {}]  }
   0x1   :  { %s5020_s14 = smov 0  }
   0x2 LB: > { %s4343_s15 = sadd.s32 4294967295, %s4990_s14   ;;  %s23_s16 = sadd.s32 1, %s4986_s13  ;;  %s4990_s14 = sphi %s5020_s14, %s14_s14   ;;  %s4986_s13 = sphi %s5018_s13, %s5701_s13   ;;  %s4982_s12 = sphi %s5016_s12, %s5700_s12  }
   0x3   : > { %p24_p0 = scmp.ge.s32.totalorder %s23_s16, 4  ;;  %p4347_p1 = scmp.ge.s32.totalorder %s4990_s14, 1 }
   0x4   : > { %p179_p2 = scmp.lt.s32.totalorder %s4990_s14, 5 }
   0x5   : > { %s5703_s16 = smov (%p24_p0, %s23_s16), 0 }
   0x6   : > { %p180_p3 = pnand %p4347_p1, %p179_p2 }
   0x7   : > { %s4348_s17 = sshll.u32 (!%p180_p3), %s4982_s12, 2  ;;  %s4349_s18 = sshll.u32 (!%p180_p3), %s4982_s12, 6 }
   0x8   : > { %183 = sbr.rel (%p180_p3) target bundleno = 797 (0x31d), region = 32  ;;  %p212_p4 = scmp.lt.s32.totalorder (!%p180_p3), %s4348_s17, 15 }
   0x9   : > { %p218_p5 = scmp.lt.s32.totalorder (!%p180_p3), %s4349_s18, 255  ;;  %p4352_p6 = scmp.ne.s32.totalorder (!%p180_p3), %s4982_s12, 0 }
   0xf   : > { %s5705_s17 = smov (!%p212_p4, %s4348_s17), 15  ;;  %s5707_s18 = smov (!%p218_p5, %s4349_s18), 255 }
  0x10   : > { %s214_s21 = scalar_lea.vmem %s5695_s0, %s5705_s17  ;;  %s4871_s22 = sshll.u32 %s5707_s18, 6  ;;  %v4992_v0 = vmov (!%p4352_p6), 0.0  }
  0x11   : > { %s5048_s25 = scalar_lea.vmem %s5696_s1, %s4871_s22  ;;  %237 = sbr.rel (%p4352_p6) target bundleno = 24 (0x18), region = 36  ;;  %238 = vst [vmem:[#allocation2] sm:$0xff] (!%p4352_p6), %v4992_v0  ;;  %239 = vst [vmem:[#allocation2 + $0x8] sm:$0xff] (!%p4352_p6), %v4992_v0 }
  0x12   : > { %240 = vst [vmem:[#allocation2 + $0x10] sm:$0xff] (!%p4352_p6), %v4992_v0  ;;  %241 = vst [vmem:[#allocation2 + $0x18] sm:$0xff] (!%p4352_p6), %v4992_v0 }
  0x18 PF: > { %v247_v1 = vld [vmem:[%s5048_s25] sm:$0xff]  ;;  %v248_v3 = vld [vmem:[%s5048_s25 + $0x8] sm:$0xff]  ;;  %v4993_v36 = vmov 1966171168   ;;  %v771_v38 = vlaneseq  ;;  %p4866_p7 = scmp.ne.s32.totalorder %s4982_s12, 3 }
  0x19   : > { %v255_v2 = vld [vmem:[%s5048_s25 + $0x40] sm:$0xff]  ;;  %v256_v5 = vld [vmem:[%s5048_s25 + $0x48] sm:$0xff]  ;;  %v769_v37 = vunpack.c.l.s4 %v4993_v36 }
  0x1a   : > { %v4355_v4 = vcombine.high %v247_v1, %v255_v2  ;;  %v4354_v6 = vcombine.low %v247_v1, %v255_v2  ;;  %v263_v7 = vld [vmem:[%s5048_s25 + $0x80] sm:$0xff]  ;;  %v4357_v9 = vcombine.high %v248_v3, %v256_v5  ;;  %v4356_v10 = vcombine.low %v248_v3, %v256_v5  ;;  %v264_v12 = vld [vmem:[%s5048_s25 + $0x88] sm:$0xff] }
  0x1b   : > { %v271_v8 = vld [vmem:[%s5048_s25 + $0xc0] sm:$0xff]  ;;  %v272_v13 = vld [vmem:[%s5048_s25 + $0xc8] sm:$0xff]  ;;  %v770_v47 = vunpack.c.0.s8 %v769_v37  ;;  %v5075_v48 = vshrl.u32 %v771_v38, 7 }
  0x1c   : > { %v4371_v11 = vcombine.high %v263_v7, %v271_v8  ;;  %v279_v14 = vld [vmem:[%s5048_s25 + $0x100] sm:$0xff]  ;;  %3348 = vmatprep.subr.bf16.mxu0 %v4355_v4  ;;  %v4373_v15 = vcombine.high %v264_v12, %v272_v13  ;;  %v280_v17 = vld [vmem:[%s5048_s25 + $0x108] sm:$0xff]  ;;  %3430 = vmatprep.subr.bf16.mxu1 %v4357_v9  ;;  %v4370_v19 = vcombine.low %v263_v7, %v271_v8 }
  0x1d   : > { %v287_v16 = vld [vmem:[%s5048_s25 + $0x140] sm:$0xff]  ;;  %v288_v18 = vld [vmem:[%s5048_s25 + $0x148] sm:$0xff]  ;;  %3349 = vmatpush1.bf16.msra.mxu0 %v4354_v6  ;;  %3431 = vmatpush1.bf16.msra.mxu1 %v4356_v10  ;;  %v4372_v20 = vcombine.low %v264_v12, %v272_v13  ;;  %v5082_v57 = vsub.s32 %v770_v47, %v5075_v48 }
  0x1e   : > { %3350 = vmatprep.subr.bf16.mxu0 %v4371_v11  ;;  %v4387_v21 = vcombine.high %v279_v14, %v287_v16  ;;  %3432 = vmatprep.subr.bf16.mxu1 %v4373_v15  ;;  %v4389_v22 = vcombine.high %v280_v17, %v288_v18  ;;  %v295_v23 = vld [vmem:[%s5048_s25 + $0x180] sm:$0xff]  ;;  %v296_v25 = vld [vmem:[%s5048_s25 + $0x188] sm:$0xff]  ;;  %v4386_v27 = vcombine.low %v279_v14, %v287_v16 }
  0x1f   : > { %v303_v24 = vld [vmem:[%s5048_s25 + $0x1c0] sm:$0xff]  ;;  %v304_v26 = vld [vmem:[%s5048_s25 + $0x1c8] sm:$0xff]  ;;  %v4388_v28 = vcombine.low %v280_v17, %v288_v18 }
  0x20   : > { %v4403_v29 = vcombine.high %v295_v23, %v303_v24  ;;  %v4405_v30 = vcombine.high %v296_v25, %v304_v26  ;;  %v311_v31 = vld [vmem:[%s5048_s25 + $0x200] sm:$0xff]  ;;  %v312_v33 = vld [vmem:[%s5048_s25 + $0x208] sm:$0xff]  ;;  %v4402_v35 = vcombine.low %v295_v23, %v303_v24  ;;  %v4404_v39 = vcombine.low %v296_v25, %v304_v26 }
  0x21   : > { %3351 = vmatpush1.bf16.msra.mxu0 %v4370_v19  ;;  %3433 = vmatpush1.bf16.msra.mxu1 %v4372_v20  ;;  %v319_v32 = vld [vmem:[%s5048_s25 + $0x240] sm:$0xff]  ;;  %v320_v34 = vld [vmem:[%s5048_s25 + $0x248] sm:$0xff] }
  0x22   : > { %3352 = vmatprep.subr.bf16.mxu0 %v4387_v21  ;;  %3434 = vmatprep.subr.bf16.mxu1 %v4389_v22  ;;  %v4419_v40 = vcombine.high %v311_v31, %v319_v32  ;;  %v4421_v41 = vcombine.high %v312_v33, %v320_v34  ;;  %v327_v42 = vld [vmem:[%s5048_s25 + $0x280] sm:$0xff]  ;;  %v328_v44 = vld [vmem:[%s5048_s25 + $0x288] sm:$0xff]  ;;  %v4418_v46 = vcombine.low %v311_v31, %v319_v32 }
  0x23   : > { %v335_v43 = vld [vmem:[%s5048_s25 + $0x2c0] sm:$0xff]  ;;  %v336_v45 = vld [vmem:[%s5048_s25 + $0x2c8] sm:$0xff]  ;;  %v4420_v49 = vcombine.low %v312_v33, %v320_v34 }
  0x24   : > { %v4435_v50 = vcombine.high %v327_v42, %v335_v43  ;;  %v4437_v51 = vcombine.high %v328_v44, %v336_v45  ;;  %v343_v52 = vld [vmem:[%s5048_s25 + $0x300] sm:$0xff]  ;;  %v344_v54 = vld [vmem:[%s5048_s25 + $0x308] sm:$0xff]  ;;  %v4434_v56 = vcombine.low %v327_v42, %v335_v43  ;;  %v4436_v58 = vcombine.low %v328_v44, %v336_v45 }
  0x25   : > { %3353 = vmatpush1.bf16.msra.mxu0 %v4386_v27  ;;  %3435 = vmatpush1.bf16.msra.mxu1 %v4388_v28  ;;  %v351_v53 = vld [vmem:[%s5048_s25 + $0x340] sm:$0xff]  ;;  %v352_v55 = vld [vmem:[%s5048_s25 + $0x348] sm:$0xff] }
  0x26   : > { %3354 = vmatprep.subr.bf16.mxu0 %v4403_v29  ;;  %3436 = vmatprep.subr.bf16.mxu1 %v4405_v30  ;;  %v4451_v59 = vcombine.high %v343_v52, %v351_v53  ;;  %v5089_v60 = vld.sshfl [vmem:[%s214_s21] sm:$0x33 pattern:$0x75316420]  ;;  %v4453_v61 = vcombine.high %v344_v54, %v352_v55  ;;  %v360_v1 = vld [vmem:[%s5048_s25 + $0x388] sm:$0xff]  ;;  %v4450_v3 = vcombine.low %v343_v52, %v351_v53 }
  0x27   : > { %v359_v62 = vld [vmem:[%s5048_s25 + $0x380] sm:$0xff]  ;;  %v767_v0 = vcombine.high %v5089_v60, %v5089_v60  ;;  %v368_v2 = vld [vmem:[%s5048_s25 + $0x3c8] sm:$0xff]  ;;  %v4452_v5 = vcombine.low %v344_v54, %v352_v55 }
  0x28   : > { %v367_v63 = vld [vmem:[%s5048_s25 + $0x3c0] sm:$0xff]  ;;  %v4469_v7 = vcombine.high %v360_v1, %v368_v2  ;;  %v376_v10 = vld [vmem:[%s5048_s25 + $0x408] sm:$0xff]  ;;  %v4468_v13 = vcombine.low %v360_v1, %v368_v2 }
  0x29   : > { %3355 = vmatpush1.bf16.msra.mxu0 %v4402_v35  ;;  %3437 = vmatpush1.bf16.msra.mxu1 %v4404_v39  ;;  %v5098_v4 = vrot.slane %v767_v0, %v5082_v57  ;;  %v4467_v6 = vcombine.high %v359_v62, %v367_v63  ;;  %v375_v8 = vld [vmem:[%s5048_s25 + $0x400] sm:$0xff]  ;;  %v384_v11 = vld [vmem:[%s5048_s25 + $0x448] sm:$0xff]  ;;  %v4466_v12 = vcombine.low %v359_v62, %v367_v63 }
  0x2a   : > { %3356 = vmatprep.subr.bf16.mxu0 %v4419_v40  ;;  %3438 = vmatprep.subr.bf16.mxu1 %v4421_v41  ;;  %v383_v9 = vld [vmem:[%s5048_s25 + $0x440] sm:$0xff]  ;;  %v4485_v15 = vcombine.high %v376_v10, %v384_v11  ;;  %v392_v18 = vld [vmem:[%s5048_s25 + $0x488] sm:$0xff]  ;;  %v4484_v21 = vcombine.low %v376_v10, %v384_v11 }
  0x2b   : > { %3380 = vmatprep.mubr.bf16.mxu0 %v5098_v4  ;;  %3462 = vmatprep.mubr.bf16.mxu1 %v5098_v4  ;;  %v4483_v14 = vcombine.high %v375_v8, %v383_v9  ;;  %v391_v16 = vld [vmem:[%s5048_s25 + $0x480] sm:$0xff]  ;;  %v400_v19 = vld [vmem:[%s5048_s25 + $0x4c8] sm:$0xff]  ;;  %v4482_v20 = vcombine.low %v375_v8, %v383_v9 }
  0x2c   : > { %v399_v17 = vld [vmem:[%s5048_s25 + $0x4c0] sm:$0xff]  ;;  %v4501_v23 = vcombine.high %v392_v18, %v400_v19  ;;  %v408_v26 = vld [vmem:[%s5048_s25 + $0x508] sm:$0xff]  ;;  %v4500_v29 = vcombine.low %v392_v18, %v400_v19 }
  0x2d   : > { %3357 = vmatpush1.bf16.msra.mxu0 %v4418_v46  ;;  %3439 = vmatpush1.bf16.msra.mxu1 %v4420_v49  ;;  %v4499_v22 = vcombine.high %v391_v16, %v399_v17  ;;  %v407_v24 = vld [vmem:[%s5048_s25 + $0x500] sm:$0xff]  ;;  %v416_v27 = vld [vmem:[%s5048_s25 + $0x548] sm:$0xff]  ;;  %v4498_v28 = vcombine.low %v391_v16, %v399_v17 }
  0x2e   : > { %3358 = vmatprep.subr.bf16.mxu0 %v4435_v50  ;;  %3440 = vmatprep.subr.bf16.mxu1 %v4437_v51  ;;  %v415_v25 = vld [vmem:[%s5048_s25 + $0x540] sm:$0xff]  ;;  %v4517_v31 = vcombine.high %v408_v26, %v416_v27  ;;  %v424_v34 = vld [vmem:[%s5048_s25 + $0x588] sm:$0xff]  ;;  %v4516_v37 = vcombine.low %v408_v26, %v416_v27 }
  0x2f   : > { %v4515_v30 = vcombine.high %v407_v24, %v415_v25  ;;  %v423_v32 = vld [vmem:[%s5048_s25 + $0x580] sm:$0xff]  ;;  %v432_v35 = vld [vmem:[%s5048_s25 + $0x5c8] sm:$0xff]  ;;  %v4514_v36 = vcombine.low %v407_v24, %v415_v25 }
  0x30   : > { %v431_v33 = vld [vmem:[%s5048_s25 + $0x5c0] sm:$0xff]  ;;  %v4533_v39 = vcombine.high %v424_v34, %v432_v35  ;;  %v440_v42 = vld [vmem:[%s5048_s25 + $0x608] sm:$0xff]  ;;  %v4532_v45 = vcombine.low %v424_v34, %v432_v35 }
  0x31   : > { %3359 = vmatpush1.bf16.msra.mxu0 %v4434_v56  ;;  %3441 = vmatpush1.bf16.msra.mxu1 %v4436_v58  ;;  %v4531_v38 = vcombine.high %v423_v32, %v431_v33  ;;  %v439_v40 = vld [vmem:[%s5048_s25 + $0x600] sm:$0xff]  ;;  %v448_v43 = vld [vmem:[%s5048_s25 + $0x648] sm:$0xff]  ;;  %v4530_v44 = vcombine.low %v423_v32, %v431_v33 }
  0x32   : > { %3360 = vmatprep.subr.bf16.mxu0 %v4451_v59  ;;  %3442 = vmatprep.subr.bf16.mxu1 %v4453_v61  ;;  %v447_v41 = vld [vmem:[%s5048_s25 + $0x640] sm:$0xff]  ;;  %v4549_v47 = vcombine.high %v440_v42, %v448_v43  ;;  %v456_v51 = vld [vmem:[%s5048_s25 + $0x688] sm:$0xff]  ;;  %v4548_v54 = vcombine.low %v440_v42, %v448_v43 }
  0x33   : > { %v4547_v46 = vcombine.high %v439_v40, %v447_v41  ;;  %v455_v49 = vld [vmem:[%s5048_s25 + $0x680] sm:$0xff]  ;;  %v464_v52 = vld [vmem:[%s5048_s25 + $0x6c8] sm:$0xff]  ;;  %v4546_v53 = vcombine.low %v439_v40, %v447_v41 }
  0x34   : > { %v463_v50 = vld [vmem:[%s5048_s25 + $0x6c0] sm:$0xff]  ;;  %v4565_v56 = vcombine.high %v456_v51, %v464_v52  ;;  %v472_v61 = vld [vmem:[%s5048_s25 + $0x708] sm:$0xff]  ;;  %v4564_v0 = vcombine.low %v456_v51, %v464_v52 }
  0x35   : > { %3361 = vmatpush1.bf16.msra.mxu0 %v4450_v3  ;;  %3443 = vmatpush1.bf16.msra.mxu1 %v4452_v5  ;;  %v4563_v55 = vcombine.high %v455_v49, %v463_v50  ;;  %v471_v58 = vld [vmem:[%s5048_s25 + $0x700] sm:$0xff]  ;;  %v480_v62 = vld [vmem:[%s5048_s25 + $0x748] sm:$0xff]  ;;  %v4562_v63 = vcombine.low %v455_v49, %v463_v50 }
  0x36   : > { %3362 = vmatprep.subr.bf16.mxu0 %v4467_v6  ;;  %3444 = vmatprep.subr.bf16.mxu1 %v4469_v7  ;;  %v479_v59 = vld [vmem:[%s5048_s25 + $0x740] sm:$0xff]  ;;  %v4581_v2 = vcombine.high %v472_v61, %v480_v62  ;;  %v488_v6 = vld [vmem:[%s5048_s25 + $0x788] sm:$0xff]  ;;  %v4580_v9 = vcombine.low %v472_v61, %v480_v62 }
  0x37   : > { %v4579_v1 = vcombine.high %v471_v58, %v479_v59  ;;  %v487_v3 = vld [vmem:[%s5048_s25 + $0x780] sm:$0xff]  ;;  %v496_v7 = vld [vmem:[%s5048_s25 + $0x7c8] sm:$0xff]  ;;  %v4578_v8 = vcombine.low %v471_v58, %v479_v59 }
  0x38   : > { %v495_v5 = vld [vmem:[%s5048_s25 + $0x7c0] sm:$0xff]  ;;  %v4597_v11 = vcombine.high %v488_v6, %v496_v7  ;;  %v4596_v17 = vcombine.low %v488_v6, %v496_v7  ;;  %v528_v24 = vld [vmem:[%s5048_s25 + $0x8c8] sm:$0xff] }
  0x39   : > { %3363 = vmatpush1.bf16.msra.mxu0 %v4466_v12  ;;  %3445 = vmatpush1.bf16.msra.mxu1 %v4468_v13  ;;  %v4595_v10 = vcombine.high %v487_v3, %v495_v5  ;;  %v503_v12 = vld [vmem:[%s5048_s25 + $0x800] sm:$0xff]  ;;  %v4594_v16 = vcombine.low %v487_v3, %v495_v5 }
  0x3a   : > { %3364 = vmatprep.subr.bf16.mxu0 %v4483_v14  ;;  %3446 = vmatprep.subr.bf16.mxu1 %v4485_v15  ;;  %v511_v13 = vld [vmem:[%s5048_s25 + $0x840] sm:$0xff]  ;;  %v504_v14 = vld [vmem:[%s5048_s25 + $0x808] sm:$0xff] }
  0x3b   : > { %v512_v15 = vld [vmem:[%s5048_s25 + $0x848] sm:$0xff]  ;;  %v4611_v18 = vcombine.high %v503_v12, %v511_v13  ;;  %v4610_v25 = vcombine.low %v503_v12, %v511_v13 }
  0x3c   : > { %v4613_v19 = vcombine.high %v504_v14, %v512_v15  ;;  %v4612_v26 = vcombine.low %v504_v14, %v512_v15 }
  0x3d   : > { %3365 = vmatpush1.bf16.msra.mxu0 %v4482_v20  ;;  %3447 = vmatpush1.bf16.msra.mxu1 %v4484_v21  ;;  %v519_v20 = vld [vmem:[%s5048_s25 + $0x880] sm:$0xff] }
  0x3e   : > { %3366 = vmatprep.subr.bf16.mxu0 %v4499_v22  ;;  %3448 = vmatprep.subr.bf16.mxu1 %v4501_v23  ;;  %v527_v21 = vld [vmem:[%s5048_s25 + $0x8c0] sm:$0xff]  ;;  %v5142_v22 = vrot.slane %v5089_v60, %v5082_v57  ;;  %v520_v23 = vld [vmem:[%s5048_s25 + $0x888] sm:$0xff] }
  0x3f   : > { %v4627_v27 = vcombine.high %v519_v20, %v527_v21  ;;  %v536_v57 = vld [vmem:[%s5048_s25 + $0x908] sm:$0xff]  ;;  %v4626_v32 = vcombine.low %v519_v20, %v527_v21  ;;  %v4628_v33 = vcombine.low %v520_v23, %v528_v24 }
  0x40   : > { %v544_v60 = vld [vmem:[%s5048_s25 + $0x948] sm:$0xff] }
  0x41   : > { %3367 = vmatpush1.bf16.msra.mxu0 %v4498_v28  ;;  %3449 = vmatpush1.bf16.msra.mxu1 %v4500_v29  ;;  %v4629_v28 = vcombine.high %v520_v23, %v528_v24  ;;  %v535_v29 = vld [vmem:[%s5048_s25 + $0x900] sm:$0xff]  ;;  %v4645_v35 = vcombine.high %v536_v57, %v544_v60  ;;  %v4644_v41 = vcombine.low %v536_v57, %v544_v60 }
  0x42   : > { %3368 = vmatprep.subr.bf16.mxu0 %v4515_v30  ;;  %3450 = vmatprep.subr.bf16.mxu1 %v4517_v31  ;;  %v543_v30 = vld [vmem:[%s5048_s25 + $0x940] sm:$0xff]  ;;  %v5150_v31 = vcombine.high %v5098_v4, %v5098_v4 }
  0x43   : > { %v4643_v34 = vcombine.high %v535_v29, %v543_v30  ;;  %v4642_v40 = vcombine.low %v535_v29, %v543_v30 }
  0x45   : > { %3369 = vmatpush1.bf16.msra.mxu0 %v4514_v36  ;;  %3451 = vmatpush1.bf16.msra.mxu1 %v4516_v37  ;;  %v551_v36 = vld [vmem:[%s5048_s25 + $0x980] sm:$0xff] }
  0x46   : > { %3370 = vmatprep.subr.bf16.mxu0 %v4531_v38  ;;  %3452 = vmatprep.subr.bf16.mxu1 %v4533_v39  ;;  %v559_v37 = vld [vmem:[%s5048_s25 + $0x9c0] sm:$0xff]  ;;  %v552_v38 = vld [vmem:[%s5048_s25 + $0x988] sm:$0xff] }
  0x47   : > { %v560_v39 = vld [vmem:[%s5048_s25 + $0x9c8] sm:$0xff]  ;;  %v4659_v42 = vcombine.high %v551_v36, %v559_v37  ;;  %v4658_v49 = vcombine.low %v551_v36, %v559_v37 }
  0x48   : > { %v4661_v43 = vcombine.high %v552_v38, %v560_v39  ;;  %v4660_v50 = vcombine.low %v552_v38, %v560_v39 }
  0x49   : > { %3371 = vmatpush1.bf16.msra.mxu0 %v4530_v44  ;;  %3453 = vmatpush1.bf16.msra.mxu1 %v4532_v45  ;;  %v567_v44 = vld [vmem:[%s5048_s25 + $0xa00] sm:$0xff] }
  0x4a   : > { %3372 = vmatprep.subr.bf16.mxu0 %v4547_v46  ;;  %3454 = vmatprep.subr.bf16.mxu1 %v4549_v47  ;;  %v575_v45 = vld [vmem:[%s5048_s25 + $0xa40] sm:$0xff]  ;;  %v568_v46 = vld [vmem:[%s5048_s25 + $0xa08] sm:$0xff] }
  0x4b   : > { %v576_v47 = vld [vmem:[%s5048_s25 + $0xa48] sm:$0xff]  ;;  %v4675_v51 = vcombine.high %v567_v44, %v575_v45  ;;  %v4674_v58 = vcombine.low %v567_v44, %v575_v45 }
  0x4c   : > { %v4677_v52 = vcombine.high %v568_v46, %v576_v47  ;;  %v4676_v59 = vcombine.low %v568_v46, %v576_v47 }
  0x4d   : > { %3373 = vmatpush1.bf16.msra.mxu0 %v4546_v53  ;;  %3455 = vmatpush1.bf16.msra.mxu1 %v4548_v54  ;;  %v583_v53 = vld [vmem:[%s5048_s25 + $0xa80] sm:$0xff] }
  0x4e   : > { %3374 = vmatprep.subr.bf16.mxu0 %v4563_v55  ;;  %3456 = vmatprep.subr.bf16.mxu1 %v4565_v56  ;;  %v591_v54 = vld [vmem:[%s5048_s25 + $0xac0] sm:$0xff]  ;;  %v584_v55 = vld [vmem:[%s5048_s25 + $0xa88] sm:$0xff] }
  0x4f   : > { %v592_v56 = vld [vmem:[%s5048_s25 + $0xac8] sm:$0xff]  ;;  %v4691_v61 = vcombine.high %v583_v53, %v591_v54  ;;  %v4690_v3 = vcombine.low %v583_v53, %v591_v54 }
  0x50   : > { %v4693_v62 = vcombine.high %v584_v55, %v592_v56  ;;  %v4692_v5 = vcombine.low %v584_v55, %v592_v56 }
  0x51   : > { %3375 = vmatpush1.bf16.msra.mxu0 %v4562_v63  ;;  %3457 = vmatpush1.bf16.msra.mxu1 %v4564_v0  ;;  %v599_v63 = vld [vmem:[%s5048_s25 + $0xb00] sm:$0xff] }
  0x52   : > { %3376 = vmatprep.subr.bf16.mxu0 %v4579_v1  ;;  %3458 = vmatprep.subr.bf16.mxu1 %v4581_v2  ;;  %v607_v0 = vld [vmem:[%s5048_s25 + $0xb40] sm:$0xff]  ;;  %v600_v1 = vld [vmem:[%s5048_s25 + $0xb08] sm:$0xff] }
  0x53   : > { %v608_v2 = vld [vmem:[%s5048_s25 + $0xb48] sm:$0xff]  ;;  %v4707_v6 = vcombine.high %v599_v63, %v607_v0  ;;  %v4706_v12 = vcombine.low %v599_v63, %v607_v0 }
  0x54   : > { %v4709_v7 = vcombine.high %v600_v1, %v608_v2  ;;  %v4708_v13 = vcombine.low %v600_v1, %v608_v2 }
  0x55   : > { %3377 = vmatpush1.bf16.msra.mxu0 %v4578_v8  ;;  %3459 = vmatpush1.bf16.msra.mxu1 %v4580_v9  ;;  %v615_v8 = vld [vmem:[%s5048_s25 + $0xb80] sm:$0xff] }
  0x56   : > { %3378 = vmatprep.subr.bf16.mxu0 %v4595_v10  ;;  %3460 = vmatprep.subr.bf16.mxu1 %v4597_v11  ;;  %v623_v9 = vld [vmem:[%s5048_s25 + $0xbc0] sm:$0xff]  ;;  %v616_v10 = vld [vmem:[%s5048_s25 + $0xb88] sm:$0xff] }
  0x57   : > { %v624_v11 = vld [vmem:[%s5048_s25 + $0xbc8] sm:$0xff]  ;;  %v4723_v14 = vcombine.high %v615_v8, %v623_v9  ;;  %v4722_v20 = vcombine.low %v615_v8, %v623_v9 }
  0x58   : > { %v4725_v15 = vcombine.high %v616_v10, %v624_v11  ;;  %v4724_v21 = vcombine.low %v616_v10, %v624_v11 }
  0x59   : > { %3379 = vmatpush1.bf16.msra.mxu0 %v4594_v16  ;;  %3461 = vmatpush1.bf16.msra.mxu1 %v4596_v17  ;;  %v631_v16 = vld [vmem:[%s5048_s25 + $0xc00] sm:$0xff] }
  0x5a   : > { %3389 = vmatprep.subr.bf16.mxu0 %v4611_v18  ;;  %3471 = vmatprep.subr.bf16.mxu1 %v4613_v19  ;;  %v639_v17 = vld [vmem:[%s5048_s25 + $0xc40] sm:$0xff]  ;;  %v632_v18 = vld [vmem:[%s5048_s25 + $0xc08] sm:$0xff] }
  0x5b   : > { %v640_v19 = vld [vmem:[%s5048_s25 + $0xc48] sm:$0xff]  ;;  %v4739_v23 = vcombine.high %v631_v16, %v639_v17  ;;  %v4738_v29 = vcombine.low %v631_v16, %v639_v17 }
  0x5c   : > { %3381 = vmatmul.mubr.bf16.vlgmr.msra.gmra.mrb[0].mxu0 %v5142_v22  ;;  %3463 = vmatmul.mubr.bf16.vlgmr.msra.gmra.mrb[0].mxu1 %v5142_v22  ;;  %v4741_v24 = vcombine.high %v632_v18, %v640_v19  ;;  %v4740_v30 = vcombine.low %v632_v18, %v640_v19 }
  0x5d   : > { %3390 = vmatpush1.bf16.msra.mxu0 %v4610_v25  ;;  %3472 = vmatpush1.bf16.msra.mxu1 %v4612_v26  ;;  %v647_v25 = vld [vmem:[%s5048_s25 + $0xc80] sm:$0xff] }
  0x5e   : > { %3391 = vmatprep.subr.bf16.mxu0 %v4627_v27  ;;  %3473 = vmatprep.subr.bf16.mxu1 %v4629_v28  ;;  %v655_v26 = vld [vmem:[%s5048_s25 + $0xcc0] sm:$0xff]  ;;  %v648_v27 = vld [vmem:[%s5048_s25 + $0xc88] sm:$0xff] }
  0x5f   : > { %3421 = vmatprep.mubr.bf16.mxu0 %v5150_v31  ;;  %3503 = vmatprep.mubr.bf16.mxu1 %v5150_v31  ;;  %v656_v28 = vld [vmem:[%s5048_s25 + $0xcc8] sm:$0xff]  ;;  %v4755_v57 = vcombine.high %v647_v25, %v655_v26  ;;  %v4754_v36 = vcombine.low %v647_v25, %v655_v26 }
  0x60   : > { %v4757_v60 = vcombine.high %v648_v27, %v656_v28  ;;  %v4756_v37 = vcombine.low %v648_v27, %v656_v28 }
  0x61   : > { %3392 = vmatpush1.bf16.msra.mxu0 %v4626_v32  ;;  %3474 = vmatpush1.bf16.msra.mxu1 %v4628_v33  ;;  %v663_v32 = vld [vmem:[%s5048_s25 + $0xd00] sm:$0xff] }
  0x62   : > { %3393 = vmatprep.subr.bf16.mxu0 %v4643_v34  ;;  %3475 = vmatprep.subr.bf16.mxu1 %v4645_v35  ;;  %v671_v33 = vld [vmem:[%s5048_s25 + $0xd40] sm:$0xff]  ;;  %v664_v34 = vld [vmem:[%s5048_s25 + $0xd08] sm:$0xff] }
  0x63   : > { %v672_v35 = vld [vmem:[%s5048_s25 + $0xd48] sm:$0xff]  ;;  %v4771_v38 = vcombine.high %v663_v32, %v671_v33  ;;  %v4770_v44 = vcombine.low %v663_v32, %v671_v33  ;;  %v274_v32 = vld [vmem:[%s5048_s25 + $0xd8] sm:$0xff] }
  0x64   : > { %v4773_v39 = vcombine.high %v664_v34, %v672_v35  ;;  %v4772_v45 = vcombine.low %v664_v34, %v672_v35 }
  0x65   : > { %3394 = vmatpush1.bf16.msra.mxu0 %v4642_v40  ;;  %3476 = vmatpush1.bf16.msra.mxu1 %v4644_v41  ;;  %v679_v40 = vld [vmem:[%s5048_s25 + $0xd80] sm:$0xff] }
  0x66   : > { %3395 = vmatprep.subr.bf16.mxu0 %v4659_v42  ;;  %3477 = vmatprep.subr.bf16.mxu1 %v4661_v43  ;;  %v687_v41 = vld [vmem:[%s5048_s25 + $0xdc0] sm:$0xff]  ;;  %v680_v42 = vld [vmem:[%s5048_s25 + $0xd88] sm:$0xff] }
  0x67   : > { %v688_v43 = vld [vmem:[%s5048_s25 + $0xdc8] sm:$0xff]  ;;  %v4787_v46 = vcombine.high %v679_v40, %v687_v41  ;;  %v4786_v53 = vcombine.low %v679_v40, %v687_v41  ;;  %v290_v40 = vld [vmem:[%s5048_s25 + $0x158] sm:$0xff] }
  0x68   : > { %v4789_v47 = vcombine.high %v680_v42, %v688_v43  ;;  %v4788_v54 = vcombine.low %v680_v42, %v688_v43 }
  0x69   : > { %3396 = vmatpush1.bf16.msra.mxu0 %v4658_v49  ;;  %3478 = vmatpush1.bf16.msra.mxu1 %v4660_v50  ;;  %v695_v49 = vld [vmem:[%s5048_s25 + $0xe00] sm:$0xff] }
  0x6a   : > { %3397 = vmatprep.subr.bf16.mxu0 %v4675_v51  ;;  %3479 = vmatprep.subr.bf16.mxu1 %v4677_v52  ;;  %v703_v50 = vld [vmem:[%s5048_s25 + $0xe40] sm:$0xff]  ;;  %v696_v51 = vld [vmem:[%s5048_s25 + $0xe08] sm:$0xff] }
  0x6b   : > { %v704_v52 = vld [vmem:[%s5048_s25 + $0xe48] sm:$0xff]  ;;  %v4803_v55 = vcombine.high %v695_v49, %v703_v50  ;;  %v4802_v63 = vcombine.low %v695_v49, %v703_v50  ;;  %v306_v49 = vld [vmem:[%s5048_s25 + $0x1d8] sm:$0xff] }
  0x6c   : > { %v4805_v56 = vcombine.high %v696_v51, %v704_v52  ;;  %v4804_v0 = vcombine.low %v696_v51, %v704_v52 }
  0x6d   : > { %3398 = vmatpush1.bf16.msra.mxu0 %v4674_v58  ;;  %3480 = vmatpush1.bf16.msra.mxu1 %v4676_v59  ;;  %v711_v58 = vld [vmem:[%s5048_s25 + $0xe80] sm:$0xff] }
  0x6e   : > { %3399 = vmatprep.subr.bf16.mxu0 %v4691_v61  ;;  %3481 = vmatprep.subr.bf16.mxu1 %v4693_v62  ;;  %v719_v59 = vld [vmem:[%s5048_s25 + $0xec0] sm:$0xff]  ;;  %v712_v61 = vld [vmem:[%s5048_s25 + $0xe88] sm:$0xff] }
  0x6f   : > { %v720_v62 = vld [vmem:[%s5048_s25 + $0xec8] sm:$0xff]  ;;  %v4819_v1 = vcombine.high %v711_v58, %v719_v59  ;;  %v4818_v8 = vcombine.low %v711_v58, %v719_v59  ;;  %v322_v58 = vld [vmem:[%s5048_s25 + $0x258] sm:$0xff] }
  0x70   : > { %v4821_v2 = vcombine.high %v712_v61, %v720_v62  ;;  %v4820_v9 = vcombine.low %v712_v61, %v720_v62 }
  0x71   : > { %3400 = vmatpush1.bf16.msra.mxu0 %v4690_v3  ;;  %3482 = vmatpush1.bf16.msra.mxu1 %v4692_v5  ;;  %v727_v3 = vld [vmem:[%s5048_s25 + $0xf00] sm:$0xff] }
  0x72   : > { %3401 = vmatprep.subr.bf16.mxu0 %v4707_v6  ;;  %3483 = vmatprep.subr.bf16.mxu1 %v4709_v7  ;;  %v735_v5 = vld [vmem:[%s5048_s25 + $0xf40] sm:$0xff]  ;;  %v728_v6 = vld [vmem:[%s5048_s25 + $0xf08] sm:$0xff] }
  0x73   : > { %v736_v7 = vld [vmem:[%s5048_s25 + $0xf48] sm:$0xff]  ;;  %v4835_v10 = vcombine.high %v727_v3, %v735_v5  ;;  %v4834_v16 = vcombine.low %v727_v3, %v735_v5  ;;  %v338_v3 = vld [vmem:[%s5048_s25 + $0x2d8] sm:$0xff] }
  0x74   : > { %v4837_v11 = vcombine.high %v728_v6, %v736_v7  ;;  %v4836_v17 = vcombine.low %v728_v6, %v736_v7 }
  0x75   : > { %3402 = vmatpush1.bf16.msra.mxu0 %v4706_v12  ;;  %3484 = vmatpush1.bf16.msra.mxu1 %v4708_v13  ;;  %v743_v12 = vld [vmem:[%s5048_s25 + $0xf80] sm:$0xff] }
  0x76   : > { %3403 = vmatprep.subr.bf16.mxu0 %v4723_v14  ;;  %3485 = vmatprep.subr.bf16.mxu1 %v4725_v15  ;;  %v751_v13 = vld [vmem:[%s5048_s25 + $0xfc0] sm:$0xff]  ;;  %v744_v14 = vld [vmem:[%s5048_s25 + $0xf88] sm:$0xff] }
  0x77   : > { %v752_v15 = vld [vmem:[%s5048_s25 + $0xfc8] sm:$0xff]  ;;  %v4851_v18 = vcombine.high %v743_v12, %v751_v13  ;;  %v4850_v25 = vcombine.low %v743_v12, %v751_v13  ;;  %v354_v12 = vld [vmem:[%s5048_s25 + $0x358] sm:$0xff] }
  0x78   : > { %v4853_v19 = vcombine.high %v744_v14, %v752_v15  ;;  %v4852_v26 = vcombine.low %v744_v14, %v752_v15 }
  0x79   : > { %3404 = vmatpush1.bf16.msra.mxu0 %v4722_v20  ;;  %3486 = vmatpush1.bf16.msra.mxu1 %v4724_v21  ;;  %v249_v20 = vld [vmem:[%s5048_s25 + $0x10] sm:$0xff] }
  0x7a   : > { %3405 = vmatprep.subr.bf16.mxu0 %v4739_v23  ;;  %3487 = vmatprep.subr.bf16.mxu1 %v4741_v24  ;;  %v257_v21 = vld [vmem:[%s5048_s25 + $0x50] sm:$0xff]  ;;  %v250_v23 = vld [vmem:[%s5048_s25 + $0x18] sm:$0xff] }
  0x7b   : > { %v258_v24 = vld [vmem:[%s5048_s25 + $0x58] sm:$0xff]  ;;  %v4359_v27 = vcombine.high %v249_v20, %v257_v21  ;;  %v4358_v33 = vcombine.low %v249_v20, %v257_v21 }
  0x7c   : > { %v4361_v28 = vcombine.high %v250_v23, %v258_v24  ;;  %v4360_v34 = vcombine.low %v250_v23, %v258_v24  ;;  %v370_v20 = vld [vmem:[%s5048_s25 + $0x3d8] sm:$0xff] }
  0x7d   : > { %3406 = vmatpush1.bf16.msra.mxu0 %v4738_v29  ;;  %3488 = vmatpush1.bf16.msra.mxu1 %v4740_v30  ;;  %v265_v29 = vld [vmem:[%s5048_s25 + $0x90] sm:$0xff] }
  0x7e   : > { %3407 = vmatprep.subr.bf16.mxu0 %v4755_v57  ;;  %3489 = vmatprep.subr.bf16.mxu1 %v4757_v60  ;;  %v273_v30 = vld [vmem:[%s5048_s25 + $0xd0] sm:$0xff]  ;;  %v5218_v57 = vcombine.high %v5142_v22, %v5142_v22  ;;  %v266_v60 = vld [vmem:[%s5048_s25 + $0x98] sm:$0xff] }
  0x7f   : > { %v4375_v35 = vcombine.high %v265_v29, %v273_v30  ;;  %v4374_v41 = vcombine.low %v265_v29, %v273_v30  ;;  %v4376_v42 = vcombine.low %v266_v60, %v274_v32  ;;  %v386_v29 = vld [vmem:[%s5048_s25 + $0x458] sm:$0xff] }
  0x81   : > { %3408 = vmatpush1.bf16.msra.mxu0 %v4754_v36  ;;  %3490 = vmatpush1.bf16.msra.mxu1 %v4756_v37  ;;  %v4377_v36 = vcombine.high %v266_v60, %v274_v32  ;;  %v281_v37 = vld [vmem:[%s5048_s25 + $0x110] sm:$0xff] }
  0x82   : > { %3409 = vmatprep.subr.bf16.mxu0 %v4771_v38  ;;  %3491 = vmatprep.subr.bf16.mxu1 %v4773_v39  ;;  %v289_v38 = vld [vmem:[%s5048_s25 + $0x150] sm:$0xff]  ;;  %v282_v39 = vld [vmem:[%s5048_s25 + $0x118] sm:$0xff] }
  0x83   : > { %v4391_v43 = vcombine.high %v281_v37, %v289_v38  ;;  %v4390_v50 = vcombine.low %v281_v37, %v289_v38  ;;  %v4392_v51 = vcombine.low %v282_v39, %v290_v40  ;;  %v402_v37 = vld [vmem:[%s5048_s25 + $0x4d8] sm:$0xff] }
  0x85   : > { %3410 = vmatpush1.bf16.msra.mxu0 %v4770_v44  ;;  %3492 = vmatpush1.bf16.msra.mxu1 %v4772_v45  ;;  %v4393_v44 = vcombine.high %v282_v39, %v290_v40  ;;  %v297_v45 = vld [vmem:[%s5048_s25 + $0x190] sm:$0xff] }
  0x86   : > { %3411 = vmatprep.subr.bf16.mxu0 %v4787_v46  ;;  %3493 = vmatprep.subr.bf16.mxu1 %v4789_v47  ;;  %v305_v46 = vld [vmem:[%s5048_s25 + $0x1d0] sm:$0xff]  ;;  %v298_v47 = vld [vmem:[%s5048_s25 + $0x198] sm:$0xff] }
  0x87   : > { %v4407_v52 = vcombine.high %v297_v45, %v305_v46  ;;  %v4406_v59 = vcombine.low %v297_v45, %v305_v46  ;;  %v4408_v61 = vcombine.low %v298_v47, %v306_v49  ;;  %v418_v45 = vld [vmem:[%s5048_s25 + $0x558] sm:$0xff] }
  0x89   : > { %3412 = vmatpush1.bf16.msra.mxu0 %v4786_v53  ;;  %3494 = vmatpush1.bf16.msra.mxu1 %v4788_v54  ;;  %v4409_v53 = vcombine.high %v298_v47, %v306_v49  ;;  %v313_v54 = vld [vmem:[%s5048_s25 + $0x210] sm:$0xff] }
  0x8a   : > { %3413 = vmatprep.subr.bf16.mxu0 %v4803_v55  ;;  %3495 = vmatprep.subr.bf16.mxu1 %v4805_v56  ;;  %v321_v55 = vld [vmem:[%s5048_s25 + $0x250] sm:$0xff]  ;;  %v314_v56 = vld [vmem:[%s5048_s25 + $0x218] sm:$0xff] }
  0x8b   : > { %v4423_v62 = vcombine.high %v313_v54, %v321_v55  ;;  %v4422_v5 = vcombine.low %v313_v54, %v321_v55  ;;  %v4424_v6 = vcombine.low %v314_v56, %v322_v58  ;;  %v434_v54 = vld [vmem:[%s5048_s25 + $0x5d8] sm:$0xff] }
  0x8d   : > { %3414 = vmatpush1.bf16.msra.mxu0 %v4802_v63  ;;  %3496 = vmatpush1.bf16.msra.mxu1 %v4804_v0  ;;  %v4425_v63 = vcombine.high %v314_v56, %v322_v58  ;;  %v329_v0 = vld [vmem:[%s5048_s25 + $0x290] sm:$0xff] }
  0x8e   : > { %3415 = vmatprep.subr.bf16.mxu0 %v4819_v1  ;;  %3497 = vmatprep.subr.bf16.mxu1 %v4821_v2  ;;  %v337_v1 = vld [vmem:[%s5048_s25 + $0x2d0] sm:$0xff]  ;;  %v330_v2 = vld [vmem:[%s5048_s25 + $0x298] sm:$0xff] }
  0x8f   : > { %v4439_v7 = vcombine.high %v329_v0, %v337_v1  ;;  %v4438_v13 = vcombine.low %v329_v0, %v337_v1  ;;  %v4440_v14 = vcombine.low %v330_v2, %v338_v3  ;;  %v450_v0 = vld [vmem:[%s5048_s25 + $0x658] sm:$0xff] }
  0x91   : > { %3416 = vmatpush1.bf16.msra.mxu0 %v4818_v8  ;;  %3498 = vmatpush1.bf16.msra.mxu1 %v4820_v9  ;;  %v4441_v8 = vcombine.high %v330_v2, %v338_v3  ;;  %v345_v9 = vld [vmem:[%s5048_s25 + $0x310] sm:$0xff] }
  0x92   : > { %3417 = vmatprep.subr.bf16.mxu0 %v4835_v10  ;;  %3499 = vmatprep.subr.bf16.mxu1 %v4837_v11  ;;  %v353_v10 = vld [vmem:[%s5048_s25 + $0x350] sm:$0xff]  ;;  %v346_v11 = vld [vmem:[%s5048_s25 + $0x318] sm:$0xff] }
  0x93   : > { %v4455_v15 = vcombine.high %v345_v9, %v353_v10  ;;  %v4454_v21 = vcombine.low %v345_v9, %v353_v10  ;;  %v4456_v23 = vcombine.low %v346_v11, %v354_v12  ;;  %v466_v9 = vld [vmem:[%s5048_s25 + $0x6d8] sm:$0xff] }
  0x95   : > { %3418 = vmatpush1.bf16.msra.mxu0 %v4834_v16  ;;  %3500 = vmatpush1.bf16.msra.mxu1 %v4836_v17  ;;  %v4457_v16 = vcombine.high %v346_v11, %v354_v12  ;;  %v361_v17 = vld [vmem:[%s5048_s25 + $0x390] sm:$0xff] }
  0x96   : > { %3419 = vmatprep.subr.bf16.mxu0 %v4851_v18  ;;  %3501 = vmatprep.subr.bf16.mxu1 %v4853_v19  ;;  %v369_v18 = vld [vmem:[%s5048_s25 + $0x3d0] sm:$0xff]  ;;  %v362_v19 = vld [vmem:[%s5048_s25 + $0x398] sm:$0xff] }
  0x97   : > { %v4471_v24 = vcombine.high %v361_v17, %v369_v18  ;;  %v4470_v30 = vcombine.low %v361_v17, %v369_v18  ;;  %v4472_v60 = vcombine.low %v362_v19, %v370_v20  ;;  %v482_v17 = vld [vmem:[%s5048_s25 + $0x758] sm:$0xff] }
  0x99   : > { %3420 = vmatpush1.bf16.msra.mxu0 %v4850_v25  ;;  %3502 = vmatpush1.bf16.msra.mxu1 %v4852_v26  ;;  %v4473_v25 = vcombine.high %v362_v19, %v370_v20  ;;  %v377_v26 = vld [vmem:[%s5048_s25 + $0x410] sm:$0xff] }
  0x9a   : > { %3512 = vmatprep.subr.bf16.mxu0 %v4359_v27  ;;  %3594 = vmatprep.subr.bf16.mxu1 %v4361_v28  ;;  %v385_v27 = vld [vmem:[%s5048_s25 + $0x450] sm:$0xff]  ;;  %v378_v28 = vld [vmem:[%s5048_s25 + $0x418] sm:$0xff] }
  0x9b   : > { %v4487_v32 = vcombine.high %v377_v26, %v385_v27  ;;  %v4486_v38 = vcombine.low %v377_v26, %v385_v27  ;;  %v4488_v39 = vcombine.low %v378_v28, %v386_v29  ;;  %v498_v26 = vld [vmem:[%s5048_s25 + $0x7d8] sm:$0xff] }
  0x9c   : > { %3422 = vmatmul.mubr.bf16.vlgmr.msra.gmra.mrb[0].mxu0 %v5218_v57  ;;  %3504 = vmatmul.mubr.bf16.vlgmr.msra.gmra.mrb[0].mxu1 %v5218_v57 }
  0x9d   : > { %3513 = vmatpush1.bf16.msra.mxu0 %v4358_v33  ;;  %3595 = vmatpush1.bf16.msra.mxu1 %v4360_v34  ;;  %v4489_v33 = vcombine.high %v378_v28, %v386_v29  ;;  %v393_v34 = vld [vmem:[%s5048_s25 + $0x490] sm:$0xff] }
  0x9e   : > { %3514 = vmatprep.subr.bf16.mxu0 %v4375_v35  ;;  %3596 = vmatprep.subr.bf16.mxu1 %v4377_v36  ;;  %v401_v35 = vld [vmem:[%s5048_s25 + $0x4d0] sm:$0xff]  ;;  %v394_v36 = vld [vmem:[%s5048_s25 + $0x498] sm:$0xff] }
  0x9f   : > { %3544 = vmatprep.mubr.bf16.mxu0 %v5098_v4  ;;  %3626 = vmatprep.mubr.bf16.mxu1 %v5098_v4  ;;  %v4503_v40 = vcombine.high %v393_v34, %v401_v35  ;;  %v4502_v46 = vcombine.low %v393_v34, %v401_v35  ;;  %v4504_v47 = vcombine.low %v394_v36, %v402_v37  ;;  %v514_v34 = vld [vmem:[%s5048_s25 + $0x858] sm:$0xff] }
  0xa1   : > { %3515 = vmatpush1.bf16.msra.mxu0 %v4374_v41  ;;  %3597 = vmatpush1.bf16.msra.mxu1 %v4376_v42  ;;  %v4505_v41 = vcombine.high %v394_v36, %v402_v37  ;;  %v409_v42 = vld [vmem:[%s5048_s25 + $0x510] sm:$0xff] }
  0xa2   : > { %3516 = vmatprep.subr.bf16.mxu0 %v4391_v43  ;;  %3598 = vmatprep.subr.bf16.mxu1 %v4393_v44  ;;  %v417_v43 = vld [vmem:[%s5048_s25 + $0x550] sm:$0xff]  ;;  %v410_v44 = vld [vmem:[%s5048_s25 + $0x518] sm:$0xff] }
  0xa3   : > { %v4519_v49 = vcombine.high %v409_v42, %v417_v43  ;;  %v4518_v55 = vcombine.low %v409_v42, %v417_v43  ;;  %v4520_v56 = vcombine.low %v410_v44, %v418_v45  ;;  %v530_v42 = vld [vmem:[%s5048_s25 + $0x8d8] sm:$0xff] }
  0xa5   : > { %3517 = vmatpush1.bf16.msra.mxu0 %v4390_v50  ;;  %3599 = vmatpush1.bf16.msra.mxu1 %v4392_v51  ;;  %v4521_v50 = vcombine.high %v410_v44, %v418_v45  ;;  %v425_v51 = vld [vmem:[%s5048_s25 + $0x590] sm:$0xff] }
  0xa6   : > { %3518 = vmatprep.subr.bf16.mxu0 %v4407_v52  ;;  %3600 = vmatprep.subr.bf16.mxu1 %v4409_v53  ;;  %v433_v52 = vld [vmem:[%s5048_s25 + $0x5d0] sm:$0xff]  ;;  %v426_v53 = vld [vmem:[%s5048_s25 + $0x598] sm:$0xff] }
  0xa7   : > { %v4535_v58 = vcombine.high %v425_v51, %v433_v52  ;;  %v4534_v1 = vcombine.low %v425_v51, %v433_v52  ;;  %v4536_v2 = vcombine.low %v426_v53, %v434_v54  ;;  %v546_v51 = vld [vmem:[%s5048_s25 + $0x958] sm:$0xff] }
  0xa9   : > { %3519 = vmatpush1.bf16.msra.mxu0 %v4406_v59  ;;  %3601 = vmatpush1.bf16.msra.mxu1 %v4408_v61  ;;  %v4537_v59 = vcombine.high %v426_v53, %v434_v54  ;;  %v441_v61 = vld [vmem:[%s5048_s25 + $0x610] sm:$0xff] }
  0xaa   : > { %3520 = vmatprep.subr.bf16.mxu0 %v4423_v62  ;;  %3602 = vmatprep.subr.bf16.mxu1 %v4425_v63  ;;  %v449_v62 = vld [vmem:[%s5048_s25 + $0x650] sm:$0xff]  ;;  %v442_v63 = vld [vmem:[%s5048_s25 + $0x618] sm:$0xff] }
  0xab   : > { %v4551_v3 = vcombine.high %v441_v61, %v449_v62  ;;  %v4550_v10 = vcombine.low %v441_v61, %v449_v62  ;;  %v4552_v11 = vcombine.low %v442_v63, %v450_v0  ;;  %v562_v61 = vld [vmem:[%s5048_s25 + $0x9d8] sm:$0xff] }
  0xad   : > { %3521 = vmatpush1.bf16.msra.mxu0 %v4422_v5  ;;  %3603 = vmatpush1.bf16.msra.mxu1 %v4424_v6  ;;  %v4553_v5 = vcombine.high %v442_v63, %v450_v0  ;;  %v457_v6 = vld [vmem:[%s5048_s25 + $0x690] sm:$0xff] }
  0xae   : > { %3522 = vmatprep.subr.bf16.mxu0 %v4439_v7  ;;  %3604 = vmatprep.subr.bf16.mxu1 %v4441_v8  ;;  %v465_v7 = vld [vmem:[%s5048_s25 + $0x6d0] sm:$0xff]  ;;  %v458_v8 = vld [vmem:[%s5048_s25 + $0x698] sm:$0xff] }
  0xaf   : > { %v4567_v12 = vcombine.high %v457_v6, %v465_v7  ;;  %v4566_v18 = vcombine.low %v457_v6, %v465_v7  ;;  %v4568_v19 = vcombine.low %v458_v8, %v466_v9  ;;  %v578_v6 = vld [vmem:[%s5048_s25 + $0xa58] sm:$0xff] }
  0xb1   : > { %3523 = vmatpush1.bf16.msra.mxu0 %v4438_v13  ;;  %3605 = vmatpush1.bf16.msra.mxu1 %v4440_v14  ;;  %v4569_v13 = vcombine.high %v458_v8, %v466_v9  ;;  %v473_v14 = vld [vmem:[%s5048_s25 + $0x710] sm:$0xff] }
  0xb2   : > { %3524 = vmatprep.subr.bf16.mxu0 %v4455_v15  ;;  %3606 = vmatprep.subr.bf16.mxu1 %v4457_v16  ;;  %v481_v15 = vld [vmem:[%s5048_s25 + $0x750] sm:$0xff]  ;;  %v474_v16 = vld [vmem:[%s5048_s25 + $0x718] sm:$0xff] }
  0xb3   : > { %v4583_v20 = vcombine.high %v473_v14, %v481_v15  ;;  %v4582_v27 = vcombine.low %v473_v14, %v481_v15  ;;  %v4584_v28 = vcombine.low %v474_v16, %v482_v17  ;;  %v594_v14 = vld [vmem:[%s5048_s25 + $0xad8] sm:$0xff] }
  0xb5   : > { %3525 = vmatpush1.bf16.msra.mxu0 %v4454_v21  ;;  %3607 = vmatpush1.bf16.msra.mxu1 %v4456_v23  ;;  %v4585_v21 = vcombine.high %v474_v16, %v482_v17  ;;  %v489_v23 = vld [vmem:[%s5048_s25 + $0x790] sm:$0xff] }
  0xb6   : > { %3526 = vmatprep.subr.bf16.mxu0 %v4471_v24  ;;  %3608 = vmatprep.subr.bf16.mxu1 %v4473_v25  ;;  %v497_v24 = vld [vmem:[%s5048_s25 + $0x7d0] sm:$0xff]  ;;  %v490_v25 = vld [vmem:[%s5048_s25 + $0x798] sm:$0xff] }
  0xb7   : > { %v4599_v29 = vcombine.high %v489_v23, %v497_v24  ;;  %v4598_v35 = vcombine.low %v489_v23, %v497_v24  ;;  %v4600_v36 = vcombine.low %v490_v25, %v498_v26  ;;  %v610_v23 = vld [vmem:[%s5048_s25 + $0xb58] sm:$0xff] }
  0xb9   : > { %3527 = vmatpush1.bf16.msra.mxu0 %v4470_v30  ;;  %3609 = vmatpush1.bf16.msra.mxu1 %v4472_v60  ;;  %v4601_v30 = vcombine.high %v490_v25, %v498_v26  ;;  %v505_v60 = vld [vmem:[%s5048_s25 + $0x810] sm:$0xff] }
  0xba   : > { %3528 = vmatprep.subr.bf16.mxu0 %v4487_v32  ;;  %3610 = vmatprep.subr.bf16.mxu1 %v4489_v33  ;;  %v513_v32 = vld [vmem:[%s5048_s25 + $0x850] sm:$0xff]  ;;  %v506_v33 = vld [vmem:[%s5048_s25 + $0x818] sm:$0xff] }
  0xbb   : > { %v4615_v37 = vcombine.high %v505_v60, %v513_v32  ;;  %v4614_v43 = vcombine.low %v505_v60, %v513_v32  ;;  %v4616_v44 = vcombine.low %v506_v33, %v514_v34  ;;  %v626_v60 = vld [vmem:[%s5048_s25 + $0xbd8] sm:$0xff] }
  0xbd   : > { %3529 = vmatpush1.bf16.msra.mxu0 %v4486_v38  ;;  %3611 = vmatpush1.bf16.msra.mxu1 %v4488_v39  ;;  %v4617_v38 = vcombine.high %v506_v33, %v514_v34  ;;  %v521_v39 = vld [vmem:[%s5048_s25 + $0x890] sm:$0xff] }
  0xbe   : > { %3530 = vmatprep.subr.bf16.mxu0 %v4503_v40  ;;  %3612 = vmatprep.subr.bf16.mxu1 %v4505_v41  ;;  %v529_v40 = vld [vmem:[%s5048_s25 + $0x8d0] sm:$0xff]  ;;  %v522_v41 = vld [vmem:[%s5048_s25 + $0x898] sm:$0xff] }
  0xbf   : > { %v4631_v45 = vcombine.high %v521_v39, %v529_v40  ;;  %v4630_v52 = vcombine.low %v521_v39, %v529_v40  ;;  %v4632_v53 = vcombine.low %v522_v41, %v530_v42  ;;  %v642_v39 = vld [vmem:[%s5048_s25 + $0xc58] sm:$0xff] }
  0xc1   : > { %3531 = vmatpush1.bf16.msra.mxu0 %v4502_v46  ;;  %3613 = vmatpush1.bf16.msra.mxu1 %v4504_v47  ;;  %v4633_v46 = vcombine.high %v522_v41, %v530_v42  ;;  %v537_v47 = vld [vmem:[%s5048_s25 + $0x910] sm:$0xff] }
  0xc2   : > { %3532 = vmatprep.subr.bf16.mxu0 %v4519_v49  ;;  %3614 = vmatprep.subr.bf16.mxu1 %v4521_v50  ;;  %v545_v49 = vld [vmem:[%s5048_s25 + $0x950] sm:$0xff]  ;;  %v538_v50 = vld [vmem:[%s5048_s25 + $0x918] sm:$0xff] }
  0xc3   : > { %v4647_v54 = vcombine.high %v537_v47, %v545_v49  ;;  %v4646_v62 = vcombine.low %v537_v47, %v545_v49  ;;  %v4648_v63 = vcombine.low %v538_v50, %v546_v51  ;;  %v658_v47 = vld [vmem:[%s5048_s25 + $0xcd8] sm:$0xff] }
  0xc5   : > { %3533 = vmatpush1.bf16.msra.mxu0 %v4518_v55  ;;  %3615 = vmatpush1.bf16.msra.mxu1 %v4520_v56  ;;  %v4649_v55 = vcombine.high %v538_v50, %v546_v51  ;;  %v553_v56 = vld [vmem:[%s5048_s25 + $0x990] sm:$0xff] }
  0xc6   : > { %3534 = vmatprep.subr.bf16.mxu0 %v4535_v58  ;;  %3616 = vmatprep.subr.bf16.mxu1 %v4537_v59  ;;  %v561_v58 = vld [vmem:[%s5048_s25 + $0x9d0] sm:$0xff]  ;;  %v554_v59 = vld [vmem:[%s5048_s25 + $0x998] sm:$0xff] }
  0xc7   : > { %v4663_v0 = vcombine.high %v553_v56, %v561_v58  ;;  %v4662_v7 = vcombine.low %v553_v56, %v561_v58  ;;  %v4664_v8 = vcombine.low %v554_v59, %v562_v61  ;;  %v674_v56 = vld [vmem:[%s5048_s25 + $0xd58] sm:$0xff] }
  0xc9   : > { %3535 = vmatpush1.bf16.msra.mxu0 %v4534_v1  ;;  %3617 = vmatpush1.bf16.msra.mxu1 %v4536_v2  ;;  %v4665_v1 = vcombine.high %v554_v59, %v562_v61  ;;  %v569_v2 = vld [vmem:[%s5048_s25 + $0xa10] sm:$0xff] }
  0xca   : > { %3536 = vmatprep.subr.bf16.mxu0 %v4551_v3  ;;  %3618 = vmatprep.subr.bf16.mxu1 %v4553_v5  ;;  %v577_v3 = vld [vmem:[%s5048_s25 + $0xa50] sm:$0xff]  ;;  %v570_v5 = vld [vmem:[%s5048_s25 + $0xa18] sm:$0xff] }
  0xcb   : > { %v4679_v9 = vcombine.high %v569_v2, %v577_v3  ;;  %v4678_v15 = vcombine.low %v569_v2, %v577_v3  ;;  %v4680_v16 = vcombine.low %v570_v5, %v578_v6  ;;  %v690_v2 = vld [vmem:[%s5048_s25 + $0xdd8] sm:$0xff] }
  0xcd   : > { %3537 = vmatpush1.bf16.msra.mxu0 %v4550_v10  ;;  %3619 = vmatpush1.bf16.msra.mxu1 %v4552_v11  ;;  %v4681_v10 = vcombine.high %v570_v5, %v578_v6  ;;  %v585_v11 = vld [vmem:[%s5048_s25 + $0xa90] sm:$0xff] }
  0xce   : > { %3538 = vmatprep.subr.bf16.mxu0 %v4567_v12  ;;  %3620 = vmatprep.subr.bf16.mxu1 %v4569_v13  ;;  %v593_v12 = vld [vmem:[%s5048_s25 + $0xad0] sm:$0xff]  ;;  %v586_v13 = vld [vmem:[%s5048_s25 + $0xa98] sm:$0xff] }
  0xcf   : > { %v4695_v17 = vcombine.high %v585_v11, %v593_v12  ;;  %v4694_v24 = vcombine.low %v585_v11, %v593_v12  ;;  %v4696_v25 = vcombine.low %v586_v13, %v594_v14  ;;  %v706_v11 = vld [vmem:[%s5048_s25 + $0xe58] sm:$0xff] }
  0xd1   : > { %3539 = vmatpush1.bf16.msra.mxu0 %v4566_v18  ;;  %3621 = vmatpush1.bf16.msra.mxu1 %v4568_v19  ;;  %v4697_v18 = vcombine.high %v586_v13, %v594_v14  ;;  %v601_v19 = vld [vmem:[%s5048_s25 + $0xb10] sm:$0xff] }
  0xd2   : > { %3540 = vmatprep.subr.bf16.mxu0 %v4583_v20  ;;  %3622 = vmatprep.subr.bf16.mxu1 %v4585_v21  ;;  %v609_v20 = vld [vmem:[%s5048_s25 + $0xb50] sm:$0xff]  ;;  %v602_v21 = vld [vmem:[%s5048_s25 + $0xb18] sm:$0xff] }
  0xd3   : > { %v4711_v26 = vcombine.high %v601_v19, %v609_v20  ;;  %v4710_v32 = vcombine.low %v601_v19, %v609_v20  ;;  %v4712_v33 = vcombine.low %v602_v21, %v610_v23  ;;  %v722_v19 = vld [vmem:[%s5048_s25 + $0xed8] sm:$0xff] }
  0xd5   : > { %3541 = vmatpush1.bf16.msra.mxu0 %v4582_v27  ;;  %3623 = vmatpush1.bf16.msra.mxu1 %v4584_v28  ;;  %v4713_v27 = vcombine.high %v602_v21, %v610_v23  ;;  %v617_v28 = vld [vmem:[%s5048_s25 + $0xb90] sm:$0xff] }
  0xd6   : > { %3542 = vmatprep.subr.bf16.mxu0 %v4599_v29  ;;  %3624 = vmatprep.subr.bf16.mxu1 %v4601_v30  ;;  %v625_v29 = vld [vmem:[%s5048_s25 + $0xbd0] sm:$0xff]  ;;  %v618_v30 = vld [vmem:[%s5048_s25 + $0xb98] sm:$0xff] }
  0xd7   : > { %v4727_v34 = vcombine.high %v617_v28, %v625_v29  ;;  %v4726_v40 = vcombine.low %v617_v28, %v625_v29  ;;  %v4728_v41 = vcombine.low %v618_v30, %v626_v60  ;;  %v738_v28 = vld [vmem:[%s5048_s25 + $0xf58] sm:$0xff] }
  0xd9   : > { %3543 = vmatpush1.bf16.msra.mxu0 %v4598_v35  ;;  %3625 = vmatpush1.bf16.msra.mxu1 %v4600_v36  ;;  %v4729_v35 = vcombine.high %v618_v30, %v626_v60  ;;  %v633_v36 = vld [vmem:[%s5048_s25 + $0xc10] sm:$0xff] }
  0xda   : > { %3553 = vmatprep.subr.bf16.mxu0 %v4615_v37  ;;  %3635 = vmatprep.subr.bf16.mxu1 %v4617_v38  ;;  %v641_v37 = vld [vmem:[%s5048_s25 + $0xc50] sm:$0xff]  ;;  %v634_v38 = vld [vmem:[%s5048_s25 + $0xc18] sm:$0xff] }
  0xdb   : > { %v4743_v42 = vcombine.high %v633_v36, %v641_v37  ;;  %v4742_v49 = vcombine.low %v633_v36, %v641_v37  ;;  %v4744_v50 = vcombine.low %v634_v38, %v642_v39  ;;  %v754_v36 = vld [vmem:[%s5048_s25 + $0xfd8] sm:$0xff] }
  0xdc   : > { %3545 = vmatmul.mubr.bf16.vlgmr.msra.gmra.mrb[4].mxu0 %v5142_v22  ;;  %3627 = vmatmul.mubr.bf16.vlgmr.msra.gmra.mrb[4].mxu1 %v5142_v22 }
  0xdd   : > { %3554 = vmatpush1.bf16.msra.mxu0 %v4614_v43  ;;  %3636 = vmatpush1.bf16.msra.mxu1 %v4616_v44  ;;  %v4745_v43 = vcombine.high %v634_v38, %v642_v39  ;;  %v649_v44 = vld [vmem:[%s5048_s25 + $0xc90] sm:$0xff] }
  0xde   : > { %3555 = vmatprep.subr.bf16.mxu0 %v4631_v45  ;;  %3637 = vmatprep.subr.bf16.mxu1 %v4633_v46  ;;  %v657_v45 = vld [vmem:[%s5048_s25 + $0xcd0] sm:$0xff]  ;;  %v650_v46 = vld [vmem:[%s5048_s25 + $0xc98] sm:$0xff] }
  0xdf   : > { %3585 = vmatprep.mubr.bf16.mxu0 %v5150_v31  ;;  %3667 = vmatprep.mubr.bf16.mxu1 %v5150_v31  ;;  %v4759_v51 = vcombine.high %v649_v44, %v657_v45  ;;  %v4758_v58 = vcombine.low %v649_v44, %v657_v45  ;;  %v4760_v59 = vcombine.low %v650_v46, %v658_v47  ;;  %v260_v44 = vld [vmem:[%s5048_s25 + $0x68] sm:$0xff] }
  0xe1   : > { %3556 = vmatpush1.bf16.msra.mxu0 %v4630_v52  ;;  %3638 = vmatpush1.bf16.msra.mxu1 %v4632_v53  ;;  %v4761_v52 = vcombine.high %v650_v46, %v658_v47  ;;  %v665_v53 = vld [vmem:[%s5048_s25 + $0xd10] sm:$0xff] }
  0xe2   : > { %3557 = vmatprep.subr.bf16.mxu0 %v4647_v54  ;;  %3639 = vmatprep.subr.bf16.mxu1 %v4649_v55  ;;  %v673_v54 = vld [vmem:[%s5048_s25 + $0xd50] sm:$0xff]  ;;  %v666_v55 = vld [vmem:[%s5048_s25 + $0xd18] sm:$0xff] }
  0xe3   : > { %v4775_v61 = vcombine.high %v665_v53, %v673_v54  ;;  %v4774_v3 = vcombine.low %v665_v53, %v673_v54  ;;  %v4776_v5 = vcombine.low %v666_v55, %v674_v56  ;;  %v276_v53 = vld [vmem:[%s5048_s25 + $0xe8] sm:$0xff] }
  0xe5   : > { %3558 = vmatpush1.bf16.msra.mxu0 %v4646_v62  ;;  %3640 = vmatpush1.bf16.msra.mxu1 %v4648_v63  ;;  %v4777_v62 = vcombine.high %v666_v55, %v674_v56  ;;  %v681_v63 = vld [vmem:[%s5048_s25 + $0xd90] sm:$0xff] }
  0xe6   : > { %3559 = vmatprep.subr.bf16.mxu0 %v4663_v0  ;;  %3641 = vmatprep.subr.bf16.mxu1 %v4665_v1  ;;  %v689_v0 = vld [vmem:[%s5048_s25 + $0xdd0] sm:$0xff]  ;;  %v682_v1 = vld [vmem:[%s5048_s25 + $0xd98] sm:$0xff] }
  0xe7   : > { %v4791_v6 = vcombine.high %v681_v63, %v689_v0  ;;  %v4790_v12 = vcombine.low %v681_v63, %v689_v0  ;;  %v4792_v13 = vcombine.low %v682_v1, %v690_v2  ;;  %v292_v63 = vld [vmem:[%s5048_s25 + $0x168] sm:$0xff] }
  0xe9   : > { %3560 = vmatpush1.bf16.msra.mxu0 %v4662_v7  ;;  %3642 = vmatpush1.bf16.msra.mxu1 %v4664_v8  ;;  %v4793_v7 = vcombine.high %v682_v1, %v690_v2  ;;  %v697_v8 = vld [vmem:[%s5048_s25 + $0xe10] sm:$0xff] }
  0xea   : > { %3561 = vmatprep.subr.bf16.mxu0 %v4679_v9  ;;  %3643 = vmatprep.subr.bf16.mxu1 %v4681_v10  ;;  %v705_v9 = vld [vmem:[%s5048_s25 + $0xe50] sm:$0xff]  ;;  %v698_v10 = vld [vmem:[%s5048_s25 + $0xe18] sm:$0xff] }
  0xeb   : > { %v4807_v14 = vcombine.high %v697_v8, %v705_v9  ;;  %v4806_v20 = vcombine.low %v697_v8, %v705_v9  ;;  %v4808_v21 = vcombine.low %v698_v10, %v706_v11  ;;  %v308_v8 = vld [vmem:[%s5048_s25 + $0x1e8] sm:$0xff] }
  0xed   : > { %3562 = vmatpush1.bf16.msra.mxu0 %v4678_v15  ;;  %3644 = vmatpush1.bf16.msra.mxu1 %v4680_v16  ;;  %v4809_v15 = vcombine.high %v698_v10, %v706_v11  ;;  %v713_v16 = vld [vmem:[%s5048_s25 + $0xe90] sm:$0xff] }
  0xee   : > { %3563 = vmatprep.subr.bf16.mxu0 %v4695_v17  ;;  %3645 = vmatprep.subr.bf16.mxu1 %v4697_v18  ;;  %v721_v17 = vld [vmem:[%s5048_s25 + $0xed0] sm:$0xff]  ;;  %v714_v18 = vld [vmem:[%s5048_s25 + $0xe98] sm:$0xff] }
  0xef   : > { %v4823_v23 = vcombine.high %v713_v16, %v721_v17  ;;  %v4822_v29 = vcombine.low %v713_v16, %v721_v17  ;;  %v4824_v30 = vcombine.low %v714_v18, %v722_v19  ;;  %v324_v16 = vld [vmem:[%s5048_s25 + $0x268] sm:$0xff] }
  0xf1   : > { %3564 = vmatpush1.bf16.msra.mxu0 %v4694_v24  ;;  %3646 = vmatpush1.bf16.msra.mxu1 %v4696_v25  ;;  %v4825_v24 = vcombine.high %v714_v18, %v722_v19  ;;  %v729_v25 = vld [vmem:[%s5048_s25 + $0xf10] sm:$0xff] }
  0xf2   : > { %3565 = vmatprep.subr.bf16.mxu0 %v4711_v26  ;;  %3647 = vmatprep.subr.bf16.mxu1 %v4713_v27  ;;  %v737_v26 = vld [vmem:[%s5048_s25 + $0xf50] sm:$0xff]  ;;  %v730_v27 = vld [vmem:[%s5048_s25 + $0xf18] sm:$0xff] }
  0xf3   : > { %v4839_v60 = vcombine.high %v729_v25, %v737_v26  ;;  %v4838_v37 = vcombine.low %v729_v25, %v737_v26  ;;  %v4840_v38 = vcombine.low %v730_v27, %v738_v28  ;;  %v340_v25 = vld [vmem:[%s5048_s25 + $0x2e8] sm:$0xff] }
  0xf5   : > { %3566 = vmatpush1.bf16.msra.mxu0 %v4710_v32  ;;  %3648 = vmatpush1.bf16.msra.mxu1 %v4712_v33  ;;  %v4841_v32 = vcombine.high %v730_v27, %v738_v28  ;;  %v745_v33 = vld [vmem:[%s5048_s25 + $0xf90] sm:$0xff] }
  0xf6   : > { %3567 = vmatprep.subr.bf16.mxu0 %v4727_v34  ;;  %3649 = vmatprep.subr.bf16.mxu1 %v4729_v35  ;;  %v753_v34 = vld [vmem:[%s5048_s25 + $0xfd0] sm:$0xff]  ;;  %v746_v35 = vld [vmem:[%s5048_s25 + $0xf98] sm:$0xff] }
  0xf7   : > { %v4855_v39 = vcombine.high %v745_v33, %v753_v34  ;;  %v4854_v45 = vcombine.low %v745_v33, %v753_v34  ;;  %v4856_v46 = vcombine.low %v746_v35, %v754_v36  ;;  %v356_v33 = vld [vmem:[%s5048_s25 + $0x368] sm:$0xff] }
  0xf9   : > { %3568 = vmatpush1.bf16.msra.mxu0 %v4726_v40  ;;  %3650 = vmatpush1.bf16.msra.mxu1 %v4728_v41  ;;  %v4857_v40 = vcombine.high %v746_v35, %v754_v36  ;;  %v251_v41 = vld [vmem:[%s5048_s25 + $0x20] sm:$0xff] }
  0xfa   : > { %3569 = vmatprep.subr.bf16.mxu0 %v4743_v42  ;;  %3651 = vmatprep.subr.bf16.mxu1 %v4745_v43  ;;  %v259_v42 = vld [vmem:[%s5048_s25 + $0x60] sm:$0xff]  ;;  %v252_v43 = vld [vmem:[%s5048_s25 + $0x28] sm:$0xff] }
  0xfb   : > { %v4363_v47 = vcombine.high %v251_v41, %v259_v42  ;;  %v4362_v54 = vcombine.low %v251_v41, %v259_v42  ;;  %v4364_v55 = vcombine.low %v252_v43, %v260_v44  ;;  %v372_v41 = vld [vmem:[%s5048_s25 + $0x3e8] sm:$0xff] }
  0xfd   : > { %3570 = vmatpush1.bf16.msra.mxu0 %v4742_v49  ;;  %3652 = vmatpush1.bf16.msra.mxu1 %v4744_v50  ;;  %v4365_v49 = vcombine.high %v252_v43, %v260_v44  ;;  %v267_v50 = vld [vmem:[%s5048_s25 + $0xa0] sm:$0xff] }
  0xfe   : > { %3571 = vmatprep.subr.bf16.mxu0 %v4759_v51  ;;  %3653 = vmatprep.subr.bf16.mxu1 %v4761_v52  ;;  %v275_v51 = vld [vmem:[%s5048_s25 + $0xe0] sm:$0xff]  ;;  %v268_v52 = vld [vmem:[%s5048_s25 + $0xa8] sm:$0xff] }
  0xff   : > { %v4379_v56 = vcombine.high %v267_v50, %v275_v51  ;;  %v4378_v0 = vcombine.low %v267_v50, %v275_v51  ;;  %v4380_v1 = vcombine.low %v268_v52, %v276_v53  ;;  %v388_v50 = vld [vmem:[%s5048_s25 + $0x468] sm:$0xff] }
 0x101   : > { %3572 = vmatpush1.bf16.msra.mxu0 %v4758_v58  ;;  %3654 = vmatpush1.bf16.msra.mxu1 %v4760_v59  ;;  %v4381_v58 = vcombine.high %v268_v52, %v276_v53  ;;  %v283_v59 = vld [vmem:[%s5048_s25 + $0x120] sm:$0xff] }
 0x102   : > { %3573 = vmatprep.subr.bf16.mxu0 %v4775_v61  ;;  %3655 = vmatprep.subr.bf16.mxu1 %v4777_v62  ;;  %v291_v61 = vld [vmem:[%s5048_s25 + $0x160] sm:$0xff]  ;;  %v284_v62 = vld [vmem:[%s5048_s25 + $0x128] sm:$0xff] }
 0x103   : > { %v4395_v2 = vcombine.high %v283_v59, %v291_v61  ;;  %v4394_v9 = vcombine.low %v283_v59, %v291_v61  ;;  %v4396_v10 = vcombine.low %v284_v62, %v292_v63  ;;  %v404_v59 = vld [vmem:[%s5048_s25 + $0x4e8] sm:$0xff] }
 0x105   : > { %3574 = vmatpush1.bf16.msra.mxu0 %v4774_v3  ;;  %3656 = vmatpush1.bf16.msra.mxu1 %v4776_v5  ;;  %v4397_v3 = vcombine.high %v284_v62, %v292_v63  ;;  %v299_v5 = vld [vmem:[%s5048_s25 + $0x1a0] sm:$0xff] }
 0x106   : > { %3575 = vmatprep.subr.bf16.mxu0 %v4791_v6  ;;  %3657 = vmatprep.subr.bf16.mxu1 %v4793_v7  ;;  %v307_v6 = vld [vmem:[%s5048_s25 + $0x1e0] sm:$0xff]  ;;  %v300_v7 = vld [vmem:[%s5048_s25 + $0x1a8] sm:$0xff] }
 0x107   : > { %v4411_v11 = vcombine.high %v299_v5, %v307_v6  ;;  %v4410_v17 = vcombine.low %v299_v5, %v307_v6  ;;  %v4412_v18 = vcombine.low %v300_v7, %v308_v8  ;;  %v420_v5 = vld [vmem:[%s5048_s25 + $0x568] sm:$0xff] }
 0x109   : > { %3576 = vmatpush1.bf16.msra.mxu0 %v4790_v12  ;;  %3658 = vmatpush1.bf16.msra.mxu1 %v4792_v13  ;;  %v4413_v12 = vcombine.high %v300_v7, %v308_v8  ;;  %v315_v13 = vld [vmem:[%s5048_s25 + $0x220] sm:$0xff] }
 0x10a   : > { %3577 = vmatprep.subr.bf16.mxu0 %v4807_v14  ;;  %3659 = vmatprep.subr.bf16.mxu1 %v4809_v15  ;;  %v323_v14 = vld [vmem:[%s5048_s25 + $0x260] sm:$0xff]  ;;  %v316_v15 = vld [vmem:[%s5048_s25 + $0x228] sm:$0xff] }
 0x10b   : > { %v4427_v19 = vcombine.high %v315_v13, %v323_v14  ;;  %v4426_v26 = vcombine.low %v315_v13, %v323_v14  ;;  %v4428_v27 = vcombine.low %v316_v15, %v324_v16  ;;  %v436_v13 = vld [vmem:[%s5048_s25 + $0x5e8] sm:$0xff] }
 0x10d   : > { %3578 = vmatpush1.bf16.msra.mxu0 %v4806_v20  ;;  %3660 = vmatpush1.bf16.msra.mxu1 %v4808_v21  ;;  %v4429_v20 = vcombine.high %v316_v15, %v324_v16  ;;  %v331_v21 = vld [vmem:[%s5048_s25 + $0x2a0] sm:$0xff] }
 0x10e   : > { %3579 = vmatprep.subr.bf16.mxu0 %v4823_v23  ;;  %3661 = vmatprep.subr.bf16.mxu1 %v4825_v24  ;;  %v339_v23 = vld [vmem:[%s5048_s25 + $0x2e0] sm:$0xff]  ;;  %v332_v24 = vld [vmem:[%s5048_s25 + $0x2a8] sm:$0xff] }
 0x10f   : > { %v4443_v28 = vcombine.high %v331_v21, %v339_v23  ;;  %v4442_v34 = vcombine.low %v331_v21, %v339_v23  ;;  %v4444_v35 = vcombine.low %v332_v24, %v340_v25  ;;  %v452_v21 = vld [vmem:[%s5048_s25 + $0x668] sm:$0xff] }
 0x111   : > { %3580 = vmatpush1.bf16.msra.mxu0 %v4822_v29  ;;  %3662 = vmatpush1.bf16.msra.mxu1 %v4824_v30  ;;  %v4445_v29 = vcombine.high %v332_v24, %v340_v25  ;;  %v347_v30 = vld [vmem:[%s5048_s25 + $0x320] sm:$0xff] }
 0x112   : > { %3581 = vmatprep.subr.bf16.mxu0 %v4839_v60  ;;  %3663 = vmatprep.subr.bf16.mxu1 %v4841_v32  ;;  %v355_v60 = vld [vmem:[%s5048_s25 + $0x360] sm:$0xff]  ;;  %v348_v32 = vld [vmem:[%s5048_s25 + $0x328] sm:$0xff] }
 0x113   : > { %v4459_v36 = vcombine.high %v347_v30, %v355_v60  ;;  %v4458_v42 = vcombine.low %v347_v30, %v355_v60  ;;  %v4460_v43 = vcombine.low %v348_v32, %v356_v33  ;;  %v468_v30 = vld [vmem:[%s5048_s25 + $0x6e8] sm:$0xff] }
 0x115   : > { %3582 = vmatpush1.bf16.msra.mxu0 %v4838_v37  ;;  %3664 = vmatpush1.bf16.msra.mxu1 %v4840_v38  ;;  %v4461_v37 = vcombine.high %v348_v32, %v356_v33  ;;  %v363_v38 = vld [vmem:[%s5048_s25 + $0x3a0] sm:$0xff] }
 0x116   : > { %3583 = vmatprep.subr.bf16.mxu0 %v4855_v39  ;;  %3665 = vmatprep.subr.bf16.mxu1 %v4857_v40  ;;  %v371_v39 = vld [vmem:[%s5048_s25 + $0x3e0] sm:$0xff]  ;;  %v364_v40 = vld [vmem:[%s5048_s25 + $0x3a8] sm:$0xff] }
 0x117   : > { %v4475_v44 = vcombine.high %v363_v38, %v371_v39  ;;  %v4474_v51 = vcombine.low %v363_v38, %v371_v39  ;;  %v4476_v52 = vcombine.low %v364_v40, %v372_v41  ;;  %v484_v38 = vld [vmem:[%s5048_s25 + $0x768] sm:$0xff] }
 0x119   : > { %3584 = vmatpush1.bf16.msra.mxu0 %v4854_v45  ;;  %3666 = vmatpush1.bf16.msra.mxu1 %v4856_v46  ;;  %v4477_v45 = vcombine.high %v364_v40, %v372_v41  ;;  %v379_v46 = vld [vmem:[%s5048_s25 + $0x420] sm:$0xff] }
 0x11a   : > { %3676 = vmatprep.subr.bf16.mxu0 %v4363_v47  ;;  %3758 = vmatprep.subr.bf16.mxu1 %v4365_v49  ;;  %v387_v47 = vld [vmem:[%s5048_s25 + $0x460] sm:$0xff]  ;;  %v380_v49 = vld [vmem:[%s5048_s25 + $0x428] sm:$0xff] }
 0x11b   : > { %v4491_v53 = vcombine.high %v379_v46, %v387_v47  ;;  %v4490_v61 = vcombine.low %v379_v46, %v387_v47  ;;  %v4492_v62 = vcombine.low %v380_v49, %v388_v50  ;;  %v500_v46 = vld [vmem:[%s5048_s25 + $0x7e8] sm:$0xff] }
 0x11c   : > { %3586 = vmatmul.mubr.bf16.vlgmr.msra.gmra.mrb[4].mxu0 %v5218_v57  ;;  %3668 = vmatmul.mubr.bf16.vlgmr.msra.gmra.mrb[4].mxu1 %v5218_v57 }
 0x11d   : > { %3677 = vmatpush1.bf16.msra.mxu0 %v4362_v54  ;;  %3759 = vmatpush1.bf16.msra.mxu1 %v4364_v55  ;;  %v4493_v54 = vcombine.high %v380_v49, %v388_v50  ;;  %v395_v55 = vld [vmem:[%s5048_s25 + $0x4a0] sm:$0xff] }
 0x11e   : > { %3678 = vmatprep.subr.bf16.mxu0 %v4379_v56  ;;  %3760 = vmatprep.subr.bf16.mxu1 %v4381_v58  ;;  %v403_v56 = vld [vmem:[%s5048_s25 + $0x4e0] sm:$0xff]  ;;  %v396_v58 = vld [vmem:[%s5048_s25 + $0x4a8] sm:$0xff] }
 0x11f   : > { %3708 = vmatprep.mubr.bf16.mxu0 %v5098_v4  ;;  %3790 = vmatprep.mubr.bf16.mxu1 %v5098_v4  ;;  %v4507_v63 = vcombine.high %v395_v55, %v403_v56  ;;  %v4506_v6 = vcombine.low %v395_v55, %v403_v56  ;;  %v4508_v7 = vcombine.low %v396_v58, %v404_v59  ;;  %v516_v55 = vld [vmem:[%s5048_s25 + $0x868] sm:$0xff] }
 0x121   : > { %3679 = vmatpush1.bf16.msra.mxu0 %v4378_v0  ;;  %3761 = vmatpush1.bf16.msra.mxu1 %v4380_v1  ;;  %v4509_v0 = vcombine.high %v396_v58, %v404_v59  ;;  %v411_v1 = vld [vmem:[%s5048_s25 + $0x520] sm:$0xff] }
 0x122   : > { %3680 = vmatprep.subr.bf16.mxu0 %v4395_v2  ;;  %3762 = vmatprep.subr.bf16.mxu1 %v4397_v3  ;;  %v419_v2 = vld [vmem:[%s5048_s25 + $0x560] sm:$0xff]  ;;  %v412_v3 = vld [vmem:[%s5048_s25 + $0x528] sm:$0xff] }
 0x123   : > { %v4523_v8 = vcombine.high %v411_v1, %v419_v2  ;;  %v4522_v14 = vcombine.low %v411_v1, %v419_v2  ;;  %v4524_v15 = vcombine.low %v412_v3, %v420_v5  ;;  %v532_v1 = vld [vmem:[%s5048_s25 + $0x8e8] sm:$0xff] }
 0x125   : > { %3681 = vmatpush1.bf16.msra.mxu0 %v4394_v9  ;;  %3763 = vmatpush1.bf16.msra.mxu1 %v4396_v10  ;;  %v4525_v9 = vcombine.high %v412_v3, %v420_v5  ;;  %v427_v10 = vld [vmem:[%s5048_s25 + $0x5a0] sm:$0xff] }
 0x126   : > { %3682 = vmatprep.subr.bf16.mxu0 %v4411_v11  ;;  %3764 = vmatprep.subr.bf16.mxu1 %v4413_v12  ;;  %v435_v11 = vld [vmem:[%s5048_s25 + $0x5e0] sm:$0xff]  ;;  %v428_v12 = vld [vmem:[%s5048_s25 + $0x5a8] sm:$0xff] }
 0x127   : > { %v4539_v16 = vcombine.high %v427_v10, %v435_v11  ;;  %v4538_v23 = vcombine.low %v427_v10, %v435_v11  ;;  %v4540_v24 = vcombine.low %v428_v12, %v436_v13  ;;  %v548_v10 = vld [vmem:[%s5048_s25 + $0x968] sm:$0xff] }
 0x129   : > { %3683 = vmatpush1.bf16.msra.mxu0 %v4410_v17  ;;  %3765 = vmatpush1.bf16.msra.mxu1 %v4412_v18  ;;  %v4541_v17 = vcombine.high %v428_v12, %v436_v13  ;;  %v443_v18 = vld [vmem:[%s5048_s25 + $0x620] sm:$0xff] }
 0x12a   : > { %3684 = vmatprep.subr.bf16.mxu0 %v4427_v19  ;;  %3766 = vmatprep.subr.bf16.mxu1 %v4429_v20  ;;  %v451_v19 = vld [vmem:[%s5048_s25 + $0x660] sm:$0xff]  ;;  %v444_v20 = vld [vmem:[%s5048_s25 + $0x628] sm:$0xff] }
 0x12b   : > { %v4555_v25 = vcombine.high %v443_v18, %v451_v19  ;;  %v4554_v60 = vcombine.low %v443_v18, %v451_v19  ;;  %v4556_v32 = vcombine.low %v444_v20, %v452_v21  ;;  %v564_v18 = vld [vmem:[%s5048_s25 + $0x9e8] sm:$0xff] }
 0x12d   : > { %3685 = vmatpush1.bf16.msra.mxu0 %v4426_v26  ;;  %3767 = vmatpush1.bf16.msra.mxu1 %v4428_v27  ;;  %v4557_v26 = vcombine.high %v444_v20, %v452_v21  ;;  %v459_v27 = vld [vmem:[%s5048_s25 + $0x6a0] sm:$0xff] }
 0x12e   : > { %3686 = vmatprep.subr.bf16.mxu0 %v4443_v28  ;;  %3768 = vmatprep.subr.bf16.mxu1 %v4445_v29  ;;  %v467_v28 = vld [vmem:[%s5048_s25 + $0x6e0] sm:$0xff]  ;;  %v460_v29 = vld [vmem:[%s5048_s25 + $0x6a8] sm:$0xff] }
 0x12f   : > { %v4571_v33 = vcombine.high %v459_v27, %v467_v28  ;;  %v4570_v39 = vcombine.low %v459_v27, %v467_v28  ;;  %v4572_v40 = vcombine.low %v460_v29, %v468_v30  ;;  %v580_v27 = vld [vmem:[%s5048_s25 + $0xa68] sm:$0xff] }
 0x131   : > { %3687 = vmatpush1.bf16.msra.mxu0 %v4442_v34  ;;  %3769 = vmatpush1.bf16.msra.mxu1 %v4444_v35  ;;  %v4573_v34 = vcombine.high %v460_v29, %v468_v30  ;;  %v475_v35 = vld [vmem:[%s5048_s25 + $0x720] sm:$0xff] }
 0x132   : > { %3688 = vmatprep.subr.bf16.mxu0 %v4459_v36  ;;  %3770 = vmatprep.subr.bf16.mxu1 %v4461_v37  ;;  %v483_v36 = vld [vmem:[%s5048_s25 + $0x760] sm:$0xff]  ;;  %v476_v37 = vld [vmem:[%s5048_s25 + $0x728] sm:$0xff] }
 0x133   : > { %v4587_v41 = vcombine.high %v475_v35, %v483_v36  ;;  %v4586_v47 = vcombine.low %v475_v35, %v483_v36  ;;  %v4588_v49 = vcombine.low %v476_v37, %v484_v38  ;;  %v595_v35 = vld [vmem:[%s5048_s25 + $0xae0] sm:$0xff]  ;;  %v588_v36 = vld [vmem:[%s5048_s25 + $0xaa8] sm:$0xff] }
 0x135   : > { %3689 = vmatpush1.bf16.msra.mxu0 %v4458_v42  ;;  %3771 = vmatpush1.bf16.msra.mxu1 %v4460_v43  ;;  %v4589_v42 = vcombine.high %v476_v37, %v484_v38  ;;  %v491_v43 = vld [vmem:[%s5048_s25 + $0x7a0] sm:$0xff]  ;;  %v596_v37 = vld [vmem:[%s5048_s25 + $0xae8] sm:$0xff] }
 0x136   : > { %3690 = vmatprep.subr.bf16.mxu0 %v4475_v44  ;;  %3772 = vmatprep.subr.bf16.mxu1 %v4477_v45  ;;  %v499_v44 = vld [vmem:[%s5048_s25 + $0x7e0] sm:$0xff]  ;;  %v492_v45 = vld [vmem:[%s5048_s25 + $0x7a8] sm:$0xff] }
 0x137   : > { %v4603_v50 = vcombine.high %v491_v43, %v499_v44  ;;  %v4602_v56 = vcombine.low %v491_v43, %v499_v44  ;;  %v4604_v58 = vcombine.low %v492_v45, %v500_v46  ;;  %v603_v43 = vld [vmem:[%s5048_s25 + $0xb20] sm:$0xff] }
 0x138   : > { %v611_v44 = vld [vmem:[%s5048_s25 + $0xb60] sm:$0xff] }
 0x139   : > { %3691 = vmatpush1.bf16.msra.mxu0 %v4474_v51  ;;  %3773 = vmatpush1.bf16.msra.mxu1 %v4476_v52  ;;  %v4605_v51 = vcombine.high %v492_v45, %v500_v46  ;;  %v507_v52 = vld [vmem:[%s5048_s25 + $0x820] sm:$0xff]  ;;  %v604_v45 = vld [vmem:[%s5048_s25 + $0xb28] sm:$0xff] }
 0x13a   : > { %3692 = vmatprep.subr.bf16.mxu0 %v4491_v53  ;;  %3774 = vmatprep.subr.bf16.mxu1 %v4493_v54  ;;  %v515_v53 = vld [vmem:[%s5048_s25 + $0x860] sm:$0xff]  ;;  %v508_v54 = vld [vmem:[%s5048_s25 + $0x828] sm:$0xff] }
 0x13b   : > { %v4619_v59 = vcombine.high %v507_v52, %v515_v53  ;;  %v4618_v2 = vcombine.low %v507_v52, %v515_v53  ;;  %v4620_v3 = vcombine.low %v508_v54, %v516_v55  ;;  %v612_v46 = vld [vmem:[%s5048_s25 + $0xb68] sm:$0xff] }
 0x13c   : > { %v4717_v53 = vcombine.high %v604_v45, %v612_v46 }
 0x13d   : > { %3693 = vmatpush1.bf16.msra.mxu0 %v4490_v61  ;;  %3775 = vmatpush1.bf16.msra.mxu1 %v4492_v62  ;;  %v4621_v61 = vcombine.high %v508_v54, %v516_v55  ;;  %v523_v62 = vld [vmem:[%s5048_s25 + $0x8a0] sm:$0xff] }
 0x13e   : > { %3694 = vmatprep.subr.bf16.mxu0 %v4507_v63  ;;  %3776 = vmatprep.subr.bf16.mxu1 %v4509_v0  ;;  %v531_v63 = vld [vmem:[%s5048_s25 + $0x8e0] sm:$0xff]  ;;  %v524_v0 = vld [vmem:[%s5048_s25 + $0x8a8] sm:$0xff] }
 0x13f   : > { %v4635_v5 = vcombine.high %v523_v62, %v531_v63  ;;  %v4634_v11 = vcombine.low %v523_v62, %v531_v63  ;;  %v4636_v12 = vcombine.low %v524_v0, %v532_v1  ;;  %v619_v54 = vld [vmem:[%s5048_s25 + $0xba0] sm:$0xff] }
 0x140   : > { %v627_v55 = vld [vmem:[%s5048_s25 + $0xbe0] sm:$0xff] }
 0x141   : > { %3695 = vmatpush1.bf16.msra.mxu0 %v4506_v6  ;;  %3777 = vmatpush1.bf16.msra.mxu1 %v4508_v7  ;;  %v4637_v6 = vcombine.high %v524_v0, %v532_v1  ;;  %v539_v7 = vld [vmem:[%s5048_s25 + $0x920] sm:$0xff]  ;;  %v4714_v1 = vcombine.low %v603_v43, %v611_v44 }
 0x142   : > { %3696 = vmatprep.subr.bf16.mxu0 %v4523_v8  ;;  %3778 = vmatprep.subr.bf16.mxu1 %v4525_v9  ;;  %v547_v8 = vld [vmem:[%s5048_s25 + $0x960] sm:$0xff]  ;;  %v540_v9 = vld [vmem:[%s5048_s25 + $0x928] sm:$0xff] }
 0x143   : > { %v4651_v13 = vcombine.high %v539_v7, %v547_v8  ;;  %v4650_v19 = vcombine.low %v539_v7, %v547_v8  ;;  %v4652_v20 = vcombine.low %v540_v9, %v548_v10  ;;  %v4731_v7 = vcombine.high %v619_v54, %v627_v55 }
 0x145   : > { %3697 = vmatpush1.bf16.msra.mxu0 %v4522_v14  ;;  %3779 = vmatpush1.bf16.msra.mxu1 %v4524_v15  ;;  %v4653_v14 = vcombine.high %v540_v9, %v548_v10  ;;  %v555_v15 = vld [vmem:[%s5048_s25 + $0x9a0] sm:$0xff] }
 0x146   : > { %3698 = vmatprep.subr.bf16.mxu0 %v4539_v16  ;;  %3780 = vmatprep.subr.bf16.mxu1 %v4541_v17  ;;  %v563_v16 = vld [vmem:[%s5048_s25 + $0x9e0] sm:$0xff]  ;;  %v556_v17 = vld [vmem:[%s5048_s25 + $0x9a8] sm:$0xff] }
 0x147   : > { %v4667_v21 = vcombine.high %v555_v15, %v563_v16  ;;  %v4666_v28 = vcombine.low %v555_v15, %v563_v16  ;;  %v4668_v29 = vcombine.low %v556_v17, %v564_v18  ;;  %v644_v15 = vld [vmem:[%s5048_s25 + $0xc68] sm:$0xff]  ;;  %v242_v16 = vld [vmem:[#allocation2] sm:$0xff] }
 0x149   : > { %3699 = vmatpush1.bf16.msra.mxu0 %v4538_v23  ;;  %3781 = vmatpush1.bf16.msra.mxu1 %v4540_v24  ;;  %v4669_v23 = vcombine.high %v556_v17, %v564_v18  ;;  %v571_v24 = vld [vmem:[%s5048_s25 + $0xa20] sm:$0xff]  ;;  %v4730_v17 = vcombine.low %v619_v54, %v627_v55 }
 0x14a   : > { %3700 = vmatprep.subr.bf16.mxu0 %v4555_v25  ;;  %3782 = vmatprep.subr.bf16.mxu1 %v4557_v26  ;;  %v579_v25 = vld [vmem:[%s5048_s25 + $0xa60] sm:$0xff]  ;;  %v572_v26 = vld [vmem:[%s5048_s25 + $0xa28] sm:$0xff] }
 0x14b   : > { %v4683_v30 = vcombine.high %v571_v24, %v579_v25  ;;  %v4682_v38 = vcombine.low %v571_v24, %v579_v25  ;;  %v659_v24 = vld [vmem:[%s5048_s25 + $0xce0] sm:$0xff] }
 0x14d   : > { %3701 = vmatpush1.bf16.msra.mxu0 %v4554_v60  ;;  %3783 = vmatpush1.bf16.msra.mxu1 %v4556_v32  ;;  %v4685_v60 = vcombine.high %v572_v26, %v580_v27  ;;  %v4994_v32 = vmov 1983009808  }
 0x14e   : > { %3702 = vmatprep.subr.bf16.mxu0 %v4571_v33  ;;  %3784 = vmatprep.subr.bf16.mxu1 %v4573_v34  ;;  %v4023_v33 = vunpack.c.l.s4 %v4994_v32  ;;  %v587_v34 = vld [vmem:[%s5048_s25 + $0xaa0] sm:$0xff] }
 0x14f   : > { %v667_v32 = vld [vmem:[%s5048_s25 + $0xd20] sm:$0xff] }
 0x151   : > { %3703 = vmatpush1.bf16.msra.mxu0 %v4570_v39  ;;  %3785 = vmatpush1.bf16.msra.mxu1 %v4572_v40  ;;  %v4684_v39 = vcombine.low %v572_v26, %v580_v27  ;;  %v4699_v40 = vcombine.high %v587_v34, %v595_v35  ;;  %v652_v26 = vld [vmem:[%s5048_s25 + $0xca8] sm:$0xff] }
 0x152   : > { %3704 = vmatprep.subr.bf16.mxu0 %v4587_v41  ;;  %3786 = vmatprep.subr.bf16.mxu1 %v4589_v42  ;;  %v4024_v41 = vunpack.c.0.s8 %v4023_v33  ;;  %v4701_v42 = vcombine.high %v588_v36, %v596_v37  ;;  %v660_v27 = vld [vmem:[%s5048_s25 + $0xce8] sm:$0xff]  ;;  %v675_v33 = vld [vmem:[%s5048_s25 + $0xd60] sm:$0xff] }
 0x154   : > { %v5451_v52 = vsub.s32 %v4024_v41, %v5075_v48  ;;  %v691_v41 = vld [vmem:[%s5048_s25 + $0xde0] sm:$0xff] }
 0x155   : > { %3705 = vmatpush1.bf16.msra.mxu0 %v4586_v47  ;;  %3787 = vmatpush1.bf16.msra.mxu1 %v4588_v49  ;;  %v4698_v47 = vcombine.low %v587_v34, %v595_v35  ;;  %v4700_v49 = vcombine.low %v588_v36, %v596_v37  ;;  %v668_v34 = vld [vmem:[%s5048_s25 + $0xd28] sm:$0xff]  ;;  %v4764_v37 = vcombine.low %v652_v26, %v660_v27 }
 0x156   : > { %3706 = vmatprep.subr.bf16.mxu0 %v4603_v50  ;;  %3788 = vmatprep.subr.bf16.mxu1 %v4605_v51  ;;  %v4715_v50 = vcombine.high %v603_v43, %v611_v44  ;;  %v676_v35 = vld [vmem:[%s5048_s25 + $0xd68] sm:$0xff]  ;;  %v4778_v44 = vcombine.low %v667_v32, %v675_v33 }
 0x157   : > { %v692_v43 = vld [vmem:[%s5048_s25 + $0xde8] sm:$0xff] }
 0x159   : > { %3707 = vmatpush1.bf16.msra.mxu0 %v4602_v56  ;;  %3789 = vmatpush1.bf16.msra.mxu1 %v4604_v58 }
 0x15a   : > { %3717 = vmatprep.subr.bf16.mxu0 %v4619_v59  ;;  %3799 = vmatprep.subr.bf16.mxu1 %v4621_v61  ;;  %v620_v59 = vld [vmem:[%s5048_s25 + $0xba8] sm:$0xff] }
 0x15b   : > { %v628_v61 = vld [vmem:[%s5048_s25 + $0xbe8] sm:$0xff] }
 0x15c   : > { %3709 = vmatmul.mubr.bf16.vlgmr.msra.gmra.mrb[8].mxu0 %v5142_v22  ;;  %3791 = vmatmul.mubr.bf16.vlgmr.msra.gmra.mrb[8].mxu1 %v5142_v22  ;;  %v4733_v10 = vcombine.high %v620_v59, %v628_v61 }
 0x15d   : > { %3718 = vmatpush1.bf16.msra.mxu0 %v4618_v2  ;;  %3800 = vmatpush1.bf16.msra.mxu1 %v4620_v3 }
 0x15e   : > { %3719 = vmatprep.subr.bf16.mxu0 %v4635_v5  ;;  %3801 = vmatprep.subr.bf16.mxu1 %v4637_v6  ;;  %v4716_v6 = vcombine.low %v604_v45, %v612_v46  ;;  %v4780_v45 = vcombine.low %v668_v34, %v676_v35 }
 0x15f   : > { %3749 = vmatprep.mubr.bf16.mxu0 %v5150_v31  ;;  %3831 = vmatprep.mubr.bf16.mxu1 %v5150_v31 }
 0x161   : > { %3720 = vmatpush1.bf16.msra.mxu0 %v4634_v11  ;;  %3802 = vmatpush1.bf16.msra.mxu1 %v4636_v12  ;;  %v635_v11 = vld [vmem:[%s5048_s25 + $0xc20] sm:$0xff] }
 0x162   : > { %3721 = vmatprep.subr.bf16.mxu0 %v4651_v13  ;;  %3803 = vmatprep.subr.bf16.mxu1 %v4653_v14  ;;  %v643_v12 = vld [vmem:[%s5048_s25 + $0xc60] sm:$0xff]  ;;  %v636_v14 = vld [vmem:[%s5048_s25 + $0xc28] sm:$0xff] }
 0x165   : > { %3722 = vmatpush1.bf16.msra.mxu0 %v4650_v19  ;;  %3804 = vmatpush1.bf16.msra.mxu1 %v4652_v20  ;;  %v4732_v19 = vcombine.low %v620_v59, %v628_v61  ;;  %v4747_v20 = vcombine.high %v635_v11, %v643_v12  ;;  %v715_v59 = vld [vmem:[%s5048_s25 + $0xea0] sm:$0xff] }
 0x166   : > { %3723 = vmatprep.subr.bf16.mxu0 %v4667_v21  ;;  %3805 = vmatprep.subr.bf16.mxu1 %v4669_v23  ;;  %v4749_v21 = vcombine.high %v636_v14, %v644_v15  ;;  %v651_v23 = vld [vmem:[%s5048_s25 + $0xca0] sm:$0xff] }
 0x167   : > { %v4762_v36 = vcombine.low %v651_v23, %v659_v24  ;;  %v723_v61 = vld [vmem:[%s5048_s25 + $0xee0] sm:$0xff] }
 0x169   : > { %3724 = vmatpush1.bf16.msra.mxu0 %v4666_v28  ;;  %3806 = vmatpush1.bf16.msra.mxu1 %v4668_v29  ;;  %v4746_v28 = vcombine.low %v635_v11, %v643_v12  ;;  %v4748_v29 = vcombine.low %v636_v14, %v644_v15  ;;  %v755_v14 = vld [vmem:[%s5048_s25 + $0xfe0] sm:$0xff]  ;;  %v748_v15 = vld [vmem:[%s5048_s25 + $0xfa8] sm:$0xff] }
 0x16a   : > { %3725 = vmatprep.subr.bf16.mxu0 %v4683_v30  ;;  %3807 = vmatprep.subr.bf16.mxu1 %v4685_v60  ;;  %v4763_v30 = vcombine.high %v651_v23, %v659_v24  ;;  %v4765_v60 = vcombine.high %v652_v26, %v660_v27  ;;  %v261_v23 = vld [vmem:[%s5048_s25 + $0x70] sm:$0xff]  ;;  %v254_v24 = vld [vmem:[%s5048_s25 + $0x38] sm:$0xff] }
 0x16d   : > { %3726 = vmatpush1.bf16.msra.mxu0 %v4682_v38  ;;  %3808 = vmatpush1.bf16.msra.mxu1 %v4684_v39  ;;  %v4779_v38 = vcombine.high %v667_v32, %v675_v33  ;;  %v4781_v39 = vcombine.high %v668_v34, %v676_v35  ;;  %v270_v32 = vld [vmem:[%s5048_s25 + $0xb8] sm:$0xff] }
 0x16e   : > { %3727 = vmatprep.subr.bf16.mxu0 %v4699_v40  ;;  %3809 = vmatprep.subr.bf16.mxu1 %v4701_v42  ;;  %v683_v40 = vld [vmem:[%s5048_s25 + $0xda0] sm:$0xff]  ;;  %v684_v42 = vld [vmem:[%s5048_s25 + $0xda8] sm:$0xff]  ;;  %v278_v33 = vld [vmem:[%s5048_s25 + $0xf8] sm:$0xff] }
 0x16f   : > { %v3423_v51 = vpop.f32.mrb[0].mxu0  ;;  %v3505_v56 = vpop.f32.mrb[0].mxu1  ;;  %v4795_v46 = vcombine.high %v683_v40, %v691_v41  ;;  %v4794_v54 = vcombine.low %v683_v40, %v691_v41  ;;  %v4796_v55 = vcombine.low %v684_v42, %v692_v43  ;;  %v286_v40 = vld [vmem:[%s5048_s25 + $0x138] sm:$0xff] }
 0x170   : > { %v3425_v58 = vpop.f32.mrb[1].mxu0  ;;  %v3507_v63 = vpop.f32.mrb[1].mxu1  ;;  %v294_v41 = vld [vmem:[%s5048_s25 + $0x178] sm:$0xff] }
 0x171   : > { %v4020_v62 = vcombine.low %v3423_v51, %v3425_v58  ;;  %v3427_v0 = vpop.f32.mrb[2].mxu0  ;;  %3728 = vmatpush1.bf16.msra.mxu0 %v4698_v47  ;;  %v4021_v2 = vcombine.low %v3505_v56, %v3507_v63  ;;  %v3509_v3 = vpop.f32.mrb[2].mxu1  ;;  %3810 = vmatpush1.bf16.msra.mxu1 %v4700_v49  ;;  %v4797_v47 = vcombine.high %v684_v42, %v692_v43  ;;  %v699_v49 = vld [vmem:[%s5048_s25 + $0xe20] sm:$0xff]  ;;  %v700_v51 = vld [vmem:[%s5048_s25 + $0xe28] sm:$0xff] }
 0x172   : > { %v3428_v5 = vpop.f32.mrb[3].mxu0  ;;  %3729 = vmatprep.subr.bf16.mxu0 %v4715_v50  ;;  %v3510_v9 = vpop.f32.mrb[3].mxu1  ;;  %3811 = vmatprep.subr.bf16.mxu1 %v4717_v53  ;;  %v707_v50 = vld [vmem:[%s5048_s25 + $0xe60] sm:$0xff]  ;;  %v708_v53 = vld [vmem:[%s5048_s25 + $0xe68] sm:$0xff]  ;;  %v4384_v43 = vcombine.low %v270_v32, %v278_v33 }
 0x173   : > { %v4028_v8 = vrot.slane %v4020_v62, %v5451_v52  ;;  %v4035_v13 = vrot.slane %v4021_v2, %v5451_v52  ;;  %v4811_v56 = vcombine.high %v699_v49, %v707_v50  ;;  %v4813_v58 = vcombine.high %v700_v51, %v708_v53  ;;  %v716_v62 = vld [vmem:[%s5048_s25 + $0xea8] sm:$0xff]  ;;  %v731_v5 = vld [vmem:[%s5048_s25 + $0xf20] sm:$0xff] }
 0x174   : > { %v724_v63 = vld [vmem:[%s5048_s25 + $0xee8] sm:$0xff]  ;;  %v4810_v0 = vcombine.low %v699_v49, %v707_v50  ;;  %v4827_v2 = vcombine.high %v715_v59, %v723_v61  ;;  %v4826_v9 = vcombine.low %v715_v59, %v723_v61  ;;  %v302_v49 = vld [vmem:[%s5048_s25 + $0x1b8] sm:$0xff] }
 0x175   : > { %3730 = vmatpush1.bf16.msra.mxu0 %v4714_v1  ;;  %v4036_v18 = vcombine.low %v4028_v8, %v4035_v13  ;;  %3812 = vmatpush1.bf16.msra.mxu1 %v4716_v6  ;;  %v4812_v1 = vcombine.low %v700_v51, %v708_v53  ;;  %v4829_v3 = vcombine.high %v716_v62, %v724_v63  ;;  %v739_v6 = vld [vmem:[%s5048_s25 + $0xf60] sm:$0xff]  ;;  %v740_v8 = vld [vmem:[%s5048_s25 + $0xf68] sm:$0xff]  ;;  %v310_v50 = vld [vmem:[%s5048_s25 + $0x1f8] sm:$0xff] }
 0x176   : > { %3731 = vmatprep.subr.bf16.mxu0 %v4731_v7  ;;  %3813 = vmatprep.subr.bf16.mxu1 %v4733_v10  ;;  %v732_v7 = vld [vmem:[%s5048_s25 + $0xf28] sm:$0xff]  ;;  %v4828_v10 = vcombine.low %v716_v62, %v724_v63  ;;  %v4843_v11 = vcombine.high %v731_v5, %v739_v6  ;;  %v747_v13 = vld [vmem:[%s5048_s25 + $0xfa0] sm:$0xff]  ;;  %v4400_v53 = vcombine.low %v286_v40, %v294_v41  ;;  %v318_v59 = vld [vmem:[%s5048_s25 + $0x238] sm:$0xff] }
 0x177   : > { %v4092_v25 = vadd.f32 %v4036_v18, %v242_v16  ;;  %v4845_v12 = vcombine.high %v732_v7, %v740_v8  ;;  %v756_v16 = vld [vmem:[%s5048_s25 + $0xfe8] sm:$0xff]  ;;  %v4844_v18 = vcombine.low %v732_v7, %v740_v8  ;;  %v4858_v26 = vcombine.low %v747_v13, %v755_v14  ;;  %v326_v61 = vld [vmem:[%s5048_s25 + $0x278] sm:$0xff] }
 0x178   : > { %v4860_v27 = vcombine.low %v748_v15, %v756_v16  ;;  %v4432_v7 = vcombine.low %v318_v59, %v326_v61 }
 0x179   : > { %3732 = vmatpush1.bf16.msra.mxu0 %v4730_v17  ;;  %4096 = vst [vmem:[#allocation2] sm:$0xff] %v4092_v25  ;;  %3814 = vmatpush1.bf16.msra.mxu1 %v4732_v19  ;;  %v4842_v17 = vcombine.low %v731_v5, %v739_v6  ;;  %v4859_v19 = vcombine.high %v747_v13, %v755_v14  ;;  %v262_v25 = vld [vmem:[%s5048_s25 + $0x78] sm:$0xff] }
 0x17a   : > { %3733 = vmatprep.subr.bf16.mxu0 %v4747_v20  ;;  %3815 = vmatprep.subr.bf16.mxu1 %v4749_v21  ;;  %v4861_v20 = vcombine.high %v748_v15, %v756_v16  ;;  %v253_v21 = vld [vmem:[%s5048_s25 + $0x30] sm:$0xff]  ;;  %v4368_v35 = vcombine.low %v254_v24, %v262_v25  ;;  %v342_v5 = vld [vmem:[%s5048_s25 + $0x2f8] sm:$0xff] }
 0x17b   : > { %v4366_v34 = vcombine.low %v253_v21, %v261_v23  ;;  %v358_v13 = vld [vmem:[%s5048_s25 + $0x378] sm:$0xff] }
 0x17d   : > { %3734 = vmatpush1.bf16.msra.mxu0 %v4746_v28  ;;  %3816 = vmatpush1.bf16.msra.mxu1 %v4748_v29  ;;  %v4367_v28 = vcombine.high %v253_v21, %v261_v23  ;;  %v4369_v29 = vcombine.high %v254_v24, %v262_v25  ;;  %v374_v21 = vld [vmem:[%s5048_s25 + $0x3f8] sm:$0xff] }
 0x17e   : > { %3735 = vmatprep.subr.bf16.mxu0 %v4763_v30  ;;  %3817 = vmatprep.subr.bf16.mxu1 %v4765_v60  ;;  %v269_v30 = vld [vmem:[%s5048_s25 + $0xb0] sm:$0xff] }
 0x17f   : > { %v277_v60 = vld [vmem:[%s5048_s25 + $0xf0] sm:$0xff] }
 0x180   : > { %v4382_v42 = vcombine.low %v269_v30, %v277_v60 }
 0x181   : > { %3736 = vmatpush1.bf16.msra.mxu0 %v4762_v36  ;;  %3818 = vmatpush1.bf16.msra.mxu1 %v4764_v37  ;;  %v4383_v36 = vcombine.high %v269_v30, %v277_v60  ;;  %v4385_v37 = vcombine.high %v270_v32, %v278_v33  ;;  %v390_v30 = vld [vmem:[%s5048_s25 + $0x478] sm:$0xff] }
 0x182   : > { %3737 = vmatprep.subr.bf16.mxu0 %v4779_v38  ;;  %3819 = vmatprep.subr.bf16.mxu1 %v4781_v39  ;;  %v285_v38 = vld [vmem:[%s5048_s25 + $0x130] sm:$0xff] }
 0x183   : > { %v293_v39 = vld [vmem:[%s5048_s25 + $0x170] sm:$0xff] }
 0x184   : > { %v4398_v51 = vcombine.low %v285_v38, %v293_v39 }
 0x185   : > { %3738 = vmatpush1.bf16.msra.mxu0 %v4778_v44  ;;  %3820 = vmatpush1.bf16.msra.mxu1 %v4780_v45  ;;  %v4399_v44 = vcombine.high %v285_v38, %v293_v39  ;;  %v4401_v45 = vcombine.high %v286_v40, %v294_v41  ;;  %v406_v38 = vld [vmem:[%s5048_s25 + $0x4f8] sm:$0xff] }
 0x186   : > { %3739 = vmatprep.subr.bf16.mxu0 %v4795_v46  ;;  %3821 = vmatprep.subr.bf16.mxu1 %v4797_v47  ;;  %v301_v46 = vld [vmem:[%s5048_s25 + $0x1b0] sm:$0xff] }
 0x187   : > { %v309_v47 = vld [vmem:[%s5048_s25 + $0x1f0] sm:$0xff] }
 0x188   : > { %v4414_v62 = vcombine.low %v301_v46, %v309_v47 }
 0x189   : > { %3740 = vmatpush1.bf16.msra.mxu0 %v4794_v54  ;;  %3822 = vmatpush1.bf16.msra.mxu1 %v4796_v55  ;;  %v4415_v54 = vcombine.high %v301_v46, %v309_v47  ;;  %v4417_v55 = vcombine.high %v302_v49, %v310_v50  ;;  %v422_v46 = vld [vmem:[%s5048_s25 + $0x578] sm:$0xff] }
 0x18a   : > { %3741 = vmatprep.subr.bf16.mxu0 %v4811_v56  ;;  %3823 = vmatprep.subr.bf16.mxu1 %v4813_v58  ;;  %v317_v56 = vld [vmem:[%s5048_s25 + $0x230] sm:$0xff] }
 0x18b   : > { %v325_v58 = vld [vmem:[%s5048_s25 + $0x270] sm:$0xff] }
 0x18c   : > { %v4431_v63 = vcombine.high %v317_v56, %v325_v58  ;;  %v4430_v6 = vcombine.low %v317_v56, %v325_v58  ;;  %v438_v56 = vld [vmem:[%s5048_s25 + $0x5f8] sm:$0xff] }
 0x18d   : > { %3742 = vmatpush1.bf16.msra.mxu0 %v4810_v0  ;;  %3824 = vmatpush1.bf16.msra.mxu1 %v4812_v1  ;;  %v4433_v0 = vcombine.high %v318_v59, %v326_v61  ;;  %v333_v1 = vld [vmem:[%s5048_s25 + $0x2b0] sm:$0xff] }
 0x18e   : > { %3743 = vmatprep.subr.bf16.mxu0 %v4827_v2  ;;  %3825 = vmatprep.subr.bf16.mxu1 %v4829_v3  ;;  %v341_v2 = vld [vmem:[%s5048_s25 + $0x2f0] sm:$0xff]  ;;  %v334_v3 = vld [vmem:[%s5048_s25 + $0x2b8] sm:$0xff] }
 0x18f   : > { %v4447_v8 = vcombine.high %v333_v1, %v341_v2  ;;  %v4446_v14 = vcombine.low %v333_v1, %v341_v2  ;;  %v4448_v15 = vcombine.low %v334_v3, %v342_v5  ;;  %v454_v1 = vld [vmem:[%s5048_s25 + $0x678] sm:$0xff] }
 0x191   : > { %3744 = vmatpush1.bf16.msra.mxu0 %v4826_v9  ;;  %3826 = vmatpush1.bf16.msra.mxu1 %v4828_v10  ;;  %v4449_v9 = vcombine.high %v334_v3, %v342_v5  ;;  %v349_v10 = vld [vmem:[%s5048_s25 + $0x330] sm:$0xff] }
 0x192   : > { %3745 = vmatprep.subr.bf16.mxu0 %v4843_v11  ;;  %3827 = vmatprep.subr.bf16.mxu1 %v4845_v12  ;;  %v357_v11 = vld [vmem:[%s5048_s25 + $0x370] sm:$0xff]  ;;  %v350_v12 = vld [vmem:[%s5048_s25 + $0x338] sm:$0xff] }
 0x193   : > { %v4463_v16 = vcombine.high %v349_v10, %v357_v11  ;;  %v4462_v23 = vcombine.low %v349_v10, %v357_v11  ;;  %v4464_v24 = vcombine.low %v350_v12, %v358_v13  ;;  %v470_v10 = vld [vmem:[%s5048_s25 + $0x6f8] sm:$0xff] }
 0x195   : > { %3746 = vmatpush1.bf16.msra.mxu0 %v4842_v17  ;;  %3828 = vmatpush1.bf16.msra.mxu1 %v4844_v18  ;;  %v4465_v17 = vcombine.high %v350_v12, %v358_v13  ;;  %v365_v18 = vld [vmem:[%s5048_s25 + $0x3b0] sm:$0xff] }
 0x196   : > { %3747 = vmatprep.subr.bf16.mxu0 %v4859_v19  ;;  %3829 = vmatprep.subr.bf16.mxu1 %v4861_v20  ;;  %v373_v19 = vld [vmem:[%s5048_s25 + $0x3f0] sm:$0xff]  ;;  %v366_v20 = vld [vmem:[%s5048_s25 + $0x3b8] sm:$0xff] }
 0x197   : > { %v4479_v25 = vcombine.high %v365_v18, %v373_v19  ;;  %v4478_v60 = vcombine.low %v365_v18, %v373_v19  ;;  %v4480_v32 = vcombine.low %v366_v20, %v374_v21  ;;  %v486_v18 = vld [vmem:[%s5048_s25 + $0x778] sm:$0xff] }
 0x199   : > { %3748 = vmatpush1.bf16.msra.mxu0 %v4858_v26  ;;  %3830 = vmatpush1.bf16.msra.mxu1 %v4860_v27  ;;  %v4481_v26 = vcombine.high %v366_v20, %v374_v21  ;;  %v381_v27 = vld [vmem:[%s5048_s25 + $0x430] sm:$0xff] }
 0x19a   : > { %3840 = vmatprep.subr.bf16.mxu0 %v4367_v28  ;;  %3922 = vmatprep.subr.bf16.mxu1 %v4369_v29  ;;  %v389_v28 = vld [vmem:[%s5048_s25 + $0x470] sm:$0xff]  ;;  %v382_v29 = vld [vmem:[%s5048_s25 + $0x438] sm:$0xff] }
 0x19b   : > { %v4495_v33 = vcombine.high %v381_v27, %v389_v28  ;;  %v4494_v39 = vcombine.low %v381_v27, %v389_v28  ;;  %v4496_v40 = vcombine.low %v382_v29, %v390_v30  ;;  %v502_v27 = vld [vmem:[%s5048_s25 + $0x7f8] sm:$0xff] }
 0x19c   : > { %3750 = vmatmul.mubr.bf16.vlgmr.msra.gmra.mrb[8].mxu0 %v5218_v57  ;;  %3832 = vmatmul.mubr.bf16.vlgmr.msra.gmra.mrb[8].mxu1 %v5218_v57 }
 0x19d   : > { %3841 = vmatpush1.bf16.msra.mxu0 %v4366_v34  ;;  %3923 = vmatpush1.bf16.msra.mxu1 %v4368_v35  ;;  %v4497_v34 = vcombine.high %v382_v29, %v390_v30  ;;  %v397_v35 = vld [vmem:[%s5048_s25 + $0x4b0] sm:$0xff] }
 0x19e   : > { %3842 = vmatprep.subr.bf16.mxu0 %v4383_v36  ;;  %3924 = vmatprep.subr.bf16.mxu1 %v4385_v37  ;;  %v405_v36 = vld [vmem:[%s5048_s25 + $0x4f0] sm:$0xff]  ;;  %v398_v37 = vld [vmem:[%s5048_s25 + $0x4b8] sm:$0xff] }
 0x19f   : > { %3872 = vmatprep.mubr.bf16.mxu0 %v5098_v4  ;;  %3954 = vmatprep.mubr.bf16.mxu1 %v5098_v4  ;;  %v4416_v4 = vcombine.low %v302_v49, %v310_v50  ;;  %v4511_v41 = vcombine.high %v397_v35, %v405_v36  ;;  %v4510_v47 = vcombine.low %v397_v35, %v405_v36  ;;  %v518_v35 = vld [vmem:[%s5048_s25 + $0x878] sm:$0xff] }
 0x1a0   : > { %v4512_v49 = vcombine.low %v398_v37, %v406_v38 }
 0x1a1   : > { %3843 = vmatpush1.bf16.msra.mxu0 %v4382_v42  ;;  %3925 = vmatpush1.bf16.msra.mxu1 %v4384_v43  ;;  %v4513_v42 = vcombine.high %v398_v37, %v406_v38  ;;  %v413_v43 = vld [vmem:[%s5048_s25 + $0x530] sm:$0xff] }
 0x1a2   : > { %3844 = vmatprep.subr.bf16.mxu0 %v4399_v44  ;;  %3926 = vmatprep.subr.bf16.mxu1 %v4401_v45  ;;  %v421_v44 = vld [vmem:[%s5048_s25 + $0x570] sm:$0xff]  ;;  %v414_v45 = vld [vmem:[%s5048_s25 + $0x538] sm:$0xff] }
 0x1a3   : > { %v4527_v50 = vcombine.high %v413_v43, %v421_v44  ;;  %v4526_v58 = vcombine.low %v413_v43, %v421_v44  ;;  %v4528_v59 = vcombine.low %v414_v45, %v422_v46  ;;  %v534_v43 = vld [vmem:[%s5048_s25 + $0x8f8] sm:$0xff] }
 0x1a5   : > { %3845 = vmatpush1.bf16.msra.mxu0 %v4398_v51  ;;  %3927 = vmatpush1.bf16.msra.mxu1 %v4400_v53  ;;  %v4529_v51 = vcombine.high %v414_v45, %v422_v46  ;;  %v429_v53 = vld [vmem:[%s5048_s25 + $0x5b0] sm:$0xff] }
 0x1a6   : > { %3846 = vmatprep.subr.bf16.mxu0 %v4415_v54  ;;  %3928 = vmatprep.subr.bf16.mxu1 %v4417_v55  ;;  %v437_v54 = vld [vmem:[%s5048_s25 + $0x5f0] sm:$0xff]  ;;  %v430_v55 = vld [vmem:[%s5048_s25 + $0x5b8] sm:$0xff] }
 0x1a7   : > { %v4543_v61 = vcombine.high %v429_v53, %v437_v54  ;;  %v4542_v2 = vcombine.low %v429_v53, %v437_v54  ;;  %v4544_v3 = vcombine.low %v430_v55, %v438_v56  ;;  %v550_v53 = vld [vmem:[%s5048_s25 + $0x978] sm:$0xff] }
 0x1a9   : > { %3847 = vmatpush1.bf16.msra.mxu0 %v4414_v62  ;;  %3929 = vmatpush1.bf16.msra.mxu1 %v4416_v4  ;;  %v4545_v62 = vcombine.high %v430_v55, %v438_v56  ;;  %v445_v4 = vld [vmem:[%s5048_s25 + $0x630] sm:$0xff] }
 0x1aa   : > { %3848 = vmatprep.subr.bf16.mxu0 %v4431_v63  ;;  %3930 = vmatprep.subr.bf16.mxu1 %v4433_v0  ;;  %v453_v63 = vld [vmem:[%s5048_s25 + $0x670] sm:$0xff]  ;;  %v446_v0 = vld [vmem:[%s5048_s25 + $0x638] sm:$0xff] }
 0x1ab   : > { %v4559_v5 = vcombine.high %v445_v4, %v453_v63  ;;  %v4558_v11 = vcombine.low %v445_v4, %v453_v63  ;;  %v4560_v12 = vcombine.low %v446_v0, %v454_v1  ;;  %v566_v4 = vld [vmem:[%s5048_s25 + $0x9f8] sm:$0xff] }
 0x1ad   : > { %3849 = vmatpush1.bf16.msra.mxu0 %v4430_v6  ;;  %3931 = vmatpush1.bf16.msra.mxu1 %v4432_v7  ;;  %v4561_v6 = vcombine.high %v446_v0, %v454_v1  ;;  %v461_v7 = vld [vmem:[%s5048_s25 + $0x6b0] sm:$0xff] }
 0x1ae   : > { %3850 = vmatprep.subr.bf16.mxu0 %v4447_v8  ;;  %3932 = vmatprep.subr.bf16.mxu1 %v4449_v9  ;;  %v469_v8 = vld [vmem:[%s5048_s25 + $0x6f0] sm:$0xff]  ;;  %v462_v9 = vld [vmem:[%s5048_s25 + $0x6b8] sm:$0xff] }
 0x1af   : > { %v4575_v13 = vcombine.high %v461_v7, %v469_v8  ;;  %v4574_v19 = vcombine.low %v461_v7, %v469_v8  ;;  %v4576_v20 = vcombine.low %v462_v9, %v470_v10 }
 0x1b1   : > { %3851 = vmatpush1.bf16.msra.mxu0 %v4446_v14  ;;  %3933 = vmatpush1.bf16.msra.mxu1 %v4448_v15  ;;  %v4577_v14 = vcombine.high %v462_v9, %v470_v10  ;;  %v477_v15 = vld [vmem:[%s5048_s25 + $0x730] sm:$0xff] }
 0x1b2   : > { %3852 = vmatprep.subr.bf16.mxu0 %v4463_v16  ;;  %3934 = vmatprep.subr.bf16.mxu1 %v4465_v17  ;;  %v485_v16 = vld [vmem:[%s5048_s25 + $0x770] sm:$0xff]  ;;  %v478_v17 = vld [vmem:[%s5048_s25 + $0x738] sm:$0xff] }
 0x1b3   : > { %v4591_v21 = vcombine.high %v477_v15, %v485_v16  ;;  %v4590_v28 = vcombine.low %v477_v15, %v485_v16  ;;  %v4592_v29 = vcombine.low %v478_v17, %v486_v18  ;;  %v589_v10 = vld [vmem:[%s5048_s25 + $0xab0] sm:$0xff] }
 0x1b5   : > { %3853 = vmatpush1.bf16.msra.mxu0 %v4462_v23  ;;  %3935 = vmatpush1.bf16.msra.mxu1 %v4464_v24  ;;  %v4593_v23 = vcombine.high %v478_v17, %v486_v18  ;;  %v493_v24 = vld [vmem:[%s5048_s25 + $0x7b0] sm:$0xff] }
 0x1b6   : > { %3854 = vmatprep.subr.bf16.mxu0 %v4479_v25  ;;  %3936 = vmatprep.subr.bf16.mxu1 %v4481_v26  ;;  %v501_v25 = vld [vmem:[%s5048_s25 + $0x7f0] sm:$0xff]  ;;  %v494_v26 = vld [vmem:[%s5048_s25 + $0x7b8] sm:$0xff] }
 0x1b7   : > { %v4607_v30 = vcombine.high %v493_v24, %v501_v25  ;;  %v4606_v36 = vcombine.low %v493_v24, %v501_v25  ;;  %v4608_v37 = vcombine.low %v494_v26, %v502_v27  ;;  %v605_v18 = vld [vmem:[%s5048_s25 + $0xb30] sm:$0xff] }
 0x1b9   : > { %3855 = vmatpush1.bf16.msra.mxu0 %v4478_v60  ;;  %3937 = vmatpush1.bf16.msra.mxu1 %v4480_v32  ;;  %v4609_v60 = vcombine.high %v494_v26, %v502_v27  ;;  %v509_v32 = vld [vmem:[%s5048_s25 + $0x830] sm:$0xff] }
 0x1ba   : > { %3856 = vmatprep.subr.bf16.mxu0 %v4495_v33  ;;  %3938 = vmatprep.subr.bf16.mxu1 %v4497_v34  ;;  %v517_v33 = vld [vmem:[%s5048_s25 + $0x870] sm:$0xff]  ;;  %v510_v34 = vld [vmem:[%s5048_s25 + $0x838] sm:$0xff] }
 0x1bb   : > { %v4623_v38 = vcombine.high %v509_v32, %v517_v33  ;;  %v4622_v44 = vcombine.low %v509_v32, %v517_v33  ;;  %v4624_v45 = vcombine.low %v510_v34, %v518_v35  ;;  %v622_v32 = vld [vmem:[%s5048_s25 + $0xbb8] sm:$0xff] }
 0x1bc   : > { %v630_v33 = vld [vmem:[%s5048_s25 + $0xbf8] sm:$0xff] }
 0x1bd   : > { %3857 = vmatpush1.bf16.msra.mxu0 %v4494_v39  ;;  %3939 = vmatpush1.bf16.msra.mxu1 %v4496_v40  ;;  %v4625_v39 = vcombine.high %v510_v34, %v518_v35  ;;  %v525_v40 = vld [vmem:[%s5048_s25 + $0x8b0] sm:$0xff] }
 0x1be   : > { %3858 = vmatprep.subr.bf16.mxu0 %v4511_v41  ;;  %3940 = vmatprep.subr.bf16.mxu1 %v4513_v42  ;;  %v533_v41 = vld [vmem:[%s5048_s25 + $0x8f0] sm:$0xff]  ;;  %v526_v42 = vld [vmem:[%s5048_s25 + $0x8b8] sm:$0xff] }
 0x1bf   : > { %v4639_v46 = vcombine.high %v525_v40, %v533_v41  ;;  %v4638_v54 = vcombine.low %v525_v40, %v533_v41  ;;  %v4640_v55 = vcombine.low %v526_v42, %v534_v43 }
 0x1c1   : > { %3859 = vmatpush1.bf16.msra.mxu0 %v4510_v47  ;;  %3941 = vmatpush1.bf16.msra.mxu1 %v4512_v49  ;;  %v4641_v47 = vcombine.high %v526_v42, %v534_v43  ;;  %v541_v49 = vld [vmem:[%s5048_s25 + $0x930] sm:$0xff] }
 0x1c2   : > { %3860 = vmatprep.subr.bf16.mxu0 %v4527_v50  ;;  %3942 = vmatprep.subr.bf16.mxu1 %v4529_v51  ;;  %v549_v50 = vld [vmem:[%s5048_s25 + $0x970] sm:$0xff]  ;;  %v542_v51 = vld [vmem:[%s5048_s25 + $0x938] sm:$0xff] }
 0x1c3   : > { %v4655_v56 = vcombine.high %v541_v49, %v549_v50  ;;  %v4656_v63 = vcombine.low %v542_v51, %v550_v53 }
 0x1c5   : > { %3861 = vmatpush1.bf16.msra.mxu0 %v4526_v58  ;;  %3943 = vmatpush1.bf16.msra.mxu1 %v4528_v59  ;;  %v4657_v58 = vcombine.high %v542_v51, %v550_v53  ;;  %v557_v59 = vld [vmem:[%s5048_s25 + $0x9b0] sm:$0xff]  ;;  %v646_v51 = vld [vmem:[%s5048_s25 + $0xc78] sm:$0xff] }
 0x1c6   : > { %3862 = vmatprep.subr.bf16.mxu0 %v4543_v61  ;;  %3944 = vmatprep.subr.bf16.mxu1 %v4545_v62  ;;  %v565_v61 = vld [vmem:[%s5048_s25 + $0x9f0] sm:$0xff]  ;;  %v558_v62 = vld [vmem:[%s5048_s25 + $0x9b8] sm:$0xff] }
 0x1c7   : > { %v4671_v0 = vcombine.high %v557_v59, %v565_v61  ;;  %v4673_v1 = vcombine.high %v558_v62, %v566_v4  ;;  %v4670_v7 = vcombine.low %v557_v59, %v565_v61  ;;  %v243_v53 = vld [vmem:[#allocation2 + $0x8] sm:$0xff]  ;;  %v653_v61 = vld [vmem:[%s5048_s25 + $0xcb0] sm:$0xff] }
 0x1c9   : > { %3863 = vmatpush1.bf16.msra.mxu0 %v4542_v2  ;;  %3945 = vmatpush1.bf16.msra.mxu1 %v4544_v3  ;;  %v573_v2 = vld [vmem:[%s5048_s25 + $0xa30] sm:$0xff] }
 0x1ca   : > { %3864 = vmatprep.subr.bf16.mxu0 %v4559_v5  ;;  %3946 = vmatprep.subr.bf16.mxu1 %v4561_v6  ;;  %v581_v3 = vld [vmem:[%s5048_s25 + $0xa70] sm:$0xff]  ;;  %v574_v5 = vld [vmem:[%s5048_s25 + $0xa38] sm:$0xff] }
 0x1cb   : > { %v582_v6 = vld [vmem:[%s5048_s25 + $0xa78] sm:$0xff]  ;;  %v4687_v8 = vcombine.high %v573_v2, %v581_v3 }
 0x1cc   : > { %v4689_v9 = vcombine.high %v574_v5, %v582_v6  ;;  %v4688_v15 = vcombine.low %v574_v5, %v582_v6  ;;  %v669_v5 = vld [vmem:[%s5048_s25 + $0xd30] sm:$0xff] }
 0x1cd   : > { %3865 = vmatpush1.bf16.msra.mxu0 %v4558_v11  ;;  %3947 = vmatpush1.bf16.msra.mxu1 %v4560_v12  ;;  %v597_v11 = vld [vmem:[%s5048_s25 + $0xaf0] sm:$0xff]  ;;  %v590_v12 = vld [vmem:[%s5048_s25 + $0xab8] sm:$0xff] }
 0x1ce   : > { %3866 = vmatprep.subr.bf16.mxu0 %v4575_v13  ;;  %3948 = vmatprep.subr.bf16.mxu1 %v4577_v14  ;;  %v598_v13 = vld [vmem:[%s5048_s25 + $0xaf8] sm:$0xff]  ;;  %v4686_v14 = vcombine.low %v573_v2, %v581_v3  ;;  %v4703_v16 = vcombine.high %v589_v10, %v597_v11  ;;  %v677_v6 = vld [vmem:[%s5048_s25 + $0xd70] sm:$0xff] }
 0x1cf   : > { %v4705_v17 = vcombine.high %v590_v12, %v598_v13  ;;  %v4704_v24 = vcombine.low %v590_v12, %v598_v13  ;;  %v685_v12 = vld [vmem:[%s5048_s25 + $0xdb0] sm:$0xff] }
 0x1d0   : > { %v693_v13 = vld [vmem:[%s5048_s25 + $0xdf0] sm:$0xff] }
 0x1d1   : > { %3867 = vmatpush1.bf16.msra.mxu0 %v4574_v19  ;;  %3949 = vmatpush1.bf16.msra.mxu1 %v4576_v20  ;;  %v613_v19 = vld [vmem:[%s5048_s25 + $0xb70] sm:$0xff]  ;;  %v606_v20 = vld [vmem:[%s5048_s25 + $0xb38] sm:$0xff] }
 0x1d2   : > { %3868 = vmatprep.subr.bf16.mxu0 %v4591_v21  ;;  %3950 = vmatprep.subr.bf16.mxu1 %v4593_v23  ;;  %v614_v21 = vld [vmem:[%s5048_s25 + $0xb78] sm:$0xff]  ;;  %v4702_v23 = vcombine.low %v589_v10, %v597_v11  ;;  %v4719_v25 = vcombine.high %v605_v18, %v613_v19  ;;  %v4783_v10 = vcombine.high %v669_v5, %v677_v6 }
 0x1d3   : > { %v4721_v27 = vcombine.high %v606_v20, %v614_v21  ;;  %v4720_v41 = vcombine.low %v606_v20, %v614_v21  ;;  %v701_v20 = vld [vmem:[%s5048_s25 + $0xe30] sm:$0xff] }
 0x1d4   : > { %v709_v21 = vld [vmem:[%s5048_s25 + $0xe70] sm:$0xff] }
 0x1d5   : > { %3869 = vmatpush1.bf16.msra.mxu0 %v4590_v28  ;;  %3951 = vmatpush1.bf16.msra.mxu1 %v4592_v29  ;;  %v621_v28 = vld [vmem:[%s5048_s25 + $0xbb0] sm:$0xff] }
 0x1d6   : > { %3870 = vmatprep.subr.bf16.mxu0 %v4607_v30  ;;  %3952 = vmatprep.subr.bf16.mxu1 %v4609_v60  ;;  %v629_v29 = vld [vmem:[%s5048_s25 + $0xbf0] sm:$0xff] }
 0x1d7   : > { %v4735_v42 = vcombine.high %v621_v28, %v629_v29 }
 0x1d9   : > { %3871 = vmatpush1.bf16.msra.mxu0 %v4606_v36  ;;  %3953 = vmatpush1.bf16.msra.mxu1 %v4608_v37  ;;  %v4718_v37 = vcombine.low %v605_v18, %v613_v19  ;;  %v4799_v18 = vcombine.high %v685_v12, %v693_v13 }
 0x1da   : > { %3881 = vmatprep.subr.bf16.mxu0 %v4623_v38  ;;  %3963 = vmatprep.subr.bf16.mxu1 %v4625_v39 }
 0x1dc   : > { %3873 = vmatmul.mubr.bf16.vlgmr.msra.gmra.mrb[12].mxu0 %v5142_v22  ;;  %3955 = vmatmul.mubr.bf16.vlgmr.msra.gmra.mrb[12].mxu1 %v5142_v22  ;;  %v4654_v22 = vcombine.low %v541_v49, %v549_v50  ;;  %v638_v50 = vld [vmem:[%s5048_s25 + $0xc38] sm:$0xff] }
 0x1dd   : > { %3882 = vmatpush1.bf16.msra.mxu0 %v4622_v44  ;;  %3964 = vmatpush1.bf16.msra.mxu1 %v4624_v45  ;;  %v4737_v45 = vcombine.high %v622_v32, %v630_v33  ;;  %v4753_v59 = vcombine.high %v638_v50, %v646_v51 }
 0x1de   : > { %3883 = vmatprep.subr.bf16.mxu0 %v4639_v46  ;;  %3965 = vmatprep.subr.bf16.mxu1 %v4641_v47  ;;  %v637_v46 = vld [vmem:[%s5048_s25 + $0xc30] sm:$0xff] }
 0x1df   : > { %3913 = vmatprep.mubr.bf16.mxu0 %v5150_v31  ;;  %3995 = vmatprep.mubr.bf16.mxu1 %v5150_v31  ;;  %v4672_v31 = vcombine.low %v558_v62, %v566_v4  ;;  %v645_v47 = vld [vmem:[%s5048_s25 + $0xc70] sm:$0xff] }
 0x1e0   : > { %v661_v62 = vld [vmem:[%s5048_s25 + $0xcf0] sm:$0xff] }
 0x1e1   : > { %3884 = vmatpush1.bf16.msra.mxu0 %v4638_v54  ;;  %3966 = vmatpush1.bf16.msra.mxu1 %v4640_v55  ;;  %v4734_v54 = vcombine.low %v621_v28, %v629_v29  ;;  %v4767_v2 = vcombine.high %v653_v61, %v661_v62  ;;  %v717_v29 = vld [vmem:[%s5048_s25 + $0xeb0] sm:$0xff] }
 0x1e2   : > { %3885 = vmatprep.subr.bf16.mxu0 %v4655_v56  ;;  %3967 = vmatprep.subr.bf16.mxu1 %v4657_v58  ;;  %v4736_v56 = vcombine.low %v622_v32, %v630_v33  ;;  %v4751_v58 = vcombine.high %v637_v46, %v645_v47  ;;  %v726_v32 = vld [vmem:[%s5048_s25 + $0xef8] sm:$0xff]  ;;  %v4814_v33 = vcombine.low %v701_v20, %v709_v21 }
 0x1e5   : > { %3886 = vmatpush1.bf16.msra.mxu0 %v4654_v22  ;;  %3968 = vmatpush1.bf16.msra.mxu1 %v4656_v63  ;;  %v654_v22 = vld [vmem:[%s5048_s25 + $0xcb8] sm:$0xff] }
 0x1e6   : > { %3887 = vmatprep.subr.bf16.mxu0 %v4671_v0  ;;  %3969 = vmatprep.subr.bf16.mxu1 %v4673_v1  ;;  %v662_v63 = vld [vmem:[%s5048_s25 + $0xcf8] sm:$0xff]  ;;  %v4750_v0 = vcombine.low %v637_v46, %v645_v47  ;;  %v4752_v1 = vcombine.low %v638_v50, %v646_v51  ;;  %v757_v46 = vld [vmem:[%s5048_s25 + $0xff0] sm:$0xff] }
 0x1e7   : > { %v4769_v3 = vcombine.high %v654_v22, %v662_v63  ;;  %v750_v47 = vld [vmem:[%s5048_s25 + $0xfb8] sm:$0xff] }
 0x1e9   : > { %3888 = vmatpush1.bf16.msra.mxu0 %v4670_v7  ;;  %3970 = vmatpush1.bf16.msra.mxu1 %v4672_v31  ;;  %v670_v7 = vld [vmem:[%s5048_s25 + $0xd38] sm:$0xff] }
 0x1ea   : > { %3889 = vmatprep.subr.bf16.mxu0 %v4687_v8  ;;  %3971 = vmatprep.subr.bf16.mxu1 %v4689_v9  ;;  %v678_v31 = vld [vmem:[%s5048_s25 + $0xd78] sm:$0xff]  ;;  %v4766_v8 = vcombine.low %v653_v61, %v661_v62  ;;  %v4768_v9 = vcombine.low %v654_v22, %v662_v63 }
 0x1eb   : > { %v4785_v11 = vcombine.high %v670_v7, %v678_v31 }
 0x1ed   : > { %3890 = vmatpush1.bf16.msra.mxu0 %v4686_v14  ;;  %3972 = vmatpush1.bf16.msra.mxu1 %v4688_v15  ;;  %v686_v14 = vld [vmem:[%s5048_s25 + $0xdb8] sm:$0xff] }
 0x1ee   : > { %3891 = vmatprep.subr.bf16.mxu0 %v4703_v16  ;;  %3973 = vmatprep.subr.bf16.mxu1 %v4705_v17  ;;  %v694_v15 = vld [vmem:[%s5048_s25 + $0xdf8] sm:$0xff]  ;;  %v4782_v16 = vcombine.low %v669_v5, %v677_v6  ;;  %v4784_v17 = vcombine.low %v670_v7, %v678_v31  ;;  %v244_v6 = vld [vmem:[#allocation2 + $0x10] sm:$0xff] }
 0x1ef   : > { %v3587_v26 = vpop.f32.mrb[4].mxu0  ;;  %v3669_v30 = vpop.f32.mrb[4].mxu1  ;;  %v4801_v19 = vcombine.high %v686_v14, %v694_v15 }
 0x1f0   : > { %v3589_v60 = vpop.f32.mrb[5].mxu0  ;;  %v3671_v35 = vpop.f32.mrb[5].mxu1 }
 0x1f1   : > { %v4037_v34 = vcombine.low %v3587_v26, %v3589_v60  ;;  %v3591_v36 = vpop.f32.mrb[6].mxu0  ;;  %3892 = vmatpush1.bf16.msra.mxu0 %v4702_v23  ;;  %v4038_v38 = vcombine.low %v3669_v30, %v3671_v35  ;;  %v3673_v39 = vpop.f32.mrb[6].mxu1  ;;  %3974 = vmatpush1.bf16.msra.mxu1 %v4704_v24  ;;  %v702_v23 = vld [vmem:[%s5048_s25 + $0xe38] sm:$0xff]  ;;  %v4800_v26 = vcombine.low %v686_v14, %v694_v15  ;;  %v725_v30 = vld [vmem:[%s5048_s25 + $0xef0] sm:$0xff] }
 0x1f2   : > { %v3592_v40 = vpop.f32.mrb[7].mxu0  ;;  %3893 = vmatprep.subr.bf16.mxu0 %v4719_v25  ;;  %v3674_v44 = vpop.f32.mrb[7].mxu1  ;;  %3975 = vmatprep.subr.bf16.mxu1 %v4721_v27  ;;  %v710_v24 = vld [vmem:[%s5048_s25 + $0xe78] sm:$0xff]  ;;  %v4798_v25 = vcombine.low %v685_v12, %v693_v13  ;;  %v4815_v27 = vcombine.high %v701_v20, %v709_v21  ;;  %v4831_v35 = vcombine.high %v717_v29, %v725_v30 }
 0x1f3   : > { %v4045_v43 = vrot.slane %v4037_v34, %v5451_v52  ;;  %v4052_v49 = vrot.slane %v4038_v38, %v5451_v52  ;;  %v4817_v28 = vcombine.high %v702_v23, %v710_v24  ;;  %v718_v60 = vld [vmem:[%s5048_s25 + $0xeb8] sm:$0xff]  ;;  %v4816_v34 = vcombine.low %v702_v23, %v710_v24  ;;  %v741_v38 = vld [vmem:[%s5048_s25 + $0xf70] sm:$0xff]  ;;  %v4108_v23 = vld [vmem:[%s5697_s2] sm:$0xff] (!%p4866_p7) }
 0x1f4   : > { %v4833_v36 = vcombine.high %v718_v60, %v726_v32  ;;  %v734_v39 = vld [vmem:[%s5048_s25 + $0xf38] sm:$0xff]  ;;  %v4114_v24 = vsub.s32 (!%p4866_p7), 0, %v5075_v48 }
 0x1f5   : > { %3894 = vmatpush1.bf16.msra.mxu0 %v4718_v37  ;;  %v4053_v55 = vcombine.low %v4045_v43, %v4052_v49  ;;  %3976 = vmatpush1.bf16.msra.mxu1 %v4720_v41  ;;  %v733_v37 = vld [vmem:[%s5048_s25 + $0xf30] sm:$0xff]  ;;  %v742_v40 = vld [vmem:[%s5048_s25 + $0xf78] sm:$0xff]  ;;  %v4830_v41 = vcombine.low %v717_v29, %v725_v30  ;;  %v4134_v29 = vsub.s32 (!%p4866_p7), 5, %v5075_v48  ;;  %v4138_v30 = vsub.s32 (!%p4866_p7), 6, %v5075_v48 }
 0x1f6   : > { %3895 = vmatprep.subr.bf16.mxu0 %v4735_v42  ;;  %3977 = vmatprep.subr.bf16.mxu1 %v4737_v45  ;;  %v4832_v42 = vcombine.low %v718_v60, %v726_v32  ;;  %v4847_v43 = vcombine.high %v733_v37, %v741_v38  ;;  %v4849_v44 = vcombine.high %v734_v39, %v742_v40  ;;  %v749_v45 = vld [vmem:[%s5048_s25 + $0xfb0] sm:$0xff]  ;;  %v758_v49 = vld [vmem:[%s5048_s25 + $0xff8] sm:$0xff]  ;;  %v4142_v60 = vsub.s32 (!%p4866_p7), 7, %v5075_v48 }
 0x1f7   : > { %v4093_v4 = vadd.f32 %v4053_v55, %v243_v53  ;;  %v4846_v50 = vcombine.low %v733_v37, %v741_v38  ;;  %v4848_v51 = vcombine.low %v734_v39, %v742_v40  ;;  %v4863_v53 = vcombine.high %v749_v45, %v757_v46 }
 0x1f8   : > { %v4862_v55 = vcombine.low %v749_v45, %v757_v46  ;;  %v4115_v32 = vrot.slane (!%p4866_p7), %v4108_v23, %v4114_v24  ;;  %v4135_v38 = vrot.slane (!%p4866_p7), %v4108_v23, %v4134_v29  ;;  %v4139_v39 = vrot.slane (!%p4866_p7), %v4108_v23, %v4138_v30 }
 0x1f9   : > { %3896 = vmatpush1.bf16.msra.mxu0 %v4734_v54  ;;  %4097 = vst [vmem:[#allocation2 + $0x8] sm:$0xff] %v4093_v4  ;;  %3978 = vmatpush1.bf16.msra.mxu1 %v4736_v56  ;;  %v4865_v54 = vcombine.high %v750_v47, %v758_v49  ;;  %v4864_v56 = vcombine.low %v750_v47, %v758_v49 }
 0x1fa   : > { %3897 = vmatprep.subr.bf16.mxu0 %v4751_v58  ;;  %3979 = vmatprep.subr.bf16.mxu1 %v4753_v59  ;;  %v4143_v40 = vrot.slane (!%p4866_p7), %v4108_v23, %v4142_v60 }
 0x1fc   : > { %v4194_v46 = vcombine.low (!%p4866_p7), %v4139_v39, %v4143_v40 }
 0x1fd   : > { %3898 = vmatpush1.bf16.msra.mxu0 %v4750_v0  ;;  %3980 = vmatpush1.bf16.msra.mxu1 %v4752_v1 }
 0x1fe   : > { %3899 = vmatprep.subr.bf16.mxu0 %v4767_v2  ;;  %3981 = vmatprep.subr.bf16.mxu1 %v4769_v3 }
 0x201   : > { %3900 = vmatpush1.bf16.msra.mxu0 %v4766_v8  ;;  %3982 = vmatpush1.bf16.msra.mxu1 %v4768_v9 }
 0x202   : > { %3901 = vmatprep.subr.bf16.mxu0 %v4783_v10  ;;  %3983 = vmatprep.subr.bf16.mxu1 %v4785_v11 }
 0x205   : > { %3902 = vmatpush1.bf16.msra.mxu0 %v4782_v16  ;;  %3984 = vmatpush1.bf16.msra.mxu1 %v4784_v17 }
 0x206   : > { %3903 = vmatprep.subr.bf16.mxu0 %v4799_v18  ;;  %3985 = vmatprep.subr.bf16.mxu1 %v4801_v19  ;;  %v245_v19 = vld [vmem:[#allocation2 + $0x18] sm:$0xff] }
 0x209   : > { %3904 = vmatpush1.bf16.msra.mxu0 %v4798_v25  ;;  %3986 = vmatpush1.bf16.msra.mxu1 %v4800_v26  ;;  %v4118_v25 = vsub.s32 (!%p4866_p7), 1, %v5075_v48  ;;  %v4122_v26 = vsub.s32 (!%p4866_p7), 2, %v5075_v48 }
 0x20a   : > { %3905 = vmatprep.subr.bf16.mxu0 %v4815_v27  ;;  %3987 = vmatprep.subr.bf16.mxu1 %v4817_v28  ;;  %v4126_v27 = vsub.s32 (!%p4866_p7), 3, %v5075_v48  ;;  %v4130_v28 = vsub.s32 (!%p4866_p7), 4, %v5075_v48 }
 0x20c   : > { %v4131_v37 = vrot.slane (!%p4866_p7), %v4108_v23, %v4130_v28 }
 0x20d   : > { %3906 = vmatpush1.bf16.msra.mxu0 %v4814_v33  ;;  %3988 = vmatpush1.bf16.msra.mxu1 %v4816_v34  ;;  %v4119_v33 = vrot.slane (!%p4866_p7), %v4108_v23, %v4118_v25  ;;  %v4123_v34 = vrot.slane (!%p4866_p7), %v4108_v23, %v4122_v26 }
 0x20e   : > { %3907 = vmatprep.subr.bf16.mxu0 %v4831_v35  ;;  %3989 = vmatprep.subr.bf16.mxu1 %v4833_v36  ;;  %v4127_v35 = vrot.slane (!%p4866_p7), %v4108_v23, %v4126_v27  ;;  %v4109_v36 = vld [vmem:[%s5697_s2 + $0x8] sm:$0xff] (!%p4866_p7)  ;;  %v4193_v45 = vcombine.low (!%p4866_p7), %v4131_v37, %v4135_v38 }
 0x20f   : > { %v4155_v47 = vrot.slane (!%p4866_p7), %v4109_v36, %v4122_v26  ;;  %v4159_v48 = vrot.slane (!%p4866_p7), %v4109_v36, %v4126_v27 }
 0x211   : > { %3908 = vmatpush1.bf16.msra.mxu0 %v4830_v41  ;;  %3990 = vmatpush1.bf16.msra.mxu1 %v4832_v42  ;;  %v4176_v41 = vcombine.low (!%p4866_p7), %v4115_v32, %v4119_v33  ;;  %v4177_v42 = vcombine.low (!%p4866_p7), %v4123_v34, %v4127_v35 }
 0x212   : > { %3909 = vmatprep.subr.bf16.mxu0 %v4847_v43  ;;  %3991 = vmatprep.subr.bf16.mxu1 %v4849_v44  ;;  %v4147_v43 = vrot.slane (!%p4866_p7), %v4109_v36, %v4114_v24  ;;  %v4151_v44 = vrot.slane (!%p4866_p7), %v4109_v36, %v4118_v25 }
 0x213   : > { %v4184_v49 = vrot.slane (!%p4866_p7), %v4176_v41, %v5451_v52 }
 0x215   : > { %3910 = vmatpush1.bf16.msra.mxu0 %v4846_v50  ;;  %3992 = vmatpush1.bf16.msra.mxu1 %v4848_v51  ;;  %v4191_v50 = vrot.slane (!%p4866_p7), %v4177_v42, %v5451_v52  ;;  %v4210_v51 = vcombine.low (!%p4866_p7), %v4147_v43, %v4151_v44 }
 0x216   : > { %3911 = vmatprep.subr.bf16.mxu0 %v4863_v53  ;;  %3993 = vmatprep.subr.bf16.mxu1 %v4865_v54  ;;  %v4163_v53 = vrot.slane (!%p4866_p7), %v4109_v36, %v4130_v28  ;;  %v4104_v54 = vld [vmem:[#allocation2] sm:$0xff] (!%p4866_p7) }
 0x219   : > { %3912 = vmatpush1.bf16.msra.mxu0 %v4862_v55  ;;  %3994 = vmatpush1.bf16.msra.mxu1 %v4864_v56  ;;  %v4201_v55 = vrot.slane (!%p4866_p7), %v4193_v45, %v5451_v52  ;;  %v4208_v56 = vrot.slane (!%p4866_p7), %v4194_v46, %v5451_v52 }
 0x21c   : > { %3914 = vmatmul.mubr.bf16.vlgmr.msra.gmra.mrb[12].mxu0 %v5218_v57  ;;  %3996 = vmatmul.mubr.bf16.vlgmr.msra.gmra.mrb[12].mxu1 %v5218_v57 }
 0x26f   : > { %v3751_v58 = vpop.f32.mrb[8].mxu0  ;;  %v3833_v59 = vpop.f32.mrb[8].mxu1 }
 0x270   : > { %v3753_v61 = vpop.f32.mrb[9].mxu0  ;;  %v3835_v4 = vpop.f32.mrb[9].mxu1 }
 0x271   : > { %v4054_v62 = vcombine.low %v3751_v58, %v3753_v61  ;;  %v3755_v22 = vpop.f32.mrb[10].mxu0  ;;  %v4055_v63 = vcombine.low %v3833_v59, %v3835_v4  ;;  %v3837_v0 = vpop.f32.mrb[10].mxu1  ;;  %v4211_v58 = vcombine.low (!%p4866_p7), %v4155_v47, %v4159_v48  ;;  %v4167_v59 = vrot.slane (!%p4866_p7), %v4109_v36, %v4134_v29 }
 0x272   : > { %v3756_v1 = vpop.f32.mrb[11].mxu0  ;;  %v3838_v3 = vpop.f32.mrb[11].mxu1  ;;  %v4192_v61 = vcombine.low (!%p4866_p7), %v4184_v49, %v4191_v50  ;;  %v4218_v4 = vrot.slane (!%p4866_p7), %v4210_v51, %v5451_v52  ;;  %v4171_v22 = vrot.slane (!%p4866_p7), %v4109_v36, %v4138_v30  ;;  %v4209_v0 = vcombine.low (!%p4866_p7), %v4201_v55, %v4208_v56 }
 0x273   : > { %v4062_v2 = vrot.slane %v4054_v62, %v5451_v52  ;;  %v4069_v5 = vrot.slane %v4055_v63, %v5451_v52  ;;  %v4105_v62 = vld [vmem:[#allocation2 + $0x8] sm:$0xff] (!%p4866_p7)  ;;  %v4175_v63 = vrot.slane (!%p4866_p7), %v4109_v36, %v4142_v60  ;;  %v4225_v1 = vrot.slane (!%p4866_p7), %v4211_v58, %v5451_v52 }
 0x274   : > { %v4248_v3 = vadd.f32 (!%p4866_p7), %v4192_v61, %v4104_v54 }
 0x275   : > { %v4070_v7 = vcombine.low %v4062_v2, %v4069_v5  ;;  %v4227_v2 = vcombine.low (!%p4866_p7), %v4163_v53, %v4167_v59 }
 0x276   : > { %4252 = vst [vmem:[#allocation3] sm:$0xff] (!%p4866_p7), %v4248_v3 }
 0x277   : > { %v4094_v31 = vadd.f32 %v4070_v7, %v244_v6  ;;  %v4228_v6 = vcombine.low (!%p4866_p7), %v4171_v22, %v4175_v63  ;;  %v4249_v7 = vadd.f32 (!%p4866_p7), %v4209_v0, %v4105_v62 }
 0x279   : > { %4098 = vst [vmem:[#allocation2 + $0x10] sm:$0xff] %v4094_v31  ;;  %v4226_v31 = vcombine.low (!%p4866_p7), %v4218_v4, %v4225_v1  ;;  %4253 = vst [vmem:[#allocation3 + $0x8] sm:$0xff] (!%p4866_p7), %v4249_v7 }
 0x280   : > { %v4106_v5 = vld [vmem:[#allocation2 + $0x10] sm:$0xff] (!%p4866_p7) }
 0x2ef   : > { %v3915_v8 = vpop.f32.mrb[12].mxu0  ;;  %v3997_v57 = vpop.f32.mrb[12].mxu1 }
 0x2f0   : > { %v3917_v9 = vpop.f32.mrb[13].mxu0  ;;  %v3999_v11 = vpop.f32.mrb[13].mxu1 }
 0x2f1   : > { %v4071_v10 = vcombine.low %v3915_v8, %v3917_v9  ;;  %v3919_v12 = vpop.f32.mrb[14].mxu0  ;;  %v4072_v13 = vcombine.low %v3997_v57, %v3999_v11  ;;  %v4001_v14 = vpop.f32.mrb[14].mxu1  ;;  %v4235_v8 = vrot.slane (!%p4866_p7), %v4227_v2, %v5451_v52  ;;  %v4242_v57 = vrot.slane (!%p4866_p7), %v4228_v6, %v5451_v52 }
 0x2f2   : > { %v3920_v15 = vpop.f32.mrb[15].mxu0  ;;  %v4002_v17 = vpop.f32.mrb[15].mxu1  ;;  %v4250_v9 = vadd.f32 (!%p4866_p7), %v4226_v31, %v4106_v5 }
 0x2f3   : > { %v4079_v16 = vrot.slane %v4071_v10, %v5451_v52  ;;  %v4086_v18 = vrot.slane %v4072_v13, %v5451_v52  ;;  %4103 = sbr.rel (%p4866_p7) target bundleno = 772 (0x304), region = 40  ;;  %v4243_v11 = vcombine.low (!%p4866_p7), %v4235_v8, %v4242_v57 }
 0x2f4   : > { %4254 = vst [vmem:[#allocation3 + $0x10] sm:$0xff] (!%p4866_p7), %v4250_v9 }
 0x2f5   : > { %v4087_v20 = vcombine.low %v4079_v16, %v4086_v18 }
 0x2f7   : > { %v4095_v21 = vadd.f32 %v4087_v20, %v245_v19 }
 0x2f9   : > { %4099 = vst [vmem:[#allocation2 + $0x18] sm:$0xff] %v4095_v21 }
 0x300   : > { %v4107_v10 = vld [vmem:[#allocation2 + $0x18] sm:$0xff] }
 0x301   : > { %v4251_v12 = vadd.f32 %v4243_v11, %v4107_v10 }
 0x303   : > { %4255 = vst [vmem:[#allocation3 + $0x18] sm:$0xff] %v4251_v12 }
 0x304 PF: > { %p5660_p8 = scmp.eq.s32.totalorder %s4343_s15, 3  ;;  %s4995_s6 = smov [#allocation3]  }
 0x305   : > { %s4266_s7 = sshll.u32 %s4995_s6, 4  ;;  %s4267_s7 = int_to_ptr.vmem [resolvable:$true] %s4266_s7 }
 0x306   : > { %s4938_s8 = scalar_lea.vmem %s4267_s7, 512  ;;  %p4945_p12 = scmp.lt.s32.totalorder %s4267_s7, %s4267_s7 }
 0x307   : > { %p4939_p9 = scmp.ne.s32.totalorder %s4267_s7, %s4938_s8  ;;  %p4946_p13 = scmp.lt.s32.totalorder %s4938_s8, %s4938_s8 }
 0x309   : > { %p4940_p10 = pnand %p4939_p9, %p5660_p8  ;;  %p4947_p0 = por %p4946_p13, %p4945_p12 }
 0x30b   : > { %p4941_p11 = pneg %p4940_p10 }
 0x30d   : > { %p4948_p1 = pnand %p4947_p0, %p4941_p11 }
 0x30f   : > { %4951 = shalt.err (!%p4948_p1)
}
 0x310   : > { %s4952_s11 = scalar_lea.hbm %s5698_s3, 512 }
 0x311   : > { %p4953_p2 = scmp.ne.s32.totalorder %s5698_s3, %s4952_s11  ;;  %p4958_p5 = scmp.lt.u32.totalorder %s4952_s11, %s5698_s3 }
 0x313   : > { %p4954_p3 = pnand %p4953_p2, %p5660_p8 }
 0x315   : > { %p4955_p4 = pneg %p4954_p3 }
 0x317   : > { %p4960_p6 = pnand %p4958_p5, %p4955_p4 }
 0x319   : > { %4963 = shalt.err (!%p4960_p6)
}
 0x31a   : > { %4905 = dma.vmem_to_hbm [thread:$0]  (%p5660_p8), %s4267_s7, 512, %s5698_s3, [#allocation4]  }
 0x31b   : > { %4977 = dma.done.wait (%p5660_p8), [#allocation4], 512  }
 0x31c   : > { %4979 = vsyncadd (%p5660_p8), [#allocation4], 4294966784 }
 0x31d PF: > { %s14_s14 = sadd.s32 1, %s4990_s14   ;;  %s5700_s12 = smov %s4986_s13 }
 0x31e   : > { %p11_p7 = scmp.ge.s32.totalorder %s14_s14, 6   ;;  %s5701_s13 = smov %s5703_s16 }
 0x320   :  { %13 = sbr.rel (!%p11_p7) target bundleno = 2 (0x2), region = 74 }
 0x327   :  { %4279 = vsyncpa [#allocation4], 1 }
 0x328   :  { %4281 = vsyncpa [#allocation4 + $0x1], 1 }

</bundles_post_ra>
